<compile_context>
chip_gen: v5e
topology: v5e:2x2
jax: 0.10.0
libtpu: 0.0.40
codegen_flags: <defaults>
</compile_context>

<pallas_src>
import math

import numpy as np
import jax
import jax.numpy as jnp
from jax.experimental import pallas as pl
from jax.experimental.pallas import tpu as pltpu

# ----------------------------- configuration --------------------------------
DIM = 128          # args.dim
N_HEADS = 4        # args.n_heads
N_KV_HEADS = 2     # args.n_kv_heads
HEAD_DIM = DIM // N_HEADS          # 32
MULTIPLE_OF = 64
ROPE_THETA = 10000.0
NORM_EPS = 1e-5
SEQ_LEN = 8        # tokens per packed sequence
BATCH = 32         # independent packed causal sequences
B_TILE = 16        # sequences per grid step  -> M_TILE = 128 rows per step

# FeedForward hidden dim, exactly as in the PyTorch __init__ (mp_size == 1)
_hidden = int(2 * (4 * DIM) / 3)
HIDDEN = MULTIPLE_OF * ((_hidden + MULTIPLE_OF - 1) // MULTIPLE_OF)   # 384

HEADS_PER_GROUP = N_HEADS // N_KV_HEADS
QW = N_HEADS * HEAD_DIM            # 128  (query width)
KW = N_KV_HEADS * HEAD_DIM         # 64   (kv width)
QKV_W = 2 * QW + 2 * KW + KW       # 448  [Q | Q@rot | K | K@rot | V]
M_TILE = B_TILE * SEQ_LEN          # 128 rows per grid step


# ------------------------------- the kernel ---------------------------------
def transformer_block_kernel(
    x_ref,        # (M_TILE, DIM)              f32
    mask_ref,     # (HPG*M_TILE, M_TILE)       f32 additive block-diag causal mask
    g_attn_ref,   # (1, DIM)                   f32 RMSNorm weight (attention_norm)
    g_ffn_ref,    # (1, DIM)                   f32 RMSNorm weight (ffn_norm)
    wqkv_ref,     # (DIM, QKV_W)               bf16 [Q|Q@rot|K|K@rot|V], scale folded in
    wo_ref,       # (QW, DIM)                  bf16 wo.weight^T
    w13_ref,      # (DIM, 2*HIDDEN)            bf16 w13.weight^T
    w2_ref,       # (HIDDEN, DIM)              bf16 w2.weight^T
    cosq_ref,     # (M_TILE, QW)               f32 cos table, tiled over heads & seqs
    sinq_ref,     # (M_TILE, QW)               f32
    cosk_ref,     # (M_TILE, KW)               f32
    sink_ref,     # (M_TILE, KW)               f32
    out_ref,      # (M_TILE, DIM)              f32
):
  H, K, HD, HPG = N_HEADS, N_KV_HEADS, HEAD_DIM, HEADS_PER_GROUP
  M = M_TILE
  f32 = jnp.float32
  bf16 = lambda a: a.astype(jnp.bfloat16)

  x = x_ref[...]                                        # (M, DIM) f32

  # ---------------- attention_norm (RMSNorm), f32 on the VPU ----------------
  xn = x * jax.lax.rsqrt(jnp.mean(x * x, axis=-1, keepdims=True) + NORM_EPS)
  xn = xn * g_attn_ref[...]

  # -------- fused QKV + RoPE-pair-swap projection: one (M,128)x(128,448) -----
  qkv = jnp.dot(bf16(xn), wqkv_ref[...], preferred_element_type=f32)
  c = 0
  q_lin = qkv[:, c:c + QW]; c += QW
  q_rot = qkv[:, c:c + QW]; c += QW
  k_lin = qkv[:, c:c + KW]; c += KW
  k_rot = qkv[:, c:c + KW]; c += KW
  v = qkv[:, c:c + KW]

  # RoPE is now pure elementwise (pair-swap matmul folded into wqkv columns)
  q = q_lin * cosq_ref[...] + q_rot * sinq_ref[...]     # (M, QW) pre-scaled
  k = k_lin * cosk_ref[...] + k_rot * sink_ref[...]     # (M, KW)

  # ---------------- grouped (GQA) attention over the packed slab -------------
  # Query heads of each KV group are stacked on the sublane axis so the score /
  # PV matmuls run with M = HPG*M_TILE = 256 rows.  Cross-sequence pairs and
  # future tokens are removed by the precomputed additive block-diagonal mask.
  mask_add = mask_ref[...]                              # (HPG*M, M)
  o_heads = [None] * H
  for g in range(K):
    q_stack = jnp.concatenate(
        [q[:, (g * HPG + i) * HD:(g * HPG + i + 1) * HD] for i in range(HPG)],
        axis=0)                                          # (HPG*M, HD)
    k_g = k[:, g * HD:(g + 1) * HD]                      # (M, HD)
    v_g = v[:, g * HD:(g + 1) * HD]                      # (M, HD)
    # scores: contract dim 1 of both operands (no explicit k.T)
    s = jax.lax.dot_general(bf16(q_stack), bf16(k_g),
                            (((1,), (1,)), ((), ())),
                            preferred_element_type=f32)  # (HPG*M, M)
    s = s + mask_add
    m = jnp.max(s, axis=-1, keepdims=True)
    p = jnp.exp(s - m)
    # division -> EUP reciprocal (approx), off the VALU critical path
    p = p * pl.reciprocal(jnp.sum(p, axis=-1, keepdims=True), approx=True)
    o_g = jnp.dot(bf16(p), bf16(v_g), preferred_element_type=f32)  # (HPG*M, HD)
    for i in range(HPG):
      o_heads[g * HPG + i] = o_g[i * M:(i + 1) * M, :]

  # ---------------- single fused output projection + residual ---------------
  o_cat = jnp.concatenate(o_heads, axis=1)               # (M, QW) lane-dense
  h = x + jnp.dot(bf16(o_cat), wo_ref[...], preferred_element_type=f32)

  # ---------------- ffn_norm (RMSNorm) + SwiGLU FFN --------------------------
  hn = h * jax.lax.rsqrt(jnp.mean(h * h, axis=-1, keepdims=True) + NORM_EPS)
  hn = hn * g_ffn_ref[...]
  x13 = jnp.dot(bf16(hn), w13_ref[...], preferred_element_type=f32)
  x1 = x13[:, :HIDDEN]
  x3 = x13[:, HIDDEN:]
  # sigmoid via EUP reciprocal; clamp keeps exp(-x1) finite for very negative x1
  sig = pl.reciprocal(1.0 + jnp.exp(-jnp.maximum(x1, -60.0)), approx=True)
  ff = jnp.dot(bf16(x1 * sig * x3), w2_ref[...], preferred_element_type=f32)

  out_ref[...] = (h + ff).astype(out_ref.dtype)


# ----------------------- one-time wrapper-side preparation -------------------
def _rope_tables(T, b_tile):
  """Interleaved-pair RoPE tables tiled to full head width and over b_tile
  sequences, plus the block-diag pair-swap matrices used only for the fold."""
  inv_freq = ROPE_THETA ** (
      -np.arange(0, HEAD_DIM, 2, dtype=np.float32) / HEAD_DIM)
  ang = np.arange(T, dtype=np.float32)[:, None] * inv_freq[None, :]   # (T, HD/2)
  cos_hd = np.repeat(np.cos(ang), 2, axis=1).astype(np.float32)       # (T, HD)
  sin_hd = np.repeat(np.sin(ang), 2, axis=1).astype(np.float32)
  # pair-swap: (x @ r)[:, 2i] = -x[:, 2i+1]; (x @ r)[:, 2i+1] = x[:, 2i]
  r = np.zeros((HEAD_DIM, HEAD_DIM), np.float32)
  for i in range(HEAD_DIM // 2):
    r[2 * i + 1, 2 * i] = -1.0
    r[2 * i, 2 * i + 1] = 1.0
  cos_q = np.tile(cos_hd, (b_tile, N_HEADS))      # (M_TILE, QW)
  sin_q = np.tile(sin_hd, (b_tile, N_HEADS))
  cos_k = np.tile(cos_hd, (b_tile, N_KV_HEADS))   # (M_TILE, KW)
  sin_k = np.tile(sin_hd, (b_tile, N_KV_HEADS))
  rot_q = np.kron(np.eye(N_HEADS, dtype=np.float32), r)
  rot_k = np.kron(np.eye(N_KV_HEADS, dtype=np.float32), r)
  return cos_q, sin_q, cos_k, sin_k, rot_q, rot_k


def _mask_table(T, b_tile):
  """Additive block-diagonal causal mask for the packed (b_tile*T)-token slab,
  tiled over the HPG query heads stacked on the sublane axis."""
  M = b_tile * T
  tok = np.arange(M)
  seq, pos = tok // T, tok % T
  allowed = (seq[:, None] == seq[None, :]) & (pos[:, None] >= pos[None, :])
  base = np.where(allowed, 0.0, -1e30).astype(np.float32)
  return np.tile(base, (HEADS_PER_GROUP, 1))      # (HPG*M, M)


def prepare_inputs(wqkv_t, wo_t, w13_t, w2_t, *, T=SEQ_LEN, b_tile=B_TILE):
  """One-time (NOT jitted, not per-call) weight folding and constant tables:
     - 1/sqrt(head_dim) softmax scale folded into the Q columns of Wqkv,
     - RoPE pair-swap matmuls folded into extra Wqkv columns (Wq@rot, Wk@rot),
     - bf16 casts of all Linear weights (f32 MXU accumulation in-kernel),
     - full-width cos/sin tables and the additive block-diag causal mask."""
  cos_q, sin_q, cos_k, sin_k, rot_q, rot_k = _rope_tables(T, b_tile)
  scale = 1.0 / math.sqrt(HEAD_DIM)
  wqkv = np.asarray(wqkv_t, np.float32)
  wq = wqkv[:, :QW] * scale
  wk = wqkv[:, QW:QW + KW]
  wv = wqkv[:, QW + KW:]
  wqkv_fused = np.concatenate([wq, wq @ rot_q, wk, wk @ rot_k, wv], axis=1)
  assert wqkv_fused.shape == (DIM, QKV_W)
  return (jnp.asarray(_mask_table(T, b_tile)),
          jnp.asarray(wqkv_fused, jnp.bfloat16),
          jnp.asarray(wo_t).astype(jnp.bfloat16),
          jnp.asarray(w13_t).astype(jnp.bfloat16),
          jnp.asarray(w2_t).astype(jnp.bfloat16),
          jnp.asarray(cos_q), jnp.asarray(sin_q),
          jnp.asarray(cos_k), jnp.asarray(sin_k))


# ------------------------------ the jitted wrapper ---------------------------
@jax.jit
def transformer_block(x, g_attn, g_ffn, mask, wqkv_b, wo_b, w13_b, w2_b,
                      cos_q, sin_q, cos_k, sin_k):
  """x: (B, T, DIM) f32 — B independent causal sequences, prefill, empty cache."""
  B, T, _ = x.shape
  assert T == SEQ_LEN and (B * T) % M_TILE == 0
  xf = x.reshape(B * T, DIM)
  n_tiles = (B * T) // M_TILE

  def full(a):   # whole-array block, constant index_map -> resident across steps
    nd = a.ndim
    return pl.BlockSpec(a.shape, lambda i, _nd=nd: (0,) * _nd)

  out = pl.pallas_call(
      transformer_block_kernel,
      out_shape=jax.ShapeDtypeStruct((B * T, DIM), jnp.float32),
      grid=(n_tiles,),
      in_specs=[
          pl.BlockSpec((M_TILE, DIM), lambda i: (i, 0)),
          full(mask), full(g_attn), full(g_ffn),
          full(wqkv_b), full(wo_b), full(w13_b), full(w2_b),
          full(cos_q), full(sin_q), full(cos_k), full(sin_k),
      ],
      out_specs=pl.BlockSpec((M_TILE, DIM), lambda i: (i, 0)),
      compiler_params=pltpu.CompilerParams(
          dimension_semantics=("parallel",),
          vmem_limit_bytes=32 * 1024 * 1024),
  )(xf, mask, g_attn, g_ffn, wqkv_b, wo_b, w13_b, w2_b,
    cos_q, sin_q, cos_k, sin_k)
  return out.reshape(B, T, DIM)


# --------------------------- pure-JAX f32 reference ---------------------------
def transformer_block_ref(x, g_attn, g_ffn, wqkv_t, wo_t, w13_t, w2_t):
  H, K, HD, HPG = N_HEADS, N_KV_HEADS, HEAD_DIM, HEADS_PER_GROUP
  B, T, _ = x.shape
  inv_freq = ROPE_THETA ** (-jnp.arange(0, HD, 2, dtype=jnp.float32) / HD)
  ang = jnp.arange(T, dtype=jnp.float32)[:, None] * inv_freq[None, :]
  cos_p, sin_p = jnp.cos(ang), jnp.sin(ang)                 # (T, HD/2)

  def rope(xh):                                             # (T, HD) interleaved pairs
    xp = xh.reshape(T, HD // 2, 2)
    x0, x1 = xp[..., 0], xp[..., 1]
    return jnp.stack([x0 * cos_p - x1 * sin_p,
                      x1 * cos_p + x0 * sin_p], axis=-1).reshape(T, HD)

  causal = jnp.tril(jnp.ones((T, T), bool))
  scale = 1.0 / math.sqrt(HD)

  def one(xb):                                              # (T, DIM)
    xn = xb * jax.lax.rsqrt(jnp.mean(xb * xb, -1, keepdims=True) + NORM_EPS) * g_attn
    qkv = xn @ wqkv_t
    q, k, v = qkv[:, :H * HD], qkv[:, H * HD:(H + K) * HD], qkv[:, (H + K) * HD:]
    heads = []
    for hi in range(H):
      g = hi // HPG
      qh = rope(q[:, hi * HD:(hi + 1) * HD])
      kh = rope(k[:, g * HD:(g + 1) * HD])
      vh = v[:, g * HD:(g + 1) * HD]
      s = jnp.where(causal, (qh @ kh.T) * scale, -1e30)
      heads.append(jax.nn.softmax(s, axis=-1) @ vh)
    h = xb + jnp.concatenate(heads, axis=1) @ wo_t
    hn = h * jax.lax.rsqrt(jnp.mean(h * h, -1, keepdims=True) + NORM_EPS) * g_ffn
    x13 = hn @ w13_t
    x1, x3 = x13[:, :HIDDEN], x13[:, HIDDEN:]
    return h + (jax.nn.silu(x1) * x3) @ w2_t

  return jax.vmap(one)(x)


# --------------------------------- main ---------------------------------------
if __name__ == "__main__":
  key = jax.random.PRNGKey(0)
  k_x, k_qkv, k_o, k_13, k_2 = jax.random.split(key, 5)

  B, T = BATCH, SEQ_LEN
  x = jax.random.normal(k_x, (B, T, DIM), jnp.float32)

  # nn.Linear weights are (out, in) in torch; stored/fed transposed to (in, out).
  scale_w = 0.02
  wqkv_t = scale_w * jax.random.normal(
      k_qkv, (DIM, (N_HEADS + 2 * N_KV_HEADS) * HEAD_DIM), jnp.float32)
  wo_t = scale_w * jax.random.normal(k_o, (QW, DIM), jnp.float32)
  w13_t = scale_w * jax.random.normal(k_13, (DIM, 2 * HIDDEN), jnp.float32)
  w2_t = scale_w * jax.random.normal(k_2, (HIDDEN, DIM), jnp.float32)

  # RMSNorm weights initialize to ones in the PyTorch module.
  g_attn = jnp.ones((1, DIM), jnp.float32)
  g_ffn = jnp.ones((1, DIM), jnp.float32)

  # One-time weight folding / constant tables (kept out of the per-call path).
  (mask, wqkv_b, wo_b, w13_b, w2_b,
   cos_q, sin_q, cos_k, sin_k) = prepare_inputs(wqkv_t, wo_t, w13_t, w2_t)

  out = jax.block_until_ready(transformer_block(
      x, g_attn, g_ffn, mask, wqkv_b, wo_b, w13_b, w2_b,
      cos_q, sin_q, cos_k, sin_k))
  ref = transformer_block_ref(x, g_attn, g_ffn, wqkv_t, wo_t, w13_t, w2_t)

  # Tolerance loosened vs. pure f32: matmul operands run in bf16 on the MXU
  # (f32 accumulation) and softmax/silu denominators use the EUP's approximate
  # reciprocal — a deliberate precision/perf tradeoff.
  np.testing.assert_allclose(np.asarray(out), np.asarray(ref),
                             rtol=2e-2, atol=2e-2)

  print("KERNEL_OK")
</pallas_src>

<mosaic_0001>
module attributes {stable_mosaic.version = 11 : i64} {
  func.func @transformer_block_kernel(%arg0: i32, %arg1: memref<128x128xf32, #tpu.memory_space<vmem>>, %arg2: memref<256x128xf32, #tpu.memory_space<vmem>>, %arg3: memref<1x128xf32, #tpu.memory_space<vmem>>, %arg4: memref<1x128xf32, #tpu.memory_space<vmem>>, %arg5: memref<128x448xbf16, #tpu.memory_space<vmem>>, %arg6: memref<128x128xbf16, #tpu.memory_space<vmem>>, %arg7: memref<128x768xbf16, #tpu.memory_space<vmem>>, %arg8: memref<384x128xbf16, #tpu.memory_space<vmem>>, %arg9: memref<128x128xf32, #tpu.memory_space<vmem>>, %arg10: memref<128x128xf32, #tpu.memory_space<vmem>>, %arg11: memref<128x64xf32, #tpu.memory_space<vmem>>, %arg12: memref<128x64xf32, #tpu.memory_space<vmem>>, %arg13: memref<128x128xf32, #tpu.memory_space<vmem>>) attributes {dimension_semantics = [#tpu.dimension_semantics<parallel>], iteration_bounds = array<i64: 2>, scalar_prefetch = 0 : i64, scratch_operands = 0 : i64, tpu.core_type = #tpu.core_type<tc>, window_params = [{transform_indices = @transform_0, window_bounds = array<i64: 128, 128>}, {pipeline_mode = #tpu.pipeline_mode<synchronous>, transform_indices = @transform_1, window_bounds = array<i64: 256, 128>}, {pipeline_mode = #tpu.pipeline_mode<synchronous>, transform_indices = @transform_2, window_bounds = array<i64: 1, 128>}, {pipeline_mode = #tpu.pipeline_mode<synchronous>, transform_indices = @transform_3, window_bounds = array<i64: 1, 128>}, {pipeline_mode = #tpu.pipeline_mode<synchronous>, transform_indices = @transform_4, window_bounds = array<i64: 128, 448>}, {pipeline_mode = #tpu.pipeline_mode<synchronous>, transform_indices = @transform_5, window_bounds = array<i64: 128, 128>}, {pipeline_mode = #tpu.pipeline_mode<synchronous>, transform_indices = @transform_6, window_bounds = array<i64: 128, 768>}, {pipeline_mode = #tpu.pipeline_mode<synchronous>, transform_indices = @transform_7, window_bounds = array<i64: 384, 128>}, {pipeline_mode = #tpu.pipeline_mode<synchronous>, transform_indices = @transform_8, window_bounds = array<i64: 128, 128>}, {pipeline_mode = #tpu.pipeline_mode<synchronous>, transform_indices = @transform_9, window_bounds = array<i64: 128, 128>}, {pipeline_mode = #tpu.pipeline_mode<synchronous>, transform_indices = @transform_10, window_bounds = array<i64: 128, 64>}, {pipeline_mode = #tpu.pipeline_mode<synchronous>, transform_indices = @transform_11, window_bounds = array<i64: 128, 64>}, {transform_indices = @transform_12, window_bounds = array<i64: 128, 128>}]} {
    %c0 = arith.constant 0 : index
    %c0_0 = arith.constant 0 : index
    %0 = vector.load %arg1[%c0, %c0_0] : memref<128x128xf32, #tpu.memory_space<vmem>>, vector<128x128xf32>
    %1 = arith.mulf %0, %0 : vector<128x128xf32>
    %cst = arith.constant dense<0.000000e+00> : vector<128xf32>
    %2 = vector.multi_reduction <add>, %1, %cst [1] : vector<128x128xf32> to vector<128xf32>
    %3 = vector.shape_cast %2 : vector<128xf32> to vector<128x1xf32>
    %cst_1 = arith.constant 1.280000e+02 : f32
    %4 = vector.broadcast %cst_1 : f32 to vector<128x1xf32>
    %5 = arith.divf %3, %4 : vector<128x1xf32>
    %cst_2 = arith.constant 9.99999974E-6 : f32
    %6 = vector.broadcast %cst_2 : f32 to vector<128x1xf32>
    %7 = arith.addf %5, %6 : vector<128x1xf32>
    %8 = math.rsqrt %7 : vector<128x1xf32>
    %9 = vector.broadcast %8 : vector<128x1xf32> to vector<128x128xf32>
    %10 = arith.mulf %0, %9 : vector<128x128xf32>
    %c0_3 = arith.constant 0 : index
    %c0_4 = arith.constant 0 : index
    %11 = vector.load %arg3[%c0_3, %c0_4] : memref<1x128xf32, #tpu.memory_space<vmem>>, vector<1x128xf32>
    %12 = vector.broadcast %11 : vector<1x128xf32> to vector<128x128xf32>
    %13 = arith.mulf %10, %12 : vector<128x128xf32>
    %14 = arith.truncf %13 : vector<128x128xf32> to vector<128x128xbf16>
    %c0_5 = arith.constant 0 : index
    %c0_6 = arith.constant 0 : index
    %15 = vector.load %arg5[%c0_5, %c0_6] : memref<128x448xbf16, #tpu.memory_space<vmem>>, vector<128x448xbf16>
    %cst_7 = arith.constant dense<0.000000e+00> : vector<128x448xf32>
    %16 = tpu.matmul %14, %15, %cst_7 {dimension_numbers = #tpu.dot_dimension_numbers<[1], [0], [0], [1], [0, 0, 1, 1], [], []>} : vector<128x128xbf16>, vector<128x448xbf16>, vector<128x448xf32> -> vector<128x448xf32>
    %17 = vector.extract_strided_slice %16 {offsets = [0, 0], sizes = [128, 128], strides = [1, 1]} : vector<128x448xf32> to vector<128x128xf32>
    %18 = vector.extract_strided_slice %16 {offsets = [0, 128], sizes = [128, 128], strides = [1, 1]} : vector<128x448xf32> to vector<128x128xf32>
    %19 = vector.extract_strided_slice %16 {offsets = [0, 256], sizes = [128, 64], strides = [1, 1]} : vector<128x448xf32> to vector<128x64xf32>
    %20 = vector.extract_strided_slice %16 {offsets = [0, 320], sizes = [128, 64], strides = [1, 1]} : vector<128x448xf32> to vector<128x64xf32>
    %21 = vector.extract_strided_slice %16 {offsets = [0, 384], sizes = [128, 64], strides = [1, 1]} : vector<128x448xf32> to vector<128x64xf32>
    %c0_8 = arith.constant 0 : index
    %c0_9 = arith.constant 0 : index
    %22 = vector.load %arg9[%c0_8, %c0_9] : memref<128x128xf32, #tpu.memory_space<vmem>>, vector<128x128xf32>
    %23 = arith.mulf %17, %22 : vector<128x128xf32>
    %c0_10 = arith.constant 0 : index
    %c0_11 = arith.constant 0 : index
    %24 = vector.load %arg10[%c0_10, %c0_11] : memref<128x128xf32, #tpu.memory_space<vmem>>, vector<128x128xf32>
    %25 = arith.mulf %18, %24 : vector<128x128xf32>
    %26 = arith.addf %23, %25 : vector<128x128xf32>
    %c0_12 = arith.constant 0 : index
    %c0_13 = arith.constant 0 : index
    %27 = vector.load %arg11[%c0_12, %c0_13] : memref<128x64xf32, #tpu.memory_space<vmem>>, vector<128x64xf32>
    %28 = arith.mulf %19, %27 : vector<128x64xf32>
    %c0_14 = arith.constant 0 : index
    %c0_15 = arith.constant 0 : index
    %29 = vector.load %arg12[%c0_14, %c0_15] : memref<128x64xf32, #tpu.memory_space<vmem>>, vector<128x64xf32>
    %30 = arith.mulf %20, %29 : vector<128x64xf32>
    %31 = arith.addf %28, %30 : vector<128x64xf32>
    %c0_16 = arith.constant 0 : index
    %c0_17 = arith.constant 0 : index
    %32 = vector.load %arg2[%c0_16, %c0_17] : memref<256x128xf32, #tpu.memory_space<vmem>>, vector<256x128xf32>
    %33 = vector.extract_strided_slice %26 {offsets = [0, 0], sizes = [128, 32], strides = [1, 1]} : vector<128x128xf32> to vector<128x32xf32>
    %34 = vector.extract_strided_slice %26 {offsets = [0, 32], sizes = [128, 32], strides = [1, 1]} : vector<128x128xf32> to vector<128x32xf32>
    %35 = tpu.concatenate %33, %34 in 0 : vector<128x32xf32>, vector<128x32xf32> -> vector<256x32xf32>
    %36 = vector.extract_strided_slice %31 {offsets = [0, 0], sizes = [128, 32], strides = [1, 1]} : vector<128x64xf32> to vector<128x32xf32>
    %37 = vector.extract_strided_slice %21 {offsets = [0, 0], sizes = [128, 32], strides = [1, 1]} : vector<128x64xf32> to vector<128x32xf32>
    %38 = arith.truncf %35 : vector<256x32xf32> to vector<256x32xbf16>
    %39 = arith.truncf %36 : vector<128x32xf32> to vector<128x32xbf16>
    %cst_18 = arith.constant dense<0.000000e+00> : vector<256x128xf32>
    %40 = tpu.matmul %38, %39, %cst_18 {dimension_numbers = #tpu.dot_dimension_numbers<[1], [1], [0], [0], [0, 0, 1, 0], [], []>} : vector<256x32xbf16>, vector<128x32xbf16>, vector<256x128xf32> -> vector<256x128xf32>
    %41 = arith.addf %40, %32 : vector<256x128xf32>
    %cst_19 = arith.constant dense<0xFF800000> : vector<256xf32>
    %42 = vector.multi_reduction <maximumf>, %41, %cst_19 [1] : vector<256x128xf32> to vector<256xf32>
    %43 = vector.shape_cast %42 : vector<256xf32> to vector<256x1xf32>
    %44 = vector.broadcast %43 : vector<256x1xf32> to vector<256x128xf32>
    %45 = arith.subf %41, %44 : vector<256x128xf32>
    %46 = math.exp %45 : vector<256x128xf32>
    %cst_20 = arith.constant dense<0.000000e+00> : vector<256xf32>
    %47 = vector.multi_reduction <add>, %46, %cst_20 [1] : vector<256x128xf32> to vector<256xf32>
    %48 = vector.shape_cast %47 : vector<256xf32> to vector<256x1xf32>
    %49 = tpu.reciprocal %48 {approx = true} : vector<256x1xf32> -> vector<256x1xf32>
    %50 = vector.broadcast %49 : vector<256x1xf32> to vector<256x128xf32>
    %51 = arith.mulf %46, %50 : vector<256x128xf32>
    %52 = arith.truncf %51 : vector<256x128xf32> to vector<256x128xbf16>
    %53 = arith.truncf %37 : vector<128x32xf32> to vector<128x32xbf16>
    %cst_21 = arith.constant dense<0.000000e+00> : vector<256x32xf32>
    %54 = tpu.matmul %52, %53, %cst_21 {dimension_numbers = #tpu.dot_dimension_numbers<[1], [0], [0], [1], [0, 0, 1, 1], [], []>} : vector<256x128xbf16>, vector<128x32xbf16>, vector<256x32xf32> -> vector<256x32xf32>
    %55 = vector.extract_strided_slice %54 {offsets = [0, 0], sizes = [128, 32], strides = [1, 1]} : vector<256x32xf32> to vector<128x32xf32>
    %56 = vector.extract_strided_slice %54 {offsets = [128, 0], sizes = [128, 32], strides = [1, 1]} : vector<256x32xf32> to vector<128x32xf32>
    %57 = vector.extract_strided_slice %26 {offsets = [0, 64], sizes = [128, 32], strides = [1, 1]} : vector<128x128xf32> to vector<128x32xf32>
    %58 = vector.extract_strided_slice %26 {offsets = [0, 96], sizes = [128, 32], strides = [1, 1]} : vector<128x128xf32> to vector<128x32xf32>
    %59 = tpu.concatenate %57, %58 in 0 : vector<128x32xf32>, vector<128x32xf32> -> vector<256x32xf32>
    %60 = vector.extract_strided_slice %31 {offsets = [0, 32], sizes = [128, 32], strides = [1, 1]} : vector<128x64xf32> to vector<128x32xf32>
    %61 = vector.extract_strided_slice %21 {offsets = [0, 32], sizes = [128, 32], strides = [1, 1]} : vector<128x64xf32> to vector<128x32xf32>
    %62 = arith.truncf %59 : vector<256x32xf32> to vector<256x32xbf16>
    %63 = arith.truncf %60 : vector<128x32xf32> to vector<128x32xbf16>
    %cst_22 = arith.constant dense<0.000000e+00> : vector<256x128xf32>
    %64 = tpu.matmul %62, %63, %cst_22 {dimension_numbers = #tpu.dot_dimension_numbers<[1], [1], [0], [0], [0, 0, 1, 0], [], []>} : vector<256x32xbf16>, vector<128x32xbf16>, vector<256x128xf32> -> vector<256x128xf32>
    %65 = arith.addf %64, %32 : vector<256x128xf32>
    %cst_23 = arith.constant dense<0xFF800000> : vector<256xf32>
    %66 = vector.multi_reduction <maximumf>, %65, %cst_23 [1] : vector<256x128xf32> to vector<256xf32>
    %67 = vector.shape_cast %66 : vector<256xf32> to vector<256x1xf32>
    %68 = vector.broadcast %67 : vector<256x1xf32> to vector<256x128xf32>
    %69 = arith.subf %65, %68 : vector<256x128xf32>
    %70 = math.exp %69 : vector<256x128xf32>
    %cst_24 = arith.constant dense<0.000000e+00> : vector<256xf32>
    %71 = vector.multi_reduction <add>, %70, %cst_24 [1] : vector<256x128xf32> to vector<256xf32>
    %72 = vector.shape_cast %71 : vector<256xf32> to vector<256x1xf32>
    %73 = tpu.reciprocal %72 {approx = true} : vector<256x1xf32> -> vector<256x1xf32>
    %74 = vector.broadcast %73 : vector<256x1xf32> to vector<256x128xf32>
    %75 = arith.mulf %70, %74 : vector<256x128xf32>
    %76 = arith.truncf %75 : vector<256x128xf32> to vector<256x128xbf16>
    %77 = arith.truncf %61 : vector<128x32xf32> to vector<128x32xbf16>
    %cst_25 = arith.constant dense<0.000000e+00> : vector<256x32xf32>
    %78 = tpu.matmul %76, %77, %cst_25 {dimension_numbers = #tpu.dot_dimension_numbers<[1], [0], [0], [1], [0, 0, 1, 1], [], []>} : vector<256x128xbf16>, vector<128x32xbf16>, vector<256x32xf32> -> vector<256x32xf32>
    %79 = vector.extract_strided_slice %78 {offsets = [0, 0], sizes = [128, 32], strides = [1, 1]} : vector<256x32xf32> to vector<128x32xf32>
    %80 = vector.extract_strided_slice %78 {offsets = [128, 0], sizes = [128, 32], strides = [1, 1]} : vector<256x32xf32> to vector<128x32xf32>
    %81 = tpu.concatenate %55, %56, %79, %80 in 1 : vector<128x32xf32>, vector<128x32xf32>, vector<128x32xf32>, vector<128x32xf32> -> vector<128x128xf32>
    %82 = arith.truncf %81 : vector<128x128xf32> to vector<128x128xbf16>
    %c0_26 = arith.constant 0 : index
    %c0_27 = arith.constant 0 : index
    %83 = vector.load %arg6[%c0_26, %c0_27] : memref<128x128xbf16, #tpu.memory_space<vmem>>, vector<128x128xbf16>
    %cst_28 = arith.constant dense<0.000000e+00> : vector<128x128xf32>
    %84 = tpu.matmul %82, %83, %cst_28 {dimension_numbers = #tpu.dot_dimension_numbers<[1], [0], [0], [1], [0, 0, 1, 1], [], []>} : vector<128x128xbf16>, vector<128x128xbf16>, vector<128x128xf32> -> vector<128x128xf32>
    %85 = arith.addf %0, %84 : vector<128x128xf32>
    %86 = arith.mulf %85, %85 : vector<128x128xf32>
    %cst_29 = arith.constant dense<0.000000e+00> : vector<128xf32>
    %87 = vector.multi_reduction <add>, %86, %cst_29 [1] : vector<128x128xf32> to vector<128xf32>
    %88 = vector.shape_cast %87 : vector<128xf32> to vector<128x1xf32>
    %cst_30 = arith.constant 1.280000e+02 : f32
    %89 = vector.broadcast %cst_30 : f32 to vector<128x1xf32>
    %90 = arith.divf %88, %89 : vector<128x1xf32>
    %cst_31 = arith.constant 9.99999974E-6 : f32
    %91 = vector.broadcast %cst_31 : f32 to vector<128x1xf32>
    %92 = arith.addf %90, %91 : vector<128x1xf32>
    %93 = math.rsqrt %92 : vector<128x1xf32>
    %94 = vector.broadcast %93 : vector<128x1xf32> to vector<128x128xf32>
    %95 = arith.mulf %85, %94 : vector<128x128xf32>
    %c0_32 = arith.constant 0 : index
    %c0_33 = arith.constant 0 : index
    %96 = vector.load %arg4[%c0_32, %c0_33] : memref<1x128xf32, #tpu.memory_space<vmem>>, vector<1x128xf32>
    %97 = vector.broadcast %96 : vector<1x128xf32> to vector<128x128xf32>
    %98 = arith.mulf %95, %97 : vector<128x128xf32>
    %99 = arith.truncf %98 : vector<128x128xf32> to vector<128x128xbf16>
    %c0_34 = arith.constant 0 : index
    %c0_35 = arith.constant 0 : index
    %100 = vector.load %arg7[%c0_34, %c0_35] : memref<128x768xbf16, #tpu.memory_space<vmem>>, vector<128x768xbf16>
    %cst_36 = arith.constant dense<0.000000e+00> : vector<128x768xf32>
    %101 = tpu.matmul %99, %100, %cst_36 {dimension_numbers = #tpu.dot_dimension_numbers<[1], [0], [0], [1], [0, 0, 1, 1], [], []>} : vector<128x128xbf16>, vector<128x768xbf16>, vector<128x768xf32> -> vector<128x768xf32>
    %102 = vector.extract_strided_slice %101 {offsets = [0, 0], sizes = [128, 384], strides = [1, 1]} : vector<128x768xf32> to vector<128x384xf32>
    %103 = vector.extract_strided_slice %101 {offsets = [0, 384], sizes = [128, 384], strides = [1, 1]} : vector<128x768xf32> to vector<128x384xf32>
    %cst_37 = arith.constant -6.000000e+01 : f32
    %104 = vector.broadcast %cst_37 : f32 to vector<128x384xf32>
    %105 = arith.maximumf %102, %104 : vector<128x384xf32>
    %cst_38 = arith.constant 0.000000e+00 : f32
    %106 = vector.broadcast %cst_38 : f32 to vector<128x384xf32>
    %107 = arith.subf %106, %105 : vector<128x384xf32>
    %108 = math.exp %107 : vector<128x384xf32>
    %cst_39 = arith.constant 1.000000e+00 : f32
    %109 = vector.broadcast %cst_39 : f32 to vector<128x384xf32>
    %110 = arith.addf %109, %108 : vector<128x384xf32>
    %111 = tpu.reciprocal %110 {approx = true} : vector<128x384xf32> -> vector<128x384xf32>
    %112 = arith.mulf %102, %111 : vector<128x384xf32>
    %113 = arith.mulf %112, %103 : vector<128x384xf32>
    %114 = arith.truncf %113 : vector<128x384xf32> to vector<128x384xbf16>
    %c0_40 = arith.constant 0 : index
    %c0_41 = arith.constant 0 : index
    %115 = vector.load %arg8[%c0_40, %c0_41] : memref<384x128xbf16, #tpu.memory_space<vmem>>, vector<384x128xbf16>
    %cst_42 = arith.constant dense<0.000000e+00> : vector<128x128xf32>
    %116 = tpu.matmul %114, %115, %cst_42 {dimension_numbers = #tpu.dot_dimension_numbers<[1], [0], [0], [1], [0, 0, 1, 1], [], []>} : vector<128x384xbf16>, vector<384x128xbf16>, vector<128x128xf32> -> vector<128x128xf32>
    %117 = arith.addf %85, %116 : vector<128x128xf32>
    %c0_43 = arith.constant 0 : index
    %c0_44 = arith.constant 0 : index
    %118 = vector.load %arg13[%c0_43, %c0_44] : memref<128x128xf32, #tpu.memory_space<vmem>>, vector<128x128xf32>
    tpu.vector_store %arg13[%c0_43, %c0_44], %117 {strides = array<i32>} : memref<128x128xf32, #tpu.memory_space<vmem>>, vector<128x128xf32>,
    return
  }
  func.func @transform_0(%arg0: i32) -> (i32, i32) {
    %c0_i32 = arith.constant 0 : i32
    %c0_i32_0 = arith.constant 0 : i32
    return %arg0, %c0_i32 : i32, i32
  }
  func.func @transform_1(%arg0: i32) -> (i32, i32) {
    %c0_i32 = arith.constant 0 : i32
    %c0_i32_0 = arith.constant 0 : i32
    %c0_i32_1 = arith.constant 0 : i32
    return %c0_i32, %c0_i32_0 : i32, i32
  }
  func.func @transform_2(%arg0: i32) -> (i32, i32) {
    %c0_i32 = arith.constant 0 : i32
    %c0_i32_0 = arith.constant 0 : i32
    %c0_i32_1 = arith.constant 0 : i32
    return %c0_i32, %c0_i32_0 : i32, i32
  }
  func.func @transform_3(%arg0: i32) -> (i32, i32) {
    %c0_i32 = arith.constant 0 : i32
    %c0_i32_0 = arith.constant 0 : i32
    %c0_i32_1 = arith.constant 0 : i32
    return %c0_i32, %c0_i32_0 : i32, i32
  }
  func.func @transform_4(%arg0: i32) -> (i32, i32) {
    %c0_i32 = arith.constant 0 : i32
    %c0_i32_0 = arith.constant 0 : i32
    %c0_i32_1 = arith.constant 0 : i32
    return %c0_i32, %c0_i32_0 : i32, i32
  }
  func.func @transform_5(%arg0: i32) -> (i32, i32) {
    %c0_i32 = arith.constant 0 : i32
    %c0_i32_0 = arith.constant 0 : i32
    %c0_i32_1 = arith.constant 0 : i32
    return %c0_i32, %c0_i32_0 : i32, i32
  }
  func.func @transform_6(%arg0: i32) -> (i32, i32) {
    %c0_i32 = arith.constant 0 : i32
    %c0_i32_0 = arith.constant 0 : i32
    %c0_i32_1 = arith.constant 0 : i32
    return %c0_i32, %c0_i32_0 : i32, i32
  }
  func.func @transform_7(%arg0: i32) -> (i32, i32) {
    %c0_i32 = arith.constant 0 : i32
    %c0_i32_0 = arith.constant 0 : i32
    %c0_i32_1 = arith.constant 0 : i32
    return %c0_i32, %c0_i32_0 : i32, i32
  }
  func.func @transform_8(%arg0: i32) -> (i32, i32) {
    %c0_i32 = arith.constant 0 : i32
    %c0_i32_0 = arith.constant 0 : i32
    %c0_i32_1 = arith.constant 0 : i32
    return %c0_i32, %c0_i32_0 : i32, i32
  }
  func.func @transform_9(%arg0: i32) -> (i32, i32) {
    %c0_i32 = arith.constant 0 : i32
    %c0_i32_0 = arith.constant 0 : i32
    %c0_i32_1 = arith.constant 0 : i32
    return %c0_i32, %c0_i32_0 : i32, i32
  }
  func.func @transform_10(%arg0: i32) -> (i32, i32) {
    %c0_i32 = arith.constant 0 : i32
    %c0_i32_0 = arith.constant 0 : i32
    %c0_i32_1 = arith.constant 0 : i32
    return %c0_i32, %c0_i32_0 : i32, i32
  }
  func.func @transform_11(%arg0: i32) -> (i32, i32) {
    %c0_i32 = arith.constant 0 : i32
    %c0_i32_0 = arith.constant 0 : i32
    %c0_i32_1 = arith.constant 0 : i32
    return %c0_i32, %c0_i32_0 : i32, i32
  }
  func.func @transform_12(%arg0: i32) -> (i32, i32) {
    %c0_i32 = arith.constant 0 : i32
    %c0_i32_0 = arith.constant 0 : i32
    return %arg0, %c0_i32 : i32, i32
  }
}

</mosaic_0001>

<bundles_post_ra>
// kernel: transformer_block.1
= control target key start
LH: loop header
LB: loop body
LE: loop exit
PB: predicated region body
PF: predicated region fallthrough
CT: control target
= control target key end

     0   :  { %s9654_s0 = inlined_call_operand.hbm [shape: f32[256,128], index: 0, kind: input, shape index: {}]   ;;  %s9655_s1 = inlined_call_operand.hbm [shape: f32[256,128], index: 1, kind: input, shape index: {}]   ;;  %s9656_s2 = inlined_call_operand.vmem [shape: f32[1,128], index: 2, kind: input, shape index: {}]   ;;  %s9657_s3 = inlined_call_operand.vmem [shape: f32[1,128], index: 3, kind: input, shape index: {}]   ;;  %s9658_s4 = inlined_call_operand.vmem [shape: bf16[128,448], index: 4, kind: input, shape index: {}]   ;;  %s9659_s5 = inlined_call_operand.hbm [shape: bf16[128,128], index: 5, kind: input, shape index: {}]   ;;  %s9660_s6 = inlined_call_operand.vmem [shape: bf16[128,768], index: 6, kind: input, shape index: {}]   ;;  %s9661_s7 = inlined_call_operand.vmem [shape: bf16[384,128], index: 7, kind: input, shape index: {}]   ;;  %s9662_s8 = inlined_call_operand.hbm [shape: f32[128,128], index: 8, kind: input, shape index: {}]   ;;  %s9663_s9 = inlined_call_operand.hbm [shape: f32[128,128], index: 9, kind: input, shape index: {}]   ;;  %s9664_s10 = inlined_call_operand.vmem [shape: f32[128,64], index: 10, kind: input, shape index: {}]   ;;  %s9665_s11 = inlined_call_operand.vmem [shape: f32[128,64], index: 11, kind: input, shape index: {}]   ;;  %s9666_s12 = inlined_call_operand.hbm [shape: f32[256,128], index: 12, kind: output, shape index: {}]  }
   0x1   :  { %9674 = sst [smem:[#allocation21_spill]] %s9655_s1 }
   0x2   :  { %9675 = sst [smem:[#allocation22_spill]] %s9659_s5 }
   0x3   :  { %9676 = sst [smem:[#allocation23_spill]] %s9662_s8 }
   0x4   :  { %9677 = sst [smem:[#allocation24_spill]] %s9663_s9 }
   0x5   :  { %17 = vsyncpa [#allocation3], 0 }
   0x6   :  { %19 = vsyncpa [#allocation3 + $0x1], 0 }
   0x7   :  { %20 = vsyncpa [#allocation6], 0 }
   0x8   :  { %21 = vsyncpa [#allocation9], 0 }
   0x9   :  { %22 = vsyncpa [#allocation4], 0 }
   0xa   :  { %24 = vsyncpa [#allocation4 + $0x1], 0  ;;  %s6703_s21 = smov 0   ;;  %s6705_s22 = smov 0  }
   0xb   :  { %s6707_s23 = smov 0   ;;  %s6709_s24 = smov 0  }
   0xc LB: > { %9678 = sst [smem:[#allocation16_spill]] %s6610_s21  ;;  %s6724_s25 = sadd.s32 4294967295, %s6622_s24   ;;  %s6622_s24 = sphi %s6709_s24, %s9733_s24   ;;  %s6618_s23 = sphi %s6707_s23, %s9732_s23   ;;  %s6614_s22 = sphi %s6705_s22, %s9731_s22   ;;  %s6610_s21 = sphi %s6703_s21, %s9730_s21  }
   0xd   : > { %s4977_s26 = sadd.s32 4294967294, %s6622_s24   ;;  %p50_p0 = scmp.ne.s32.totalorder %s6614_s22, %s6610_s21 }
   0xe   : > { %p51_p1 = scmp.eq.s32.totalorder %s6724_s25, 0  ;;  %p305_p2 = scmp.eq.s32.totalorder %s6724_s25, 1 }
   0xf   : > { %p311_p3 = scmp.eq.s32.totalorder %s4977_s26, 1  ;;  %p4978_p5 = scmp.ge.s32.totalorder %s6622_s24, 1 }
  0x10   : > { %p6733_p4 = por %p51_p1, %p50_p0  ;;  %p318_p7 = scmp.lt.s32.totalorder %s6622_s24, 3 }
  0x11   : > { %p6738_p6 = por %p311_p3, %p50_p0  ;;  %s9682_s1 = sld [smem:[#allocation21_spill]] }
  0x12   : > { %p6746_p8 = pnand %p4978_p5, %p318_p7  ;;  %s6624_s15 = smov [#allocation5]  }
  0x13   : > { %s9680_s28 = scalar_select %p6738_p6, 1, 0 }
  0x14   : > { %p5629_p9 = pneg %p6746_p8  ;;  %s331_s16 = sshll.u32 %s6624_s15, 4  ;;  %s332_s16 = int_to_ptr.vmem [resolvable:$true] %s331_s16 }
  0x15   : > { %9681 = sst [smem:[#allocation17_spill]] %s9680_s28  ;;  %s9669_s26 = smov 128  }
  0x16   : > { %p6754_p10 = pnand %p5629_p9, %p51_p1  ;;  %s9685_s8 = sld [smem:[#allocation23_spill]] }
  0x17   : > { %s329_s13 = sshll.u32 %s9682_s1, 4  ;;  %s9670_s29 = smov 8   ;;  %s330_s13 = int_to_ptr.hbm [resolvable:$true] %s329_s13 }
  0x18   : > { %5632 = dma.hbm_to_vmem [thread:$0]  (!%p6754_p10), %s330_s13, 4096, %s332_s16, [#allocation6], %s9669_s26, %s9669_s26, %s9670_s29  }
  0x19   : > { %s6627_s30 = smov [#allocation8]   ;;  %s9686_s5 = sld [smem:[#allocation22_spill]] }
  0x1a   : > { %s374_s15 = sshll.u32 %s6627_s30, 4  ;;  %s6628_s13 = smov [#allocation7]   ;;  %s375_s15 = int_to_ptr.vmem [resolvable:$true] %s374_s15 }
  0x1b   : > { %s354_s16 = sshll.u32 %s6628_s13, 4  ;;  %s9687_s9 = sld [smem:[#allocation24_spill]]  ;;  %s355_s16 = int_to_ptr.vmem [resolvable:$true] %s354_s16 }
  0x1c   : > { %s372_s20 = sshll.u32 %s9685_s8, 4  ;;  %s6629_s19 = smov 64   ;;  %s373_s20 = int_to_ptr.hbm [resolvable:$true] %s372_s20 }
  0x1d   : > { %5638 = dma.hbm_to_vmem [thread:$0]  (!%p6754_p10), %s373_s20, 2048, %s375_s15, [#allocation9], %s9669_s26, %s9669_s26, %s9670_s29  }
  0x1e   : > { %s6630_s30 = smov 4   ;;  %s6631_s20 = smov [#allocation10]  }
  0x1f   : > { %s352_s21 = sshll.u32 %s9686_s5, 4  ;;  %s388_s15 = sshll.u32 %s6631_s20, 4  ;;  %s353_s21 = int_to_ptr.hbm [resolvable:$true] %s352_s21  ;;  %s389_s15 = int_to_ptr.vmem [resolvable:$true] %s388_s15 }
  0x20   : > { %5635 = dma.hbm_to_vmem [thread:$0]  (!%p6754_p10), %s353_s21, 1024, %s355_s16, [#allocation6], %s6629_s19, %s6629_s19, %s6630_s30  }
  0x21   : > { %s386_s28 = sshll.u32 %s9687_s9, 4  ;;  %s6786_s13 = sadd.s32 1, %s6622_s24   ;;  %s387_s28 = int_to_ptr.hbm [resolvable:$true] %s386_s28 }
  0x22   : > { %5641 = dma.hbm_to_vmem [thread:$0]  (!%p6754_p10), %s387_s28, 2048, %s389_s15, [#allocation9], %s9669_s26, %s9669_s26, %s9670_s29  }
  0x23   : > { %s37_s18 = sadd.s32 1, %s6618_s23  ;;  %s34_s1 = ssub.s32 %s6622_s24, %s6786_s13 }
  0x24   : > { %p44_p12 = scmp.ne.s32.totalorder %s6618_s23, %s6614_s22  ;;  %p35_p13 = scmp.eq.s32.totalorder %s34_s1, 0 }
  0x25   : > { %p45_p0 = scmp.eq.s32.totalorder %s6622_s24, 0  ;;  %p5654_p5 = scmp.lt.s32.totalorder %s6622_s24, 2 }
  0x26   : > { %p6796_p3 = por %p305_p2, %p44_p12  ;;  %s408_s17 = sand.u32 1, %s6618_s23  }
  0x27   : > { %s6802_s16 = scalar_select %p35_p13, %s6618_s23, %s37_s18  }
  0x28   : > { %p46_p7 = por %p45_p0, %p44_p12  ;;  %s4984_s19 = sshll.u32 %s408_s17, 7 }
  0x29   : > { %s5479_s28 = sshll.u32 %s6622_s24, 7  ;;  %s412_s26 = scalar_lea.vmem [#allocation2], %s4984_s19 }
  0x2a   : > { %s417_s15 = scalar_lea.hbm %s9654_s0, %s5479_s28  ;;  %s420_s29 = sshll.u32 %s412_s26, 4  ;;  %s421_s29 = int_to_ptr.vmem [resolvable:$true] %s420_s29 }
  0x2b   : > { %s418_s1 = sshll.u32 %s417_s15, 4  ;;  %p6809_p2 = pnand %p5654_p5, %p46_p7  ;;  %s419_s1 = int_to_ptr.hbm [resolvable:$true] %s418_s1 }
  0x2c   : > { %s409_s18 = scalar_lea.sflag [#allocation3], %s408_s17  ;;  %s6518_s8 = sshra.s32 %s419_s1, 4  ;;  %s6519_s8 = int_to_ptr.hbm [resolvable:$true] %s6518_s8 }
  0x2d   : > { %s6520_s9 = scalar_lea.hbm %s6519_s8, 128  ;;  %p6522_p10 = pneg %p6809_p2 }
  0x2e   : > { %p6521_p9 = scmp.ne.s32.totalorder %s6519_s8, %s6520_s9  ;;  %s6525_s26 = scalar_lea.hbm %s9654_s0, 256 }
  0x2f   : > { %p6526_p0 = scmp.lt.s32.totalorder %s6519_s8, %s9654_s0  ;;  %p6527_p5 = scmp.lt.s32.totalorder %s6525_s26, %s6520_s9 }
  0x30   : > { %p6523_p12 = pnand %p6522_p10, %p6521_p9 }
  0x31   : > { %p6528_p7 = por %p6527_p5, %p6526_p0 }
  0x32   : > { %p6524_p13 = pneg %p6523_p12 }
  0x34   : > { %p6529_p11 = pnand %p6528_p7, %p6524_p13 }
  0x36   : > { %6532 = shalt.err (!%p6529_p11)
}
  0x37   : > { %s9690_s17 = smov 8   ;;  %s9691_s15 = smov 128  }
  0x38   : > { %5645 = dma.hbm_to_vmem [thread:$0]  (!%p6809_p2), %s419_s1, 2048, %s421_s29, %s409_s18, %s9691_s15, %s9691_s15, %s9690_s17  }
  0x39   : > { %432 = sbr.rel (%p6746_p8) target bundleno = 2802 (0xaf2), region = 68 }
  0x3e   : > { %s6829_s28 = sand.u32 1, %s6614_s22  }
  0x3f   : > { %s4988_s8 = sshll.u32 %s6829_s28, 7  ;;  %s435_s9 = scalar_lea.sflag [#allocation3], %s6829_s28 }
  0x40   : > { %s6835_s19 = scalar_lea.vmem [#allocation2], %s4988_s8 }
  0x41   : > { %6593 = dma.done.wait (%p6733_p4), %s435_s9, 2048  }
  0x42   : > { %6595 = vsyncadd (%p6733_p4), %s435_s9, 4294965248 }
  0x43   : > { %6597 = dma.done.wait (%p51_p1), [#allocation6], 5120  }
  0x44   : > { %6599 = vsyncadd (%p51_p1), [#allocation6], 4294962176 }
  0x45   : > { %6601 = dma.done.wait (%p51_p1), [#allocation9], 4096  }
  0x46   : > { %6603 = vsyncadd (%p51_p1), [#allocation9], 4294963200  ;;  %v6850_v0 = vld [vmem:[%s6835_s19 + $0x50] sm:$0xff]  ;;  %v6853_v1 = vld [vmem:[%s6835_s19 + $0x40] sm:$0xff]  ;;  %v6632_v35 = vmov 128.0   ;;  %s6633_s5 = smov 64  }
  0x47   : > { %v528_v2 = vmul.f32 %v6850_v0, %v6850_v0  ;;  %v526_v3 = vmul.f32 %v6853_v1, %v6853_v1  ;;  %v6860_v4 = vld [vmem:[%s6835_s19 + $0x60] sm:$0xff]  ;;  %v6865_v6 = vld [vmem:[%s6835_s19 + $0x58] sm:$0xff]  ;;  %v6868_v7 = vld [vmem:[%s6835_s19 + $0x48] sm:$0xff]  ;;  %5868 = vrcp.f32 %v6632_v35  ;;  %s6634_s26 = smov 96   ;;  %s6635_s9 = smov 32  }
  0x48   : > { %v530_v5 = vmul.f32 %v6860_v4, %v6860_v4  ;;  %v6871_v8 = vld [vmem:[%s6835_s19 + $0x68] sm:$0xff]  ;;  %v529_v9 = vmul.f32 %v6865_v6, %v6865_v6  ;;  %v527_v10 = vmul.f32 %v6868_v7, %v6868_v7  ;;  %v6880_v12 = vld [vmem:[%s6835_s19 + $0x78] sm:$0xff]  ;;  %v6883_v13 = vld [vmem:[%s6835_s19 + $0x70] sm:$0xff]  ;;  %s9587_s18 = scalar_lea.vmem [#allocation11], %s4988_s8  ;;  %s5592_s8 = sshll.u32 %s6724_s25, 7 }
  0x49   : > { %554 = vadd.xlane.f32.xlu1 %v528_v2  ;;  %550 = vadd.xlane.f32.xlu0 %v526_v3  ;;  %v531_v11 = vmul.f32 %v6871_v8, %v6871_v8  ;;  %v6886_v14 = vld [vmem:[%s6835_s19] sm:$0xff]  ;;  %v533_v15 = vmul.f32 %v6880_v12, %v6880_v12  ;;  %v532_v16 = vmul.f32 %v6883_v13, %v6883_v13  ;;  %v6895_v18 = vld [vmem:[%s6835_s19 + $0x8] sm:$0xff]  ;;  %v6898_v19 = vld [vmem:[%s6835_s19 + $0x10] sm:$0xff]  ;;  %s4863_s17 = sshll.u32 %s9587_s18, 4  ;;  %s4851_s25 = scalar_lea.sflag [#allocation4], %s6829_s28  ;;  %s4864_s17 = int_to_ptr.vmem [resolvable:$true] %s4863_s17 }
  0x4a   : > { %558 = vadd.xlane.f32.xlu2 %v530_v5  ;;  %v518_v17 = vmul.f32 %v6886_v14, %v6886_v14  ;;  %v6901_v20 = vld [vmem:[%s6835_s19 + $0x18] sm:$0xff]  ;;  %v519_v21 = vmul.f32 %v6895_v18, %v6895_v18  ;;  %v520_v22 = vmul.f32 %v6898_v19, %v6898_v19  ;;  %v6910_v24 = vld [vmem:[%s6835_s19 + $0x28] sm:$0xff]  ;;  %v6913_v25 = vld [vmem:[%s6835_s19 + $0x20] sm:$0xff]  ;;  %s6568_s14 = scalar_lea.hbm %s9666_s12, 256 }
  0x4b   : > { %v521_v23 = vmul.f32 %v6901_v20, %v6901_v20  ;;  %v6916_v26 = vld [vmem:[%s6835_s19 + $0x30] sm:$0xff]  ;;  %v523_v27 = vmul.f32 %v6910_v24, %v6910_v24  ;;  %v522_v28 = vmul.f32 %v6913_v25, %v6913_v25  ;;  %v6925_v30 = vld [vmem:[%s6835_s19 + $0x38] sm:$0xff]  ;;  %v5108_v32 = vld [vmem:[%s9658_s4 + $0xe0] sm:$0xf] }
  0x4c   : > { %v524_v29 = vmul.f32 %v6916_v26, %v6916_v26  ;;  %v525_v31 = vmul.f32 %v6925_v30, %v6925_v30  ;;  %v5510_v33 = vld [vmem:[%s9658_s4 + $0xec] sm:$0xf0]  ;;  %v5508_v34 = vld [vmem:[%s9658_s4 + $0xe4] sm:$0xf]  ;;  %v5110_v37 = vld [vmem:[%s9658_s4 + $0xf0] sm:$0xf0] }
  0x4d   : > { %v5109_v36 = vor.u32 %v5510_v33, %v5108_v32  ;;  %v5113_v38 = vor.u32 %v5508_v34, %v5110_v37  ;;  %v5092_v39 = vld [vmem:[%s9658_s4 + $0xc0] sm:$0xf]  ;;  %v5506_v40 = vld [vmem:[%s9658_s4 + $0xcc] sm:$0xf0]  ;;  %v5504_v41 = vld [vmem:[%s9658_s4 + $0xc4] sm:$0xf]  ;;  %v5869_v45 = vpop.eup %5868 }
  0x4e   : > { %v5093_v42 = vor.u32 %v5506_v40, %v5092_v39  ;;  %v5094_v43 = vld [vmem:[%s9658_s4 + $0xd0] sm:$0xf0]  ;;  %v5076_v46 = vld [vmem:[%s9658_s4 + $0xa0] sm:$0xf]  ;;  %v5502_v47 = vld [vmem:[%s9658_s4 + $0xac] sm:$0xf0]  ;;  %vm571_vm0 = vweird.f32 %v5869_v45 }
  0x4f   : > { %5593 = vmatpush.bf16.msra.mxu2 %v5109_v36  ;;  %1001 = vmatpush.bf16.msra.mxu0 %v5109_v36  ;;  %v5097_v44 = vor.u32 %v5504_v41, %v5094_v43  ;;  %v5500_v48 = vld [vmem:[%s9658_s4 + $0xa4] sm:$0xf]  ;;  %v5077_v49 = vor.u32 %v5502_v47, %v5076_v46  ;;  %v5078_v50 = vld [vmem:[%s9658_s4 + $0xb0] sm:$0xf0]  ;;  %v567_v51 = vmul.f32 128.0, %v5869_v45 }
  0x50   : > { %5601 = vmatpush.bf16.msra.mxu3 %v5113_v38  ;;  %1050 = vmatpush.bf16.msra.mxu1 %v5113_v38  ;;  %v5081_v52 = vor.u32 %v5500_v48, %v5078_v50  ;;  %v5060_v53 = vld [vmem:[%s9658_s4 + $0x80] sm:$0xf]  ;;  %v5498_v54 = vld [vmem:[%s9658_s4 + $0x8c] sm:$0xf0]  ;;  %v5496_v55 = vld [vmem:[%s9658_s4 + $0x84] sm:$0xf] }
  0x51   : > { %556 = vadd.xlane.f32.xlu1 %v529_v9  ;;  %552 = vadd.xlane.f32.xlu0 %v527_v10  ;;  %v5061_v56 = vor.u32 %v5498_v54, %v5060_v53  ;;  %v5062_v57 = vld [vmem:[%s9658_s4 + $0x90] sm:$0xf0]  ;;  %v568_v58 = vsub.f32 1.0, %v567_v51  ;;  %v5044_v60 = vld [vmem:[%s9658_s4 + $0x60] sm:$0xf] }
  0x52   : > { %560 = vadd.xlane.f32.xlu2 %v531_v11  ;;  %v5065_v59 = vor.u32 %v5496_v55, %v5062_v57  ;;  %v5494_v61 = vld [vmem:[%s9658_s4 + $0x6c] sm:$0xf0]  ;;  %v5492_v62 = vld [vmem:[%s9658_s4 + $0x64] sm:$0xf]  ;;  %v5046_v2 = vld [vmem:[%s9658_s4 + $0x70] sm:$0xf0] }
  0x53   : > { %5594 = vmatpush.bf16.msra.mxu2 %v5093_v42  ;;  %1002 = vmatpush.bf16.msra.mxu0 %v5093_v42  ;;  %v5045_v63 = vor.u32 %v5494_v61, %v5044_v60  ;;  %v569_v3 = vmul.f32 %v5869_v45, %v568_v58  ;;  %v5049_v5 = vor.u32 %v5492_v62, %v5046_v2  ;;  %v5028_v9 = vld [vmem:[%s9658_s4 + $0x40] sm:$0xf]  ;;  %v5490_v10 = vld [vmem:[%s9658_s4 + $0x4c] sm:$0xf0]  ;;  %v5488_v11 = vld [vmem:[%s9658_s4 + $0x44] sm:$0xf] }
  0x54   : > { %5602 = vmatpush.bf16.msra.mxu3 %v5097_v44  ;;  %1051 = vmatpush.bf16.msra.mxu1 %v5097_v44  ;;  %v4996_v35 = vld [vmem:[%s9658_s4] sm:$0xf]  ;;  %v5482_v36 = vld [vmem:[%s9658_s4 + $0xc] sm:$0xf0]  ;;  %v5480_v37 = vld [vmem:[%s9658_s4 + $0x4] sm:$0xf] }
  0x55   : > { %v4997_v41 = vor.u32 %v5482_v36, %v4996_v35  ;;  %v4998_v42 = vld [vmem:[%s9658_s4 + $0x10] sm:$0xf0]  ;;  %v5116_v47 = vld [vmem:[%s9658_s4 + $0xe8] sm:$0xf]  ;;  %v5511_v48 = vld [vmem:[%s9658_s4 + $0xf4] sm:$0xf0] }
  0x56   : > { %v5001_v43 = vor.u32 %v5480_v37, %v4998_v42  ;;  %v5100_v61 = vld [vmem:[%s9658_s4 + $0xc8] sm:$0xf]  ;;  %v5507_v62 = vld [vmem:[%s9658_s4 + $0xd4] sm:$0xf0] }
  0x57   : > { %5595 = vmatpush.bf16.msra.mxu2 %v5077_v49  ;;  %1003 = vmatpush.bf16.msra.mxu0 %v5077_v49  ;;  %v5117_v49 = vor.u32 %v5511_v48, %v5116_v47  ;;  %v5084_v42 = vld [vmem:[%s9658_s4 + $0xa8] sm:$0xf] }
  0x58   : > { %5603 = vmatpush.bf16.msra.mxu3 %v5081_v52  ;;  %1052 = vmatpush.bf16.msra.mxu1 %v5081_v52 }
  0x59   : > { %564 = vadd.xlane.f32.xlu1 %v533_v15  ;;  %562 = vadd.xlane.f32.xlu0 %v532_v16  ;;  %v5029_v15 = vor.u32 %v5490_v10, %v5028_v9  ;;  %v5030_v16 = vld [vmem:[%s9658_s4 + $0x50] sm:$0xf0]  ;;  %v5101_v9 = vor.u32 %v5507_v62, %v5100_v61  ;;  %v5068_v62 = vld [vmem:[%s9658_s4 + $0x88] sm:$0xf] }
  0x5a   : > { %534 = vadd.xlane.f32.xlu2 %v518_v17  ;;  %v570_v17 = vadd.f32 %v5869_v45, %v569_v3 }
  0x5b   : > { %5596 = vmatpush.bf16.msra.mxu2 %v5061_v56  ;;  %1004 = vmatpush.bf16.msra.mxu0 %v5061_v56 }
  0x5c   : > { %5604 = vmatpush.bf16.msra.mxu3 %v5065_v59  ;;  %1053 = vmatpush.bf16.msra.mxu1 %v5065_v59 }
  0x5f   : > { %5597 = vmatpush.bf16.msra.mxu2 %v5045_v63  ;;  %1005 = vmatpush.bf16.msra.mxu0 %v5045_v63 }
  0x60   : > { %5605 = vmatpush.bf16.msra.mxu3 %v5049_v5  ;;  %1054 = vmatpush.bf16.msra.mxu1 %v5049_v5 }
  0x61   : > { %536 = vadd.xlane.f32.xlu0 %v519_v21  ;;  %538 = vadd.xlane.f32.xlu1 %v520_v22  ;;  %v5033_v21 = vor.u32 %v5488_v11, %v5030_v16  ;;  %v5012_v22 = vld [vmem:[%s9658_s4 + $0x20] sm:$0xf] }
  0x62   : > { %540 = vadd.xlane.f32.xlu2 %v521_v23  ;;  %v5486_v23 = vld [vmem:[%s9658_s4 + $0x2c] sm:$0xf0] }
  0x63   : > { %5598 = vmatpush.bf16.msra.mxu2 %v5029_v15  ;;  %1006 = vmatpush.bf16.msra.mxu0 %v5029_v15 }
  0x64   : > { %5606 = vmatpush.bf16.msra.mxu3 %v5033_v21  ;;  %1055 = vmatpush.bf16.msra.mxu1 %v5033_v21 }
  0x69   : > { %544 = vadd.xlane.f32.xlu1 %v523_v27  ;;  %542 = vadd.xlane.f32.xlu0 %v522_v28  ;;  %v5484_v27 = vld [vmem:[%s9658_s4 + $0x24] sm:$0xf]  ;;  %v5013_v28 = vor.u32 %v5486_v23, %v5012_v22 }
  0x6a   : > { %546 = vadd.xlane.f32.xlu2 %v524_v29  ;;  %v5014_v29 = vld [vmem:[%s9658_s4 + $0x30] sm:$0xf0] }
  0x6b   : > { %v5017_v32 = vor.u32 %v5484_v27, %v5014_v29  ;;  %5599 = vmatpush.bf16.msra.mxu2 %v5013_v28  ;;  %1007 = vmatpush.bf16.msra.mxu0 %v5013_v28 }
  0x6d   : > { %5607 = vmatpush.bf16.msra.mxu3 %v5017_v32  ;;  %1056 = vmatpush.bf16.msra.mxu1 %v5017_v32 }
  0x6f   : > { %5600 = vmatpush.bf16.msra.mxu2 %v4997_v41  ;;  %1008 = vmatpush.bf16.msra.mxu0 %v4997_v41 }
  0x71   : > { %548 = vadd.xlane.f32.xlu0 %v525_v31  ;;  %v7013_v31 = vsel %vm571_vm0, %v5869_v45, %v570_v17  ;;  %5608 = vmatpush.bf16.msra.mxu3 %v5001_v43 }
  0x72   : > { %1057 = vmatpush.bf16.msra.mxu1 %v5001_v43 }
  0x73   : > { %1099 = vmatpush.bf16.msrb.mxu2 %v5117_v49 }
  0x77   : > { %1100 = vmatpush.bf16.msrb.mxu2 %v5101_v9 }
  0xbc   : > { %v555_v33 = vpop.xlane.xlu1 %554  ;;  %v551_v34 = vpop.xlane.xlu0 %550 }
  0xbd   : > { %v583_v38 = vmul.f32 %v7013_v31, %v555_v33  ;;  %v581_v39 = vmul.f32 %v7013_v31, %v551_v34  ;;  %v559_v40 = vpop.xlane.xlu2 %558 }
  0xbe   : > { %v585_v46 = vmul.f32 %v7013_v31, %v559_v40 }
  0xbf   : > { %v7029_v44 = vadd.f32 1e-05, %v583_v38  ;;  %v597_v45 = vadd.f32 1e-05, %v581_v39 }
  0xc0   : > { %v7039_v52 = vadd.f32 1e-05, %v585_v46 }
  0xc1   : > { %5870 = vrsqrt.f32 %v597_v45  ;;  %vm691_vm2 = vweird.f32 %v597_v45  ;;  %vm711_vm6 = vweird.f32 %v7029_v44 }
  0xc2   : > { %5872 = vrsqrt.f32 %v7029_v44  ;;  %vm731_vm13 = vweird.f32 %v7039_v52 }
  0xc3   : > { %5874 = vrsqrt.f32 %v7039_v52 }
  0xc4   : > { %v557_v50 = vpop.xlane.xlu1 %556  ;;  %v553_v51 = vpop.xlane.xlu0 %552 }
  0xc5   : > { %v584_v53 = vmul.f32 %v7013_v31, %v557_v50  ;;  %v582_v54 = vmul.f32 %v7013_v31, %v553_v51  ;;  %v561_v57 = vpop.xlane.xlu2 %560 }
  0xc6   : > { %v586_v63 = vmul.f32 %v7013_v31, %v561_v57  ;;  %v7094_v57 = vld [vmem:[%s9656_s2] ss:$0 sm:$0xff] }
  0xc7   : > { %v7043_v55 = vadd.f32 1e-05, %v584_v53  ;;  %v598_v56 = vadd.f32 1e-05, %v582_v54  ;;  %v5871_v58 = vpop.eup %5870 }
  0xc8   : > { %v7046_v59 = vpop.eup %5872  ;;  %v686_v60 = vmul.f32 %v5871_v58, %v597_v45  ;;  %v7060_v15 = vadd.f32 1e-05, %v586_v63  ;;  %vm692_vm1 = vweird.f32 %v5871_v58  ;;  %v5503_v45 = vld [vmem:[%s9658_s4 + $0xb4] sm:$0xf0] }
  0xc9   : > { %5876 = vrsqrt.f32 %v7043_v55  ;;  %v706_v3 = vmul.f32 %v7046_v59, %v7029_v44  ;;  %v7058_v11 = vpop.eup %5874  ;;  %vm7072_vm3 = vmor %vm691_vm2, %vm692_vm1  ;;  %vm701_vm5 = vweird.f32 %v598_v56  ;;  %vm712_vm7 = vweird.f32 %v7046_v59  ;;  %v5499_v63 = vld [vmem:[%s9658_s4 + $0x94] sm:$0xf0] }
  0xca   : > { %5878 = vrsqrt.f32 %v598_v56  ;;  %v687_v2 = vmul.f32 %v5871_v58, %v686_v60  ;;  %v726_v29 = vmul.f32 %v7058_v11, %v7039_v52  ;;  %v5085_v61 = vor.u32 %v5503_v45, %v5084_v42  ;;  %vm7121_vm9 = vmor %vm711_vm6, %vm712_vm7  ;;  %v5118_v45 = vld [vmem:[%s9658_s4 + $0xf8] sm:$0xf0] }
  0xcb   : > { %v707_v22 = vmul.f32 %v7046_v59, %v706_v3  ;;  %5880 = vrsqrt.f32 %v7060_v15  ;;  %vm721_vm10 = vweird.f32 %v7043_v55  ;;  %vm732_vm14 = vweird.f32 %v7058_v11  ;;  %v5070_v52 = vld [vmem:[%s9658_s4 + $0x98] sm:$0xf0] }
  0xcc   : > { %v563_v5 = vpop.xlane.xlu0 %562  ;;  %v688_v10 = vmul.f32 0.5, %v687_v2  ;;  %v565_v34 = vpop.xlane.xlu1 %564  ;;  %v727_v41 = vmul.f32 %v7058_v11, %v726_v29  ;;  %1101 = vmatpush.bf16.msrb.mxu2 %v5085_v61  ;;  %v5036_v61 = vld [vmem:[%s9658_s4 + $0x48] sm:$0xf]  ;;  %vm741_vm0 = vweird.f32 %v7060_v15  ;;  %vm7271_vm7 = vmor %vm731_vm13, %vm732_vm14 }
  0xcd   : > { %v535_v27 = vpop.xlane.xlu2 %534  ;;  %v708_v36 = vmul.f32 0.5, %v707_v22  ;;  %v588_v53 = vmul.f32 %v7013_v31, %v565_v34 }
  0xce   : > { %v689_v17 = vsub.f32 1.5, %v688_v10  ;;  %v573_v35 = vmul.f32 %v7013_v31, %v535_v27  ;;  %v7110_v3 = vmul.f32 0.5, %v727_v41 }
  0xcf   : > { %v7062_v16 = vpop.eup %5876  ;;  %v709_v50 = vsub.f32 1.5, %v708_v36 }
  0xd0   : > { %v5879_v21 = vpop.eup %5878  ;;  %v716_v23 = vmul.f32 %v7062_v16, %v7043_v55  ;;  %v690_v32 = vmul.f32 %v5871_v58, %v689_v17  ;;  %v7083_v48 = vadd.f32 1e-05, %v573_v35  ;;  %vm722_vm11 = vweird.f32 %v7062_v16 }
  0xd1   : > { %v696_v28 = vmul.f32 %v5879_v21, %v598_v56  ;;  %vm702_vm4 = vweird.f32 %v5879_v21  ;;  %v7088_v49 = vpop.eup %5880  ;;  %v710_v9 = vmul.f32 %v7046_v59, %v709_v50  ;;  %vm7151_vm12 = vmor %vm721_vm10, %vm722_vm11 }
  0xd2   : > { %v717_v37 = vmul.f32 %v7062_v16, %v716_v23  ;;  %v694_v43 = vsel %vm7072_vm3, %v5871_v58, %v690_v32  ;;  %v587_v58 = vmul.f32 %v7013_v31, %v563_v5  ;;  %5882 = vrsqrt.f32 %v7083_v48  ;;  %vm703_vm8 = vmor %vm701_vm5, %vm702_vm4 }
  0xd3   : > { %v697_v33 = vmul.f32 %v5879_v21, %v696_v28  ;;  %v773_v56 = vmul.f32 %v694_v43, %v6853_v1  ;;  %v736_v5 = vmul.f32 %v7088_v49, %v7060_v15  ;;  %v7126_v23 = vadd.f32 1e-05, %v588_v53  ;;  %v5509_v43 = vld [vmem:[%s9658_s4 + $0xec] sm:$0xf] }
  0xd4   : > { %v537_v38 = vpop.xlane.xlu0 %536  ;;  %v718_v51 = vmul.f32 0.5, %v717_v37  ;;  %v539_v1 = vpop.xlane.xlu1 %538  ;;  %v7128_v27 = vadd.f32 1e-05, %v587_v58  ;;  %v5069_v28 = vor.u32 %v5499_v63, %v5068_v62  ;;  %v714_v36 = vsel %vm7121_vm9, %v7046_v59, %v710_v9  ;;  %v5102_v58 = vld [vmem:[%s9658_s4 + $0xd8] sm:$0xf0] }
  0xd5   : > { %v698_v39 = vmul.f32 0.5, %v697_v33  ;;  %v574_v47 = vmul.f32 %v7013_v31, %v537_v38  ;;  %v541_v22 = vpop.xlane.xlu2 %540  ;;  %v575_v32 = vmul.f32 %v7013_v31, %v539_v1  ;;  %v729_v33 = vsub.f32 1.5, %v7110_v3  ;;  %v5491_v62 = vld [vmem:[%s9658_s4 + $0x54] sm:$0xf0] }
  0xd6   : > { %v719_v10 = vsub.f32 1.5, %v718_v51  ;;  %v737_v34 = vmul.f32 %v7088_v49, %v736_v5  ;;  %v576_v35 = vmul.f32 %v7013_v31, %v541_v22  ;;  %1102 = vmatpush.bf16.msrb.mxu2 %v5069_v28  ;;  %v775_v50 = vmul.f32 %v714_v36, %v6850_v0  ;;  %v5501_v36 = vld [vmem:[%s9658_s4 + $0xac] sm:$0xf] }
  0xd7   : > { %v699_v46 = vsub.f32 1.5, %v698_v39  ;;  %v7097_v60 = vadd.f32 1e-05, %v574_v47  ;;  %v7156_v42 = vadd.f32 1e-05, %v575_v32  ;;  %vm611_vm15 = vweird.f32 %v7083_v48 }
  0xd8   : > { %v7134_v44 = vpop.eup %5882  ;;  %v720_v37 = vmul.f32 %v7062_v16, %v719_v10  ;;  %v7158_v59 = vadd.f32 1e-05, %v576_v35  ;;  %v5495_v47 = vld [vmem:[%s9658_s4 + $0x74] sm:$0xf0]  ;;  %v7180_v51 = vmul.f32 0.5, %v737_v34  ;;  %v5121_v5 = vor.u32 %v5509_v43, %v5118_v45 }
  0xd9   : > { %v700_v54 = vmul.f32 %v5879_v21, %v699_v46  ;;  %5884 = vrsqrt.f32 %v7097_v60  ;;  %v606_v39 = vmul.f32 %v7134_v44, %v7083_v48  ;;  %v5052_v46 = vld [vmem:[%s9658_s4 + $0x68] sm:$0xf]  ;;  %vm612_vm1 = vweird.f32 %v7134_v44 }
  0xda   : > { %5886 = vrsqrt.f32 %v7126_v23  ;;  %vm621_vm2 = vweird.f32 %v7097_v60  ;;  %1148 = vmatpush.bf16.msrb.mxu3 %v5121_v5  ;;  %v5037_v22 = vor.u32 %v5491_v62, %v5036_v61  ;;  %v7214_v32 = vmul.f32 %v7058_v11, %v729_v33  ;;  %vm7221_vm5 = vmor %vm611_vm15, %vm612_vm1  ;;  %v5020_v48 = vld [vmem:[%s9658_s4 + $0x28] sm:$0xf] }
  0xdb   : > { %v704_v2 = vsel %vm703_vm8, %v5879_v21, %v700_v54  ;;  %5888 = vrsqrt.f32 %v7128_v27  ;;  %v607_v53 = vmul.f32 %v7134_v44, %v606_v39  ;;  %v5505_v54 = vld [vmem:[%s9658_s4 + $0xcc] sm:$0xf]  ;;  %vm742_vm4 = vweird.f32 %v7088_v49 }
  0xdc   : > { %v774_v17 = vmul.f32 %v704_v2, %v6868_v7  ;;  %v793_v7 = vmul.f32 %v7094_v57, %v773_v56  ;;  %5890 = vrsqrt.f32 %v7156_v42  ;;  %v724_v56 = vsel %vm7151_vm12, %v7062_v16, %v720_v37  ;;  %v545_v63 = vpop.xlane.xlu1 %544  ;;  %v543_v2 = vpop.xlane.xlu0 %542  ;;  %vm7300_vm12 = vmor %vm741_vm0, %vm742_vm4 }
  0xdd   : > { %5892 = vrsqrt.f32 %v7158_v59  ;;  %v608_v3 = vmul.f32 0.5, %v607_v53  ;;  %v5053_v16 = vor.u32 %v5495_v47, %v5052_v46  ;;  %v5105_v9 = vor.u32 %v5505_v54, %v5102_v58 }
  0xde   : > { %v794_v29 = vmul.f32 %v7094_v57, %v774_v17  ;;  %v578_v21 = vmul.f32 %v7013_v31, %v545_v63  ;;  %v577_v28 = vmul.f32 %v7013_v31, %v543_v2  ;;  %v795_v39 = vmul.f32 %v7094_v57, %v775_v50 }
  0xdf   : > { %v7147_v40 = vpop.eup %5884  ;;  %v609_v17 = vsub.f32 1.5, %v608_v3  ;;  %1103 = vmatpush.bf16.msrb.mxu2 %v5053_v16  ;;  %v739_v46 = vsub.f32 1.5, %v7180_v51  ;;  %1149 = vmatpush.bf16.msrb.mxu3 %v5105_v9  ;;  %vm631_vm8 = vweird.f32 %v7156_v42  ;;  %vm641_vm10 = vweird.f32 %v7158_v59 }
  0xe0   : > { %v7143_v38 = vpack.c.bf16 %v794_v29, %v793_v7  ;;  %v616_v55 = vmul.f32 %v7147_v40, %v7097_v60  ;;  %vm622_vm3 = vweird.f32 %v7147_v40  ;;  %v7206_v10 = vpop.eup %5886  ;;  %v776_v29 = vmul.f32 %v724_v56, %v6865_v6  ;;  %v5086_v6 = vld [vmem:[%s9658_s4 + $0xb8] sm:$0xf0] }
  0xe1   : > { %v7210_v7 = vpop.eup %5888  ;;  %vm7237_vm6 = vmor %vm621_vm2, %vm622_vm3  ;;  %v610_v37 = vmul.f32 %v7134_v44, %v609_v17  ;;  %v7243_v41 = vadd.f32 1e-05, %v578_v21  ;;  %v7245_v43 = vadd.f32 1e-05, %v577_v28  ;;  %v756_v47 = vmul.f32 %v7206_v10, %v7126_v23 }
  0xe2   : > { %1029 = vmatmul.bf16.vlgmr.msra.gmra.mxu2 %v7143_v38  ;;  %1078 = vmatmul.bf16.vlgmr.msra.gmra.mxu3 %v7143_v38  ;;  %v617_v0 = vmul.f32 %v7147_v40, %v616_v55  ;;  %v7231_v33 = vpop.eup %5890  ;;  %v5089_v54 = vor.u32 %v5501_v36, %v5086_v6  ;;  %v796_v56 = vmul.f32 %v7094_v57, %v776_v29  ;;  %vm761_vm15 = vweird.f32 %v7126_v23  ;;  %v5006_v36 = vld [vmem:[%s9658_s4 + $0x18] sm:$0xf0] }
  0xe3   : > { %v7247_v55 = vpop.eup %5892  ;;  %v626_v45 = vmul.f32 %v7231_v33, %v7156_v42  ;;  %v614_v50 = vsel %vm7221_vm5, %v7134_v44, %v610_v37  ;;  %1104 = vmatpush.bf16.msrb.mxu2 %v5037_v22  ;;  %5894 = vrsqrt.f32 %v7243_v41  ;;  %v746_v61 = vmul.f32 %v7210_v7, %v7128_v27  ;;  %v5487_v37 = vld [vmem:[%s9658_s4 + $0x34] sm:$0xf0]  ;;  %v5489_v44 = vld [vmem:[%s9658_s4 + $0x4c] sm:$0xf] }
  0xe4   : > { %v618_v1 = vmul.f32 0.5, %v617_v0  ;;  %v636_v53 = vmul.f32 %v7247_v55, %v7158_v59  ;;  %v765_v58 = vmul.f32 %v614_v50, %v6886_v14  ;;  %5896 = vrsqrt.f32 %v7245_v43  ;;  %v5497_v14 = vld [vmem:[%s9658_s4 + $0x8c] sm:$0xf]  ;;  %1150 = vmatpush.bf16.msrb.mxu3 %v5089_v54 }
  0xe5   : > { %v627_v0 = vmul.f32 %v7231_v33, %v626_v45  ;;  %vm632_vm9 = vweird.f32 %v7231_v33  ;;  %vm642_vm11 = vweird.f32 %v7247_v55  ;;  %v734_v16 = vsel %vm7271_vm7, %v7058_v11, %v7214_v32  ;;  %v5493_v32 = vld [vmem:[%s9658_s4 + $0x6c] sm:$0xf] }
  0xe6   : > { %v619_v34 = vsub.f32 1.5, %v618_v1  ;;  %v785_v2 = vmul.f32 %v7094_v57, %v765_v58  ;;  %v7304_v1 = vpack.c.bf16 %v796_v56, %v795_v39  ;;  %v5073_v17 = vor.u32 %v5497_v14, %v5070_v52  ;;  %vm7314_vm13 = vmor %vm631_vm8, %vm632_vm9  ;;  %v549_v39 = vpop.xlane.xlu0 %548  ;;  %v5483_v58 = vld [vmem:[%s9658_s4 + $0x14] sm:$0xf0]  ;;  %v547_v56 = vpop.xlane.xlu2 %546 }
  0xe7   : > { %v628_v63 = vmul.f32 0.5, %v627_v0  ;;  %v740_v21 = vmul.f32 %v7088_v49, %v739_v46  ;;  %v757_v28 = vmul.f32 %v7206_v10, %v756_v47  ;;  %v747_v35 = vmul.f32 %v7210_v7, %v746_v61  ;;  %vm7334_vm14 = vmor %vm641_vm10, %vm642_vm11  ;;  %v5038_v61 = vld [vmem:[%s9658_s4 + $0x58] sm:$0xf0] }
  0xe8   : > { %v620_v60 = vmul.f32 %v7147_v40, %v619_v34  ;;  %v5054_v34 = vld [vmem:[%s9658_s4 + $0x78] sm:$0xf0]  ;;  %v5021_v47 = vor.u32 %v5487_v37, %v5020_v48  ;;  %v580_v45 = vmul.f32 %v7013_v31, %v549_v39  ;;  %1151 = vmatpush.bf16.msrb.mxu3 %v5073_v17  ;;  %v5041_v17 = vor.u32 %v5489_v44, %v5038_v61 }
  0xe9   : > { %v629_v9 = vsub.f32 1.5, %v628_v63  ;;  %v7306_v22 = vpop.eup %5894  ;;  %v744_v0 = vsel %vm7300_vm12, %v7088_v49, %v740_v21  ;;  %v758_v14 = vmul.f32 0.5, %v757_v28  ;;  %v748_v5 = vmul.f32 0.5, %v747_v35 }
  0xea   : > { %v624_v51 = vsel %vm7237_vm6, %v7147_v40, %v620_v60  ;;  %v637_v40 = vmul.f32 %v7247_v55, %v636_v53  ;;  %v656_v6 = vmul.f32 %v7306_v22, %v7243_v41  ;;  %v7346_v46 = vpop.eup %5896  ;;  %v5004_v60 = vld [vmem:[%s9658_s4 + $0x8] sm:$0xf]  ;;  %1105 = vmatpush.bf16.msrb.mxu2 %v5021_v47  ;;  %vm762_vm0 = vweird.f32 %v7206_v10 }
  0xeb   : > { %v766_v62 = vmul.f32 %v624_v51, %v6895_v18  ;;  %v630_v42 = vmul.f32 %v7231_v33, %v629_v9  ;;  %v646_v54 = vmul.f32 %v7346_v46, %v7245_v43  ;;  %v5057_v51 = vor.u32 %v5493_v32, %v5054_v34  ;;  %vm7416_vm5 = vmor %vm761_vm15, %vm762_vm0 }
  0xec   : > { %v638_v18 = vmul.f32 0.5, %v637_v40  ;;  %v657_v53 = vmul.f32 %v7306_v22, %v656_v6  ;;  %v777_v40 = vmul.f32 %v734_v16, %v6860_v4  ;;  %v5485_v4 = vld [vmem:[%s9658_s4 + $0x2c] sm:$0xf]  ;;  %v759_v34 = vsub.f32 1.5, %v758_v14 }
  0xed   : > { %v786_v3 = vmul.f32 %v7094_v57, %v766_v62  ;;  %v634_v50 = vsel %vm7314_vm13, %v7231_v33, %v630_v42  ;;  %v5005_v62 = vor.u32 %v5483_v58, %v5004_v60  ;;  %v647_v49 = vmul.f32 %v7346_v46, %v646_v54  ;;  %1152 = vmatpush.bf16.msrb.mxu3 %v5057_v51  ;;  %v5481_v42 = vld [vmem:[%s9658_s4 + $0xc] sm:$0xf]  ;;  %v1321_v58 = vld [vmem:[%s9665_s11 + $0x60] sm:$0xff] }
  0xee   : > { %v639_v15 = vsub.f32 1.5, %v638_v18  ;;  %v767_v52 = vmul.f32 %v634_v50, %v6898_v19  ;;  %v579_v18 = vmul.f32 %v7013_v31, %v547_v56  ;;  %v5022_v19 = vld [vmem:[%s9658_s4 + $0x38] sm:$0xf0]  ;;  %v797_v28 = vmul.f32 %v7094_v57, %v777_v40  ;;  %1365 = vrot.lane.b32.xlu0 %v1321_v58, %s6633_s5  ;;  %v1239_v58 = vld [vmem:[#allocation10 + $0x50] sm:$0xff] }
  0xef   : > { %v7318_v29 = vpack.c.bf16 %v786_v3, %v785_v2  ;;  %v7380_v2 = vadd.f32 1e-05, %v580_v45  ;;  %v778_v3 = vmul.f32 %v744_v0, %v6871_v8  ;;  %v648_v9 = vmul.f32 0.5, %v647_v49  ;;  %1106 = vmatpush.bf16.msrb.mxu2 %v5005_v62  ;;  %v1320_v49 = vld [vmem:[%s9665_s11 + $0x58] sm:$0xff] }
  0xf0   : > { %v640_v59 = vmul.f32 %v7247_v55, %v639_v15  ;;  %v787_v16 = vmul.f32 %v7094_v57, %v767_v52  ;;  %v5025_v32 = vor.u32 %v5485_v4, %v5022_v19  ;;  %v749_v35 = vsub.f32 1.5, %v748_v5  ;;  %v1323_v5 = vld [vmem:[%s9665_s11 + $0x70] sm:$0xff] }
  0xf1   : > { %1009 = vmatmul.bf16.vlgmr.msra.gmra.mxu0 %v7318_v29  ;;  %1058 = vmatmul.bf16.vlgmr.msra.gmra.mxu1 %v7318_v29  ;;  %5898 = vrsqrt.f32 %v7380_v2  ;;  %v798_v11 = vmul.f32 %v7094_v57, %v778_v3  ;;  %v649_v15 = vsub.f32 1.5, %v648_v9  ;;  %vm661_vm1 = vweird.f32 %v7243_v41 }
  0xf2   : > { %1034 = vmatmul.bf16.gmra.mxu2 %v7304_v1  ;;  %1083 = vmatmul.bf16.gmra.mxu3 %v7304_v1  ;;  %v644_v33 = vsel %vm7334_vm14, %v7247_v55, %v640_v59  ;;  %v658_v55 = vmul.f32 0.5, %v657_v53  ;;  %vm662_vm2 = vweird.f32 %v7306_v22  ;;  %vm651_vm3 = vweird.f32 %v7245_v43  ;;  %v1206_v59 = vld [vmem:[#allocation8 + $0x48] sm:$0xff] }
  0xf3   : > { %v768_v63 = vmul.f32 %v644_v33, %v6901_v20  ;;  %v7391_v20 = vadd.f32 1e-05, %v579_v18  ;;  %1153 = vmatpush.bf16.msrb.mxu3 %v5041_v17  ;;  %vm652_vm4 = vweird.f32 %v7346_v46  ;;  %vm751_vm6 = vweird.f32 %v7128_v27  ;;  %vm7427_vm8 = vmor %vm661_vm1, %vm662_vm2  ;;  %1369 = vrot.lane.b32.xlu1 %v1323_v5, %s6633_s5 }
  0xf4   : > { %v659_v8 = vsub.f32 1.5, %v658_v55  ;;  %vm752_vm7 = vweird.f32 %v7210_v7  ;;  %v7425_v39 = vpack.c.bf16 %v798_v11, %v797_v28  ;;  %v650_v23 = vmul.f32 %v7346_v46, %v649_v15  ;;  %vm7440_vm9 = vmor %vm651_vm3, %vm652_vm4  ;;  %v1324_v28 = vld [vmem:[%s9665_s11 + $0x78] sm:$0xff]  ;;  %v1313_v11 = vld [vmem:[%s9665_s11 + $0x20] sm:$0xff] }
  0xf5   : > { %v788_v21 = vmul.f32 %v7094_v57, %v768_v63  ;;  %5900 = vrsqrt.f32 %v7391_v20  ;;  %v5009_v60 = vor.u32 %v5481_v42, %v5006_v36  ;;  %v760_v45 = vmul.f32 %v7206_v10, %v759_v34  ;;  %vm7444_vm10 = vmor %vm751_vm6, %vm752_vm7  ;;  %1371 = vrot.lane.b32.xlu2 %v1324_v28, %s6633_s5  ;;  %v1317_v15 = vld [vmem:[%s9665_s11 + $0x40] sm:$0xff]  ;;  %v1312_v34 = vld [vmem:[%s9665_s11 + $0x18] sm:$0xff] }
  0xf6   : > { %v660_v48 = vmul.f32 %v7306_v22, %v659_v8  ;;  %v750_v50 = vmul.f32 %v7210_v7, %v749_v35  ;;  %v654_v56 = vsel %vm7440_vm9, %v7346_v46, %v650_v23  ;;  %1363 = vrot.lane.b32.xlu0 %v1320_v49, %s6633_s5  ;;  %vm681_vm11 = vweird.f32 %v7380_v2  ;;  %v1205_v35 = vld [vmem:[#allocation8 + $0x40] sm:$0xff]  ;;  %v1238_v23 = vld [vmem:[#allocation10 + $0x48] sm:$0xff] }
  0xf7   : > { %v7410_v6 = vpop.eup %5898  ;;  %v7423_v37 = vpack.c.bf16 %v788_v21, %v787_v16  ;;  %1154 = vmatpush.bf16.msrb.mxu3 %v5025_v32  ;;  %v764_v44 = vsel %vm7416_vm5, %v7206_v10, %v760_v45  ;;  %v769_v62 = vmul.f32 %v654_v56, %v6913_v25  ;;  %vm671_vm13 = vweird.f32 %v7391_v20  ;;  %v1316_v32 = vld [vmem:[%s9665_s11 + $0x38] sm:$0xff]  ;;  %v1237_v42 = vld [vmem:[#allocation10 + $0x40] sm:$0xff]  ;;  %v1242_v28 = vld [vmem:[#allocation10 + $0x68] sm:$0xff] }
  0xf8   : > { %v676_v47 = vmul.f32 %v7410_v6, %v7380_v2  ;;  %v664_v43 = vsel %vm7427_vm8, %v7306_v22, %v660_v48  ;;  %v754_v22 = vsel %vm7444_vm10, %v7210_v7, %v750_v50  ;;  %v780_v46 = vmul.f32 %v764_v44, %v6880_v12  ;;  %v1315_v2 = vld [vmem:[%s9665_s11 + $0x30] sm:$0xff] }
  0xf9   : > { %v770_v61 = vmul.f32 %v664_v43, %v6910_v24  ;;  %v779_v40 = vmul.f32 %v754_v22, %v6883_v13  ;;  %v789_v10 = vmul.f32 %v7094_v57, %v769_v62  ;;  %vm682_vm12 = vweird.f32 %v7410_v6  ;;  %v1208_v62 = vld [vmem:[#allocation8 + $0x58] sm:$0xff] }
  0xfa   : > { %v677_v0 = vmul.f32 %v7410_v6, %v676_v47  ;;  %v800_v24 = vmul.f32 %v7094_v57, %v780_v46  ;;  %vm683_vm15 = vmor %vm681_vm11, %vm682_vm12  ;;  %v1240_v46 = vld [vmem:[#allocation10 + $0x58] sm:$0xff]  ;;  %vm1605_vm1 = vcmask 261120   ;;  %vm3034_vm2 = vcmask 523264  }
  0xfb   : > { %v5901_v27 = vpop.eup %5900  ;;  %1155 = vmatpush.bf16.msrb.mxu3 %v5009_v60  ;;  %v790_v63 = vmul.f32 %v7094_v57, %v770_v61  ;;  %v799_v7 = vmul.f32 %v7094_v57, %v779_v40  ;;  %vm3051_vm3 = vcmask 785408  }
  0xfc   : > { %v666_v51 = vmul.f32 %v5901_v27, %v7391_v20  ;;  %v678_v14 = vmul.f32 0.5, %v677_v0  ;;  %vm672_vm14 = vweird.f32 %v5901_v27  ;;  %v1314_v20 = vld [vmem:[%s9665_s11 + $0x28] sm:$0xff] }
  0xfd   : > { %v803_v12 = vpack.c.bf16 %v790_v63, %v789_v10  ;;  %v7485_v13 = vpack.c.bf16 %v800_v24, %v799_v7  ;;  %vm673_vm0 = vmor %vm671_vm13, %vm672_vm14  ;;  %v1199_v7 = vld [vmem:[#allocation8 + $0x10] sm:$0xff] }
  0xfe   : > { %v667_v33 = vmul.f32 %v5901_v27, %v666_v51  ;;  %v679_v55 = vsub.f32 1.5, %v678_v14  ;;  %1353 = vrot.lane.b32.xlu0 %v1315_v2, %s6633_s5  ;;  %v1207_v51 = vld [vmem:[#allocation8 + $0x50] sm:$0xff] }
  0xff   : > { %v1231_v24 = vld [vmem:[#allocation10 + $0x10] sm:$0xff] }
 0x100   : > { %v668_v52 = vmul.f32 0.5, %v667_v33  ;;  %v680_v18 = vmul.f32 %v7410_v6, %v679_v55 }
 0x101   : > { %1014 = vmatmul.bf16.gmra.mxu0 %v7423_v37  ;;  %1063 = vmatmul.bf16.gmra.mxu1 %v7423_v37 }
 0x102   : > { %1039 = vmatmul.bf16.gmra.mxu2 %v7425_v39  ;;  %1088 = vmatmul.bf16.gmra.mxu3 %v7425_v39  ;;  %v669_v25 = vsub.f32 1.5, %v668_v52  ;;  %v684_v9 = vsel %vm683_vm15, %v7410_v6, %v680_v18 }
 0x103   : > { %v772_v4 = vmul.f32 %v684_v9, %v6925_v30  ;;  %v1319_v30 = vld [vmem:[%s9665_s11 + $0x50] sm:$0xff] }
 0x104   : > { %v670_v3 = vmul.f32 %v5901_v27, %v669_v25  ;;  %1361 = vrot.lane.b32.xlu1 %v1319_v30, %s6633_s5  ;;  %v1209_v25 = vld [vmem:[#allocation8 + $0x60] sm:$0xff] }
 0x105   : > { %v792_v16 = vmul.f32 %v7094_v57, %v772_v4  ;;  %v1200_v4 = vld [vmem:[#allocation8 + $0x18] sm:$0xff] }
 0x106   : > { %v674_v17 = vsel %vm673_vm0, %v5901_v27, %v670_v3  ;;  %1351 = vrot.lane.b32.xlu0 %v1314_v20, %s6633_s5 }
 0x107   : > { %v771_v19 = vmul.f32 %v674_v17, %v6916_v26  ;;  %v1311_v26 = vld [vmem:[%s9665_s11 + $0x10] sm:$0xff] }
 0x109   : > { %v791_v8 = vmul.f32 %v7094_v57, %v771_v19  ;;  %v1318_v57 = vld [vmem:[%s9665_s11 + $0x48] sm:$0xff]  ;;  %v1232_v19 = vld [vmem:[#allocation10 + $0x18] sm:$0xff] }
 0x10b   : > { %v804_v21 = vpack.c.bf16 %v792_v16, %v791_v8 }
 0x10c   : > { %1359 = vrot.lane.b32.xlu1 %v1318_v57, %s6633_s5 }
 0x10e   : > { %1345 = vrot.lane.b32.xlu0 %v1311_v26, %s6633_s5  ;;  %v1210_v26 = vld [vmem:[#allocation8 + $0x68] sm:$0xff] }
 0x111   : > { %1019 = vmatmul.bf16.gmra.mxu0 %v803_v12  ;;  %1068 = vmatmul.bf16.gmra.mxu1 %v803_v12 }
 0x112   : > { %1044 = vmatmul.bf16.gmra.mxu2 %v7485_v13  ;;  %1093 = vmatmul.bf16.gmra.mxu3 %v7485_v13 }
 0x114   : > { %1349 = vrot.lane.b32.xlu1 %v1313_v11, %s6633_s5 }
 0x121   : > { %1024 = vmatmul.bf16.gmra.mxu0 %v804_v21  ;;  %1073 = vmatmul.bf16.gmra.mxu1 %v804_v21 }
 0x122   : > { %1107 = vmatmul.bf16.vlgmr.msrb.gmra.mxu2 %v7318_v29  ;;  %1156 = vmatmul.bf16.vlgmr.msrb.gmra.mxu3 %v7318_v29  ;;  %v1322_v29 = vld [vmem:[%s9665_s11 + $0x68] sm:$0xff] }
 0x123   : > { %1367 = vrot.lane.b32.xlu2 %v1322_v29, %s6633_s5 }
 0x12b   : > { %1357 = vrot.lane.b32.xlu2 %v1317_v15, %s6633_s5 }
 0x132   : > { %1112 = vmatmul.bf16.gmra.mxu2 %v7423_v37  ;;  %1161 = vmatmul.bf16.gmra.mxu3 %v7423_v37 }
 0x133   : > { %1355 = vrot.lane.b32.xlu2 %v1316_v32, %s6633_s5 }
 0x13b   : > { %1347 = vrot.lane.b32.xlu2 %v1312_v34, %s6633_s5 }
 0x142   : > { %1117 = vmatmul.bf16.gmra.mxu2 %v803_v12  ;;  %1166 = vmatmul.bf16.gmra.mxu3 %v803_v12  ;;  %v1241_v12 = vld [vmem:[#allocation10 + $0x60] sm:$0xff] }
 0x152   : > { %1122 = vmatmul.bf16.gmra.mxu2 %v804_v21  ;;  %1171 = vmatmul.bf16.gmra.mxu3 %v804_v21 }
 0x162   : > { %1127 = vmatmul.bf16.gmra.mxu2 %v7143_v38  ;;  %1176 = vmatmul.bf16.gmra.mxu3 %v7143_v38 }
 0x165   : > { %v1030_v36 = vpop.f32.mrf.mxu2  ;;  %v1079_v6 = vpop.f32.mrf.mxu3 }
 0x166   : > { %v1221_v41 = vmul.f32 %v1205_v35, %v1030_v36  ;;  %v1253_v48 = vmul.f32 %v1237_v42, %v1079_v6  ;;  %v1211_v36 = vld [vmem:[#allocation8 + $0x70] sm:$0xff] }
 0x167   : > { %v1243_v6 = vld [vmem:[#allocation10 + $0x70] sm:$0xff] }
 0x168   : > { %v7549_v37 = vadd.f32 %v1253_v48, %v1221_v41 }
 0x16d   : > { %v1032_v47 = vpop.f32.mrf.mxu2  ;;  %v1081_v60 = vpop.f32.mrf.mxu3 }
 0x16e   : > { %v1222_v27 = vmul.f32 %v1206_v59, %v1032_v47  ;;  %v1254_v45 = vmul.f32 %v1238_v23, %v1081_v60  ;;  %v7553_v53 = vpop.f32.mrf.mxu0  ;;  %v7555_v54 = vpop.f32.mrf.mxu1  ;;  %v1212_v60 = vld [vmem:[#allocation8 + $0x78] sm:$0xff] }
 0x170   : > { %v7551_v50 = vadd.f32 %v1254_v45, %v1222_v27  ;;  %v1244_v27 = vld [vmem:[#allocation10 + $0x78] sm:$0xff] }
 0x172   : > { %1132 = vmatmul.bf16.gmra.mxu2 %v7304_v1  ;;  %1181 = vmatmul.bf16.gmra.mxu3 %v7304_v1  ;;  %v5726_v38 = vpack.i.bf16 %v7551_v50, %v7549_v37 }
 0x175   : > { %v1035_v43 = vpop.f32.mrf.mxu2  ;;  %v1084_v56 = vpop.f32.mrf.mxu3 }
 0x176   : > { %v1223_v0 = vmul.f32 %v1207_v51, %v1035_v43  ;;  %v1255_v33 = vmul.f32 %v1239_v58, %v1084_v56  ;;  %v7563_v22 = vpop.f32.mrf.mxu0  ;;  %v7565_v61 = vpop.f32.mrf.mxu1 }
 0x178   : > { %v7561_v44 = vadd.f32 %v1255_v33, %v1223_v0 }
 0x17d   : > { %v1037_v40 = vpop.f32.mrf.mxu2  ;;  %v1086_v14 = vpop.f32.mrf.mxu3 }
 0x17e   : > { %v1224_v1 = vmul.f32 %v1208_v62, %v1037_v40  ;;  %v1256_v52 = vmul.f32 %v1240_v46, %v1086_v14  ;;  %v1015_v10 = vpop.f32.mrf.mxu0  ;;  %v1064_v63 = vpop.f32.mrf.mxu1 }
 0x17f   : > { %v1215_v2 = vmul.f32 %v1199_v7, %v1015_v10  ;;  %v1247_v5 = vmul.f32 %v1231_v24, %v1064_v63 }
 0x180   : > { %v7567_v49 = vadd.f32 %v1256_v52, %v1224_v1 }
 0x182   : > { %1137 = vmatmul.bf16.gmra.mxu2 %v7425_v39  ;;  %1186 = vmatmul.bf16.gmra.mxu3 %v7425_v39  ;;  %v7575_v39 = vadd.f32 %v1247_v5, %v1215_v2 }
 0x185   : > { %v1040_v18 = vpop.f32.mrf.mxu2  ;;  %v1089_v3 = vpop.f32.mrf.mxu3 }
 0x186   : > { %v1225_v9 = vmul.f32 %v1209_v25, %v1040_v18  ;;  %v1257_v17 = vmul.f32 %v1241_v12, %v1089_v3  ;;  %v1017_v8 = vpop.f32.mrf.mxu0  ;;  %v1066_v16 = vpop.f32.mrf.mxu1 }
 0x187   : > { %v1216_v21 = vmul.f32 %v1200_v4, %v1017_v8  ;;  %v1248_v30 = vmul.f32 %v1232_v19, %v1066_v16 }
 0x188   : > { %v7573_v20 = vadd.f32 %v1257_v17, %v1225_v9 }
 0x189   : > { %v7577_v57 = vadd.f32 %v1248_v30, %v1216_v21  ;;  %v1372_v21 = vpop.permute.xlu2 %1371  ;;  %v1366_v30 = vpop.permute.xlu0 %1365 }
 0x18b   : > { %v5711_v15 = vpack.i.bf16 %v7577_v57, %v7575_v39 }
 0x18d   : > { %v1042_v29 = vpop.f32.mrf.mxu2  ;;  %v1091_v11 = vpop.f32.mrf.mxu3 }
 0x18e   : > { %v1226_v32 = vmul.f32 %v1210_v26, %v1042_v29  ;;  %v1258_v34 = vmul.f32 %v1242_v28, %v1091_v11  ;;  %v1370_v29 = vpop.permute.xlu1 %1369 }
 0x190   : > { %v7581_v35 = vadd.f32 %v1258_v34, %v1226_v32 }
 0x191   : > { %v1368_v11 = vpop.permute.xlu2 %1367 }
 0x192   : > { %1142 = vmatmul.bf16.gmra.mxu2 %v7485_v13  ;;  %1191 = vmatmul.bf16.gmra.mxu3 %v7485_v13 }
 0x195   : > { %v1045_v41 = vpop.f32.mrf.mxu2  ;;  %v1094_v48 = vpop.f32.mrf.mxu3 }
 0x196   : > { %v1227_v59 = vmul.f32 %v1211_v36, %v1045_v41  ;;  %v1259_v23 = vmul.f32 %v1243_v6, %v1094_v48  ;;  %v1364_v36 = vpop.permute.xlu0 %1363  ;;  %v1362_v41 = vpop.permute.xlu1 %1361 }
 0x198   : > { %v7587_v47 = vadd.f32 %v1259_v23, %v1227_v59 }
 0x19d   : > { %v1047_v45 = vpop.f32.mrf.mxu2  ;;  %v1096_v51 = vpop.f32.mrf.mxu3 }
 0x19e   : > { %v1228_v58 = vmul.f32 %v1212_v60, %v1047_v45  ;;  %v1260_v43 = vmul.f32 %v1244_v27, %v1096_v51  ;;  %v1354_v27 = vpop.permute.xlu0 %1353  ;;  %v1360_v45 = vpop.permute.xlu1 %1359 }
 0x1a0   : > { %v7589_v56 = vadd.f32 %v1260_v43, %v1228_v58  ;;  %v1309_v43 = vld [vmem:[%s9665_s11] sm:$0xff] }
 0x1a5   : > { %v7593_v0 = vpop.f32.mrf.mxu2  ;;  %v7595_v33 = vpop.f32.mrf.mxu3 }
 0x1ad   : > { %v7597_v62 = vpop.f32.mrf.mxu2  ;;  %v7599_v46 = vpop.f32.mrf.mxu3 }
 0x1b5   : > { %v7601_v40 = vpop.f32.mrf.mxu2  ;;  %v7603_v14 = vpop.f32.mrf.mxu3 }
 0x1bd   : > { %v7605_v1 = vpop.f32.mrf.mxu2  ;;  %v7607_v52 = vpop.f32.mrf.mxu3 }
 0x1c5   : > { %v7609_v10 = vpop.f32.mrf.mxu2  ;;  %v7611_v63 = vpop.f32.mrf.mxu3 }
 0x1cd   : > { %v7613_v7 = vpop.f32.mrf.mxu2  ;;  %v7615_v24 = vpop.f32.mrf.mxu3 }
 0x1d5   : > { %v7617_v25 = vpop.f32.mrf.mxu2  ;;  %v1172_v12 = vpop.f32.mrf.mxu3 }
 0x1dd   : > { %v7619_v18 = vpop.f32.mrf.mxu2  ;;  %v1174_v3 = vpop.f32.mrf.mxu3 }
 0x1e5   : > { %v7621_v2 = vpop.f32.mrf.mxu2  ;;  %v1177_v5 = vpop.f32.mrf.mxu3 }
 0x1ed   : > { %v7623_v9 = vpop.f32.mrf.mxu2  ;;  %v1179_v17 = vpop.f32.mrf.mxu3 }
 0x1ee   : > { %v1398_v55 = vmul.f32 %v1360_v45, %v7623_v9 }
 0x1f5   : > { %v7625_v4 = vpop.f32.mrf.mxu2  ;;  %v1182_v19 = vpop.f32.mrf.mxu3 }
 0x1f6   : > { %v1399_v23 = vmul.f32 %v1362_v41, %v7625_v4 }
 0x1fd   : > { %v7627_v8 = vpop.f32.mrf.mxu2  ;;  %v1184_v16 = vpop.f32.mrf.mxu3 }
 0x205   : > { %v7629_v26 = vpop.f32.mrf.mxu2  ;;  %v1187_v28 = vpop.f32.mrf.mxu3 }
 0x20d   : > { %v7631_v32 = vpop.f32.mrf.mxu2  ;;  %v1189_v34 = vpop.f32.mrf.mxu3 }
 0x20e   : > { %v1402_v6 = vmul.f32 %v1368_v11, %v7631_v32  ;;  %v7651_v41 = vpack.c.bf16 %v1189_v34, %v1187_v28 }
 0x210   : > { %1447 = vrot.lane.b32.xlu0 %v1402_v6, %s6633_s5 }
 0x215   : > { %v7635_v48 = vpop.f32.mrf.mxu2  ;;  %v1192_v59 = vpop.f32.mrf.mxu3 }
 0x216   : > { %v1403_v60 = vmul.f32 %v1370_v29, %v7635_v48  ;;  %v1352_v29 = vpop.permute.xlu0 %1351 }
 0x218   : > { %1449 = vrot.lane.b32.xlu2 %v1403_v60, %s6633_s5  ;;  %1441 = vrot.lane.b32.xlu0 %v1399_v23, %s6633_s5  ;;  %v1350_v23 = vpop.permute.xlu1 %1349  ;;  %v1358_v60 = vpop.permute.xlu2 %1357 }
 0x219   : > { %v1393_v45 = vmul.f32 %v1350_v23, %v7609_v10 }
 0x21d   : > { %v1145_v51 = vpop.f32.mrf.mxu2  ;;  %v1194_v58 = vpop.f32.mrf.mxu3 }
 0x21e   : > { %v1404_v11 = vmul.f32 %v1372_v21, %v1145_v51  ;;  %v7644_v6 = vpack.c.bf16 %v1194_v58, %v1192_v59  ;;  %v1400_v21 = vmul.f32 %v1364_v36, %v7627_v8  ;;  %v7655_v59 = vpack.c.bf16 %v1184_v16, %v1182_v19  ;;  %v1346_v28 = vpop.permute.xlu0 %1345 }
 0x21f   : > { %v1401_v58 = vmul.f32 %v1366_v30, %v7629_v26  ;;  %v1395_v19 = vmul.f32 %v1354_v27, %v7617_v25  ;;  %v7667_v16 = vpack.c.bf16 %v1174_v3, %v1172_v12  ;;  %v1310_v30 = vld [vmem:[%s9665_s11 + $0x8] sm:$0xff]  ;;  %v1391_v34 = vmul.f32 %v1346_v28, %v7601_v40 }
 0x220   : > { %2079 = vmatpush.bf16.msrb.mxu1 %v7644_v6  ;;  %1341 = vrot.lane.b32.xlu2 %v1309_v43, %s6633_s5  ;;  %v1356_v36 = vpop.permute.xlu2 %1355  ;;  %v1394_v12 = vmul.f32 %v1352_v29, %v7613_v7  ;;  %v7685_v3 = vpack.c.bf16 %v7607_v52, %v7603_v14 }
 0x221   : > { %1451 = vrot.lane.b32.xlu1 %v1404_v11, %s6633_s5  ;;  %1439 = vrot.lane.b32.xlu0 %v1398_v55, %s6633_s5  ;;  %v7663_v55 = vpack.c.bf16 %v1179_v17, %v1177_v5  ;;  %v7679_v5 = vpack.c.bf16 %v7615_v24, %v7611_v63  ;;  %v1397_v17 = vmul.f32 %v1358_v60, %v7621_v2 }
 0x222   : > { %v7693_v63 = vpack.c.bf16 %v7599_v46, %v7595_v33  ;;  %v1396_v14 = vmul.f32 %v1356_v36, %v7619_v18  ;;  %v1291_v33 = vld [vmem:[%s9664_s10 + $0x70] sm:$0xff]  ;;  %v1292_v46 = vld [vmem:[%s9664_s10 + $0x78] sm:$0xff] }
 0x223   : > { %v1307_v23 = vmul.f32 %v1291_v33, %v7635_v48  ;;  %v1288_v33 = vld [vmem:[%s9664_s10 + $0x58] sm:$0xff] }
 0x224   : > { %2080 = vmatpush.bf16.msrb.mxu1 %v7651_v41 }
 0x228   : > { %2081 = vmatpush.bf16.msrb.mxu1 %v7655_v59  ;;  %1443 = vrot.lane.b32.xlu2 %v1400_v21, %s6633_s5  ;;  %v1348_v24 = vpop.permute.xlu2 %1347  ;;  %v1308_v21 = vmul.f32 %v1292_v46, %v1145_v51 }
 0x229   : > { %1445 = vrot.lane.b32.xlu1 %v1401_v58, %s6633_s5  ;;  %1429 = vrot.lane.b32.xlu0 %v1393_v45, %s6633_s5  ;;  %v1392_v27 = vmul.f32 %v1348_v24, %v7605_v1  ;;  %v7709_v58 = vpop.f32.mrf.mxu0 }
 0x22c   : > { %2082 = vmatpush.bf16.msrb.mxu1 %v7663_v55 }
 0x230   : > { %2083 = vmatpush.bf16.msrb.mxu1 %v7667_v16  ;;  %1433 = vrot.lane.b32.xlu2 %v1395_v19, %s6633_s5 }
 0x231   : > { %1343 = vrot.lane.b32.xlu1 %v1310_v30, %s6633_s5  ;;  %1425 = vrot.lane.b32.xlu0 %v1391_v34, %s6633_s5  ;;  %v7711_v34 = vpop.f32.mrf.mxu1  ;;  %v7729_v46 = vpop.f32.mrf.mxu0 }
 0x234   : > { %2084 = vmatpush.bf16.msrb.mxu1 %v7679_v5 }
 0x238   : > { %2085 = vmatpush.bf16.msrb.mxu1 %v7685_v3  ;;  %1431 = vrot.lane.b32.xlu2 %v1394_v12, %s6633_s5  ;;  %v1289_v12 = vld [vmem:[%s9664_s10 + $0x60] sm:$0xff] }
 0x239   : > { %1437 = vrot.lane.b32.xlu1 %v1397_v17, %s6633_s5  ;;  %v1290_v17 = vld [vmem:[%s9664_s10 + $0x68] sm:$0xff]  ;;  %v1305_v51 = vmul.f32 %v1289_v12, %v7629_v26 }
 0x23a   : > { %v1306_v24 = vmul.f32 %v1290_v17, %v7631_v32  ;;  %v7734_v32 = vpop.f32.mrf.mxu1 }
 0x23c   : > { %2086 = vmatpush.bf16.msrb.mxu1 %v7693_v63 }
 0x240   : > { %1427 = vrot.lane.b32.xlu2 %v1392_v27, %s6633_s5  ;;  %v1287_v27 = vld [vmem:[%s9664_s10 + $0x50] sm:$0xff] }
 0x241   : > { %1435 = vrot.lane.b32.xlu1 %v1396_v14, %s6633_s5 }
 0x272   : > { %v1450_v52 = vpop.permute.xlu2 %1449 }
 0x273   : > { %v1483_v28 = vadd.f32 %v1450_v52, %v1307_v23  ;;  %v1303_v23 = vmul.f32 %v1287_v27, %v7625_v4  ;;  %v1281_v4 = vld [vmem:[%s9664_s10 + $0x20] sm:$0xff] }
 0x27a   : > { %v1342_v43 = vpop.permute.xlu2 %1341 }
 0x27b   : > { %v1389_v11 = vmul.f32 %v1342_v43, %v7593_v0 }
 0x27d   : > { %1421 = vrot.lane.b32.xlu0 %v1389_v11, %s6633_s5 }
 0x282   : > { %v1448_v29 = vpop.permute.xlu0 %1447  ;;  %v1444_v19 = vpop.permute.xlu2 %1443 }
 0x283   : > { %v1482_v52 = vadd.f32 %v1448_v29, %v1306_v24  ;;  %v1297_v24 = vmul.f32 %v1281_v4, %v7609_v10 }
 0x28a   : > { %v1442_v60 = vpop.permute.xlu0 %1441 }
 0x293   : > { %v1452_v45 = vpop.permute.xlu1 %1451  ;;  %v1440_v43 = vpop.permute.xlu0 %1439 }
 0x294   : > { %v1484_v30 = vadd.f32 %v1452_v45, %v1308_v21  ;;  %v7732_v21 = vpop.permute.xlu2 %1433  ;;  %v1304_v45 = vmul.f32 %v1288_v33, %v7627_v8  ;;  %v1282_v8 = vld [vmem:[%s9664_s10 + $0x28] sm:$0xff]  ;;  %v1229_v33 = vld [vmem:[#allocation10] sm:$0xff] }
 0x296   : > { %v1604_v36 = vpack.c.bf16 %v1484_v30, %v1483_v28  ;;  %v1479_v28 = vadd.f32 %v1442_v60, %v1303_v23  ;;  %v1480_v30 = vadd.f32 %v1444_v19, %v1304_v45  ;;  %v1285_v60 = vld [vmem:[%s9664_s10 + $0x40] sm:$0xff]  ;;  %v1286_v19 = vld [vmem:[%s9664_s10 + $0x48] sm:$0xff]  ;;  %v1298_v45 = vmul.f32 %v1282_v8, %v7613_v7  ;;  %v1279_v7 = vld [vmem:[%s9664_s10 + $0x10] sm:$0xff] }
 0x297   : > { %v1198_v23 = vld [vmem:[#allocation8 + $0x8] sm:$0xff] }
 0x298   : > { %2238 = vrot.lane.b32.xlu1 %v1604_v36, %s6634_s26  ;;  %v1676_v48 = vsel %vm1605_vm1, %v1604_v36, 0  ;;  %v1602_v12 = vpack.c.bf16 %v1480_v30, %v1479_v28  ;;  %v1301_v28 = vmul.f32 %v1285_v60, %v7621_v2  ;;  %v1295_v60 = vmul.f32 %v1279_v7, %v7601_v40 }
 0x299   : > { %1678 = vmatpush.bf16.xpose.msrb.mxu0 %v1676_v48 }
 0x29b   : > { %v1446_v14 = vpop.permute.xlu1 %1445  ;;  %v1430_v48 = vpop.permute.xlu0 %1429 }
 0x29c   : > { %v1481_v11 = vadd.f32 %v1446_v14, %v1305_v51  ;;  %v1025_v51 = vpop.f32.mrf.mxu0  ;;  %v1432_v27 = vpop.permute.xlu2 %1431  ;;  %v1670_v14 = vsel %vm1605_vm1, %v1602_v12, 0  ;;  %v1473_v30 = vadd.f32 %v1430_v48, %v1297_v24 }
 0x29e   : > { %v1603_v26 = vpack.c.bf16 %v1482_v52, %v1481_v11  ;;  %v1197_v52 = vld [vmem:[#allocation8] sm:$0xff]  ;;  %v1074_v11 = vpop.f32.mrf.mxu1 }
 0x29f   : > { %v1213_v13 = vmul.f32 %v1197_v52, %v7553_v53  ;;  %v1284_v53 = vld [vmem:[%s9664_s10 + $0x38] sm:$0xff] }
 0x2a0   : > { %2236 = vrot.lane.b32.xlu1 %v1603_v26, %s6634_s26  ;;  %v1673_v29 = vsel %vm1605_vm1, %v1603_v26, 0  ;;  %v1230_v26 = vld [vmem:[#allocation10 + $0x8] sm:$0xff]  ;;  %v1300_v52 = vmul.f32 %v1284_v53, %v7619_v18  ;;  %v7797_v53 = vpack.c.bf16 %v7551_v50, %v7549_v37  ;;  %v9718_v37 = vpack.i.bf16 %v7581_v35, %v7573_v20 }
 0x2a1   : > { %1679 = vmatpush.bf16.xpose.msrb.mxu0 %v1673_v29  ;;  %v1302_v29 = vmul.f32 %v1286_v19, %v7623_v9  ;;  %v1246_v42 = vmul.f32 %v1230_v26, %v7565_v61  ;;  %v1283_v9 = vld [vmem:[%s9664_s10 + $0x30] sm:$0xff]  ;;  %v9719_v50 = vpack.i.bf16 %v7589_v56, %v7587_v47 }
 0x2a2   : > { %v1203_v19 = vld [vmem:[#allocation8 + $0x30] sm:$0xff] }
 0x2a3   : > { %v1344_v36 = vpop.permute.xlu1 %1343  ;;  %v1478_v10 = vadd.f32 %v1440_v43, %v1302_v29  ;;  %v1236_v29 = vld [vmem:[#allocation10 + $0x38] sm:$0xff]  ;;  %v1219_v40 = vmul.f32 %v1203_v19, %v1025_v51  ;;  %v1582_v51 = vpack.c.bf16 %v7577_v57, %v7575_v39 }
 0x2a4   : > { %v1390_v17 = vmul.f32 %v1344_v36, %v7597_v62  ;;  %v1027_v24 = vpop.f32.mrf.mxu0 }
 0x2a6   : > { %1423 = vrot.lane.b32.xlu2 %v1390_v17, %s6633_s5  ;;  %v1474_v17 = vadd.f32 %v1432_v27, %v1298_v45  ;;  %v1299_v27 = vmul.f32 %v1283_v9, %v7617_v25  ;;  %v1204_v45 = vld [vmem:[#allocation8 + $0x38] sm:$0xff] }
 0x2a8   : > { %2234 = vrot.lane.b32.xlu1 %v1602_v12, %s6634_s26  ;;  %v1245_v12 = vmul.f32 %v1229_v33, %v7555_v54  ;;  %v1599_v2 = vpack.c.bf16 %v1474_v17, %v1473_v30  ;;  %v1280_v54 = vld [vmem:[%s9664_s10 + $0x18] sm:$0xff]  ;;  %v1428_v33 = vpop.permute.xlu2 %1427 }
 0x2a9   : > { %1680 = vmatpush.bf16.xpose.msrb.mxu0 %v1670_v14  ;;  %v1214_v14 = vmul.f32 %v1198_v23, %v7563_v22  ;;  %v1426_v22 = vpop.permute.xlu0 %1425  ;;  %v1235_v23 = vld [vmem:[#allocation10 + $0x30] sm:$0xff]  ;;  %v1296_v26 = vmul.f32 %v1280_v54, %v7605_v1 }
 0x2aa   : > { %v1261_v43 = vadd.f32 %v1245_v12, %v1213_v13  ;;  %v1471_v30 = vadd.f32 %v1426_v22, %v1295_v60  ;;  %v1220_v12 = vmul.f32 %v1204_v45, %v1027_v24  ;;  %v1201_v22 = vld [vmem:[#allocation8 + $0x20] sm:$0xff]  ;;  %v1202_v60 = vld [vmem:[#allocation8 + $0x28] sm:$0xff] }
 0x2ab   : > { %v1438_v36 = vpop.permute.xlu1 %1437  ;;  %v1262_v48 = vadd.f32 %v1246_v42, %v1214_v14  ;;  %v1475_v42 = vadd.f32 %v7732_v21, %v1299_v27  ;;  %v1217_v19 = vmul.f32 %v1201_v22, %v7709_v58  ;;  %v1218_v24 = vmul.f32 %v1202_v60, %v7729_v46  ;;  %v1278_v46 = vld [vmem:[%s9664_s10 + $0x8] sm:$0xff] }
 0x2ac   : > { %v1477_v4 = vadd.f32 %v1438_v36, %v1301_v28  ;;  %v1076_v28 = vpop.f32.mrf.mxu1 }
 0x2ad   : > { %v1581_v17 = vpack.c.bf16 %v1262_v48, %v1261_v43  ;;  %v1252_v25 = vmul.f32 %v1236_v29, %v1076_v28  ;;  %v5706_v9 = vpack.i.bf16 %v1262_v48, %v1261_v43  ;;  %v7806_v43 = vpack.c.bf16 %v7589_v56, %v7587_v47 }
 0x2ae   : > { %v1601_v8 = vpack.c.bf16 %v1478_v10, %v1477_v4  ;;  %v1472_v10 = vadd.f32 %v1428_v33, %v1296_v26  ;;  %v1251_v4 = vmul.f32 %v1235_v23, %v1074_v11  ;;  %v1661_v11 = vsel %vm1605_vm1, %v1599_v2, 0 }
 0x2af   : > { %v1268_v21 = vadd.f32 %v1252_v25, %v1220_v12  ;;  %v1294_v28 = vmul.f32 %v1278_v46, %v7597_v62  ;;  %v1586_v12 = vpack.c.bf16 %v7567_v49, %v7561_v44 }
 0x2b0   : > { %2232 = vrot.lane.b32.xlu0 %v1601_v8, %s6634_s26  ;;  %2228 = vrot.lane.b32.xlu1 %v1599_v2, %s6634_s26  ;;  %v1667_v61 = vsel %vm1605_vm1, %v1601_v8, 0  ;;  %v1598_v18 = vpack.c.bf16 %v1472_v10, %v1471_v30  ;;  %v1267_v7 = vadd.f32 %v1251_v4, %v1219_v40  ;;  %v1234_v2 = vld [vmem:[#allocation10 + $0x28] sm:$0xff] }
 0x2b1   : > { %1681 = vmatpush.bf16.xpose.msrb.mxu0 %v1667_v61  ;;  %v1233_v61 = vld [vmem:[#allocation10 + $0x20] sm:$0xff]  ;;  %v1250_v27 = vmul.f32 %v1234_v2, %v7734_v32 }
 0x2b2   : > { %v7787_v8 = vpack.c.bf16 %v1268_v21, %v1267_v7  ;;  %v1658_v54 = vsel %vm1605_vm1, %v1598_v18, 0  ;;  %v1249_v48 = vmul.f32 %v1233_v61, %v7711_v34  ;;  %v5721_v23 = vpack.i.bf16 %v1268_v21, %v1267_v7  ;;  %v1277_v34 = vld [vmem:[%s9664_s10] sm:$0xff] }
 0x2b3   : > { %v1436_v36 = vpop.permute.xlu1 %1435  ;;  %v1266_v33 = vadd.f32 %v1250_v27, %v1218_v24  ;;  %v1293_v45 = vmul.f32 %v1277_v34, %v7593_v0 }
 0x2b4   : > { %v1476_v13 = vadd.f32 %v1436_v36, %v1300_v52  ;;  %v7813_v52 = vpack.c.bf16 %v7581_v35, %v7573_v20  ;;  %v1265_v58 = vadd.f32 %v1249_v48, %v1217_v19 }
 0x2b6   : > { %v1600_v14 = vpack.c.bf16 %v1476_v13, %v1475_v42  ;;  %v5716_v26 = vpack.i.bf16 %v1266_v33, %v1265_v58  ;;  %v1583_v4 = vpack.c.bf16 %v1266_v33, %v1265_v58 }
 0x2b8   : > { %2230 = vrot.lane.b32.xlu2 %v1600_v14, %s6634_s26  ;;  %2184 = vrot.lane.b32.xlu1 %v1581_v17, %s6633_s5  ;;  %v1664_v1 = vsel %vm1605_vm1, %v1600_v14, 0 }
 0x2b9   : > { %2226 = vrot.lane.b32.xlu0 %v1598_v18, %s6634_s26  ;;  %1682 = vmatpush.bf16.xpose.msrb.mxu0 %v1664_v1 }
 0x2c0   : > { %2190 = vrot.lane.b32.xlu1 %v7787_v8, %s6633_s5 }
 0x2c1   : > { %2186 = vrot.lane.b32.xlu0 %v1582_v51, %s6633_s5  ;;  %1683 = vmatpush.bf16.xpose.msrb.mxu0 %v1661_v11 }
 0x2c8   : > { %5707 = vrot.lane.b32.xlu1 %v5706_v9, %s6634_s26 }
 0x2c9   : > { %2192 = vrot.lane.b32.xlu0 %v7797_v53, %s6633_s5  ;;  %1684 = vmatpush.bf16.xpose.msrb.mxu0 %v1658_v54 }
 0x2d0   : > { %2198 = vrot.lane.b32.xlu1 %v7806_v43, %s6633_s5 }
 0x2d1   : > { %2196 = vrot.lane.b32.xlu0 %v7813_v52, %s6633_s5 }
 0x2d8   : > { %5722 = vrot.lane.b32.xlu1 %v5721_v23, %s6634_s26 }
 0x2d9   : > { %5717 = vrot.lane.b32.xlu0 %v5716_v26, %s6634_s26 }
 0x2ef   : > { %v1422_v32 = vpop.permute.xlu0 %1421 }
 0x2f0   : > { %v1469_v30 = vadd.f32 %v1422_v32, %v1293_v45 }
 0x300   : > { %v1424_v29 = vpop.permute.xlu2 %1423 }
 0x301   : > { %v1470_v36 = vadd.f32 %v1424_v29, %v1294_v28 }
 0x303   : > { %v1597_v42 = vpack.c.bf16 %v1470_v36, %v1469_v30 }
 0x305   : > { %2224 = vrot.lane.b32.xlu2 %v1597_v42, %s6634_s26  ;;  %v1655_v13 = vsel %vm1605_vm1, %v1597_v42, 0 }
 0x306   : > { %1685 = vmatpush.bf16.xpose.msrb.mxu0 %v1655_v13 }
 0x30a   : > { %v2239_v40 = vpop.permute.xlu1 %2238 }
 0x30b   : > { %v2310_v10 = vsel %vm1605_vm1, %v2239_v40, 0 }
 0x30c   : > { %2312 = vmatpush.bf16.xpose.msra.mxu2 %v2310_v10 }
 0x30d   : > { %2188 = vrot.lane.b32.xlu2 %v1583_v4, %s6633_s5  ;;  %5122 = vmatmul.msk.bf16.vlgmr.msrb.gmra.mxu0 %vm1605_vm1, %v1581_v17 }
 0x312   : > { %v2237_v0 = vpop.permute.xlu1 %2236  ;;  %v2231_v7 = vpop.permute.xlu2 %2230 }
 0x313   : > { %v2307_v62 = vsel %vm1605_vm1, %v2237_v0, 0  ;;  %v2298_v9 = vsel %vm1605_vm1, %v2231_v7, 0 }
 0x314   : > { %2313 = vmatpush.bf16.xpose.msra.mxu2 %v2307_v62 }
 0x315   : > { %2194 = vrot.lane.b32.xlu2 %v1586_v12, %s6633_s5 }
 0x31a   : > { %v2235_v25 = vpop.permute.xlu1 %2234 }
 0x31b   : > { %v2304_v14 = vsel %vm1605_vm1, %v2235_v25, 0 }
 0x31c   : > { %2314 = vmatpush.bf16.xpose.msra.mxu2 %v2304_v14 }
 0x31d   : > { %5712 = vrot.lane.b32.xlu2 %v5711_v15, %s6634_s26  ;;  %5123 = vmatmul.msk.bf16.gmra.mxu0 %vm1605_vm1, %v1582_v51 }
 0x322   : > { %v2233_v17 = vpop.permute.xlu0 %2232  ;;  %v2229_v18 = vpop.permute.xlu1 %2228 }
 0x323   : > { %v2301_v1 = vsel %vm1605_vm1, %v2233_v17, 0  ;;  %v2295_v39 = vsel %vm1605_vm1, %v2229_v18, 0 }
 0x324   : > { %2315 = vmatpush.bf16.xpose.msra.mxu2 %v2301_v1 }
 0x32a   : > { %v2185_v21 = vpop.permute.xlu1 %2184 }
 0x32b   : > { %v2227_v11 = vpop.permute.xlu0 %2226 }
 0x32c   : > { %2316 = vmatpush.bf16.xpose.msra.mxu2 %v2298_v9  ;;  %v2292_v60 = vsel %vm1605_vm1, %v2227_v11, 0  ;;  %v7917_v11 = vld [vmem:[#allocation5 + $0x8] sm:$0xff] }
 0x32d   : > { %5124 = vmatmul.msk.bf16.gmra.mxu0 %vm1605_vm1, %v1583_v4 }
 0x332   : > { %v2191_v54 = vpop.permute.xlu1 %2190 }
 0x333   : > { %v2187_v22 = vpop.permute.xlu0 %2186 }
 0x334   : > { %2317 = vmatpush.bf16.xpose.msra.mxu2 %v2295_v39 }
 0x33a   : > { %v5708_v57 = vpop.permute.xlu1 %5707 }
 0x33b   : > { %v5710_v15 = vunpack.i.h.bf16 %v5708_v57  ;;  %v5709_v51 = vunpack.i.l.bf16 %v5708_v57  ;;  %v2193_v61 = vpop.permute.xlu0 %2192 }
 0x33c   : > { %2318 = vmatpush.bf16.xpose.msra.mxu2 %v2292_v60 }
 0x33d   : > { %5125 = vmatmul.msk.bf16.gmra.mxu0 %vm1605_vm1, %v7787_v8  ;;  %v1589_v2 = vpack.c.bf16 %v5710_v15, %v5709_v51  ;;  %v7932_v51 = vld [vmem:[#allocation5 + $0x58] sm:$0xff] }
 0x33f   : > { %2200 = vrot.lane.b32.xlu2 %v1589_v2, %s6633_s5 }
 0x342   : > { %v7852_v19 = vpop.permute.xlu1 %2198 }
 0x343   : > { %v7854_v48 = vpop.permute.xlu0 %2196 }
 0x347   : > { %5727 = vrot.lane.b32.xlu2 %v5726_v38, %s6634_s26 }
 0x34a   : > { %v5723_v24 = vpop.permute.xlu1 %5722 }
 0x34b   : > { %v5725_v27 = vunpack.i.h.bf16 %v5723_v24  ;;  %v5724_v58 = vunpack.i.l.bf16 %v5723_v24  ;;  %v5718_v33 = vpop.permute.xlu0 %5717 }
 0x34c   : > { %v5720_v23 = vunpack.i.h.bf16 %v5718_v33  ;;  %v5719_v26 = vunpack.i.l.bf16 %v5718_v33 }
 0x34d   : > { %5126 = vmatmul.msk.bf16.gmra.mxu0 %vm1605_vm1, %v7797_v53  ;;  %v1592_v8 = vpack.c.bf16 %v5725_v27, %v5724_v58  ;;  %v7945_v58 = vld [vmem:[#allocation5 + $0x70] sm:$0xff] }
 0x34e   : > { %v1591_v34 = vpack.c.bf16 %v5720_v23, %v5719_v26  ;;  %v7949_v23 = vld [vmem:[#allocation5 + $0x28] sm:$0xff] }
 0x34f   : > { %2206 = vrot.lane.b32.xlu2 %v1592_v8, %s6633_s5 }
 0x350   : > { %2204 = vrot.lane.b32.xlu1 %v1591_v34, %s6633_s5 }
 0x357   : > { %5737 = vrot.lane.b32.xlu2 %v9718_v37, %s6634_s26  ;;  %v7961_v37 = vld [vmem:[#allocation5 + $0x30] sm:$0xff] }
 0x358   : > { %5742 = vrot.lane.b32.xlu1 %v9719_v50, %s6634_s26  ;;  %v1485_v50 = vld [vmem:[#allocation5] sm:$0xff] }
 0x35d   : > { %5127 = vmatmul.msk.bf16.gmra.mxu0 %vm1605_vm1, %v1586_v12 }
 0x35f   : > { %v2225_v38 = vpop.permute.xlu2 %2224 }
 0x360   : > { %2725 = vrot.lane.b32.xlu1 %v7651_v41, %s6634_s26  ;;  %v2289_v53 = vsel %vm1605_vm1, %v2225_v38, 0  ;;  %v9720_v41 = vpack.i.bf16 %v7567_v49, %v7561_v44 }
 0x361   : > { %2319 = vmatpush.bf16.xpose.msra.mxu2 %v2289_v53 }
 0x367   : > { %v2189_v46 = vpop.permute.xlu2 %2188 }
 0x368   : > { %5138 = vmatmul.msk.bf16.vlgmr.msra.gmra.mxu2 %vm1605_vm1, %v2185_v21 }
 0x36d   : > { %5128 = vmatmul.msk.bf16.gmra.mxu0 %vm1605_vm1, %v7813_v52 }
 0x36f   : > { %v2195_v20 = vpop.permute.xlu2 %2194 }
 0x377   : > { %v5713_v35 = vpop.permute.xlu2 %5712 }
 0x378   : > { %v5715_v32 = vunpack.i.h.bf16 %v5713_v35  ;;  %v5714_v47 = vunpack.i.l.bf16 %v5713_v35  ;;  %5139 = vmatmul.msk.bf16.gmra.mxu2 %vm1605_vm1, %v2187_v22  ;;  %v7926_v22 = vld [vmem:[#allocation5 + $0x20] sm:$0xff] }
 0x37a   : > { %v1590_v56 = vpack.c.bf16 %v5715_v32, %v5714_v47  ;;  %v7993_v32 = vld [vmem:[#allocation5 + $0x50] sm:$0xff] }
 0x37c   : > { %2202 = vrot.lane.b32.xlu0 %v1590_v56, %s6633_s5 }
 0x37d   : > { %5129 = vmatmul.msk.bf16.gmra.mxu0 %vm1605_vm1, %v7806_v43 }
 0x384   : > { %5732 = vrot.lane.b32.xlu0 %v9720_v41, %s6634_s26  ;;  %v7999_v41 = vld [vmem:[#allocation5 + $0x68] sm:$0xff] }
 0x388   : > { %5140 = vmatmul.msk.bf16.gmra.mxu2 %vm1605_vm1, %v2189_v46 }
 0x38a   : > { %v7888_v52 = vpop.f32.mrf.mxu0 }
 0x38d   : > { %5130 = vmatmul.msk.bf16.gmra.mxu0 %vm1605_vm1, %v1589_v2 }
 0x392   : > { %v1689_v45 = vpop.f32.mrf.mxu0 }
 0x393   : > { %v7920_v9 = vadd.f32 %v1689_v45, %v7917_v11 }
 0x398   : > { %5141 = vmatmul.msk.bf16.gmra.mxu2 %vm1605_vm1, %v2191_v54 }
 0x399   : > { %v2201_v28 = vpop.permute.xlu2 %2200 }
 0x39a   : > { %v7892_v29 = vpop.f32.mrf.mxu0 }
 0x39d   : > { %5131 = vmatmul.msk.bf16.gmra.mxu0 %vm1605_vm1, %v1590_v56 }
 0x3a1   : > { %v5728_v43 = vpop.permute.xlu2 %5727 }
 0x3a2   : > { %v5730_v30 = vunpack.i.h.bf16 %v5728_v43  ;;  %v5729_v36 = vunpack.i.l.bf16 %v5728_v43  ;;  %v1694_v42 = vpop.f32.mrf.mxu0 }
 0x3a4   : > { %v1593_v44 = vpack.c.bf16 %v5730_v30, %v5729_v36  ;;  %v8013_v36 = vadd.f32 %v7888_v52, %v1485_v50 }
 0x3a6   : > { %2208 = vrot.lane.b32.xlu0 %v1593_v44, %s6633_s5 }
 0x3a8   : > { %5142 = vmatmul.msk.bf16.gmra.mxu2 %vm1605_vm1, %v2193_v61  ;;  %v7934_v61 = vld [vmem:[#allocation5 + $0x18] sm:$0xff] }
 0x3a9   : > { %v7897_v49 = vpop.permute.xlu2 %2206  ;;  %v7940_v24 = vadd.f32 %v1694_v42, %v7934_v61 }
 0x3aa   : > { %v1697_v13 = vpop.f32.mrf.mxu0 }
 0x3ab   : > { %v7929_v39 = vadd.f32 %v1697_v13, %v7926_v22 }
 0x3ad   : > { %5132 = vmatmul.msk.bf16.gmra.mxu0 %vm1605_vm1, %v1591_v34 }
 0x3ae   : > { %2727 = vrot.lane.b32.xlu0 %v7644_v6, %s6634_s26 }
 0x3b1   : > { %v5738_v40 = vpop.permute.xlu2 %5737 }
 0x3b2   : > { %v5740_v10 = vunpack.i.h.bf16 %v5738_v40  ;;  %v5739_v4 = vunpack.i.l.bf16 %v5738_v40  ;;  %v1699_v0 = vpop.f32.mrf.mxu0 }
 0x3b4   : > { %v1595_v62 = vpack.c.bf16 %v5740_v10, %v5739_v4  ;;  %v1494_v10 = vld [vmem:[#allocation5 + $0x48] sm:$0xff] }
 0x3b6   : > { %2212 = vrot.lane.b32.xlu1 %v1595_v62, %s6633_s5  ;;  %2717 = vrot.lane.b32.xlu0 %v7679_v5, %s6634_s26 }
 0x3b8   : > { %5143 = vmatmul.msk.bf16.gmra.mxu2 %vm1605_vm1, %v2195_v20  ;;  %v7982_v20 = vld [vmem:[#allocation5 + $0x40] sm:$0xff] }
 0x3ba   : > { %v1702_v12 = vpop.f32.mrf.mxu0 }
 0x3bb   : > { %v7966_v53 = vadd.f32 %v1702_v12, %v7961_v37 }
 0x3bd   : > { %5133 = vmatmul.msk.bf16.gmra.mxu0 %vm1605_vm1, %v1592_v8  ;;  %v7955_v8 = vadd.f32 %v1699_v0, %v7949_v23 }
 0x3be   : > { %2713 = vrot.lane.b32.xlu1 %v7693_v63, %s6634_s26 }
 0x3c2   : > { %v2205_v25 = vpop.permute.xlu1 %2204  ;;  %v1704_v6 = vpop.f32.mrf.mxu0 }
 0x3c8   : > { %5144 = vmatmul.msk.bf16.gmra.mxu2 %vm1605_vm1, %v7854_v48 }
 0x3ca   : > { %v5743_v14 = vpop.permute.xlu1 %5742  ;;  %v1707_v17 = vpop.f32.mrf.mxu0 }
 0x3cb   : > { %v5745_v18 = vunpack.i.h.bf16 %v5743_v14  ;;  %v5744_v1 = vunpack.i.l.bf16 %v5743_v14  ;;  %v7985_v35 = vadd.f32 %v1707_v17, %v7982_v20 }
 0x3cd   : > { %5134 = vmatmul.msk.bf16.gmra.mxu0 %vm1605_vm1, %v1593_v44  ;;  %v1596_v5 = vpack.c.bf16 %v5745_v18, %v5744_v1  ;;  %v8018_v44 = vld [vmem:[#allocation5 + $0x10] sm:$0xff] }
 0x3ce   : > { %v8022_v13 = vadd.f32 %v7892_v29, %v8018_v44 }
 0x3cf   : > { %2214 = vrot.lane.b32.xlu0 %v1596_v5, %s6633_s5 }
 0x3d2   : > { %v7913_v7 = vpop.f32.mrf.mxu0  ;;  %v2726_v56 = vpop.permute.xlu1 %2725 }
 0x3d3   : > { %v8026_v4 = vadd.f32 %v7913_v7, %v1494_v10 }
 0x3d8   : > { %5145 = vmatmul.msk.bf16.gmra.mxu2 %vm1605_vm1, %v7852_v19 }
 0x3da   : > { %v1712_v63 = vpop.f32.mrf.mxu0 }
 0x3e2   : > { %v1714_v21 = vpop.f32.mrf.mxu0 }
 0x3e3   : > { %v7937_v2 = vadd.f32 %v1714_v21, %v7932_v51 }
 0x3e8   : > { %5146 = vmatmul.msk.bf16.gmra.mxu2 %vm1605_vm1, %v2201_v28  ;;  %1769 = vmax.xlane.f32.xlu1 %v7920_v9 }
 0x3ea   : > { %v7924_v54 = vpop.f32.mrf.mxu0 }
 0x3eb   : > { %v2321_v34 = vpop.f32.mrf.mxu2 }
 0x3ec   : > { %v7963_v38 = vadd.f32 %v2321_v34, %v1485_v50 }
 0x3ee   : > { %v2203_v57 = vpop.permute.xlu0 %2202 }
 0x3f0   : > { %1775 = vmax.xlane.f32.xlu1 %v7929_v39 }
 0x3f2   : > { %v1719_v15 = vpop.f32.mrf.mxu0 }
 0x3f3   : > { %v2323_v45 = vpop.f32.mrf.mxu2  ;;  %v8002_v28 = vadd.f32 %v1719_v15, %v7999_v41 }
 0x3f4   : > { %v8009_v43 = vadd.f32 %v2323_v45, %v7917_v11 }
 0x3f6   : > { %v5733_v60 = vpop.permute.xlu0 %5732 }
 0x3f7   : > { %v5735_v19 = vunpack.i.h.bf16 %v5733_v60  ;;  %v5734_v48 = vunpack.i.l.bf16 %v5733_v60 }
 0x3f8   : > { %1789 = vmax.xlane.f32.xlu1 %v7937_v2  ;;  %5147 = vmatmul.msk.bf16.gmra.mxu2 %vm1605_vm1, %v2203_v57 }
 0x3f9   : > { %1773 = vmax.xlane.f32.xlu0 %v7940_v24  ;;  %v1594_v27 = vpack.c.bf16 %v5735_v19, %v5734_v48 }
 0x3fa   : > { %v1722_v33 = vpop.f32.mrf.mxu0 }
 0x3fb   : > { %2210 = vrot.lane.b32.xlu2 %v1594_v27, %s6633_s5  ;;  %5135 = vmatmul.msk.bf16.gmra.mxu0 %vm1605_vm1, %v1594_v27  ;;  %v7952_v26 = vadd.f32 %v1722_v33, %v7945_v58 }
 0x400   : > { %1795 = vmax.xlane.f32.xlu1 %v7952_v26 }
 0x401   : > { %1777 = vmax.xlane.f32.xlu0 %v7955_v8 }
 0x403   : > { %2723 = vrot.lane.b32.xlu2 %v7655_v59, %s6634_s26  ;;  %v7974_v59 = vld [vmem:[#allocation5 + $0x38] sm:$0xff] }
 0x404   : > { %v7977_v46 = vadd.f32 %v1704_v6, %v7974_v59 }
 0x408   : > { %2401 = vmax.xlane.f32.xlu1 %v7963_v38  ;;  %5148 = vmatmul.msk.bf16.gmra.mxu2 %vm1605_vm1, %v2205_v25 }
 0x409   : > { %1779 = vmax.xlane.f32.xlu0 %v7966_v53 }
 0x40b   : > { %2721 = vrot.lane.b32.xlu2 %v7663_v55, %s6634_s26  ;;  %5136 = vmatmul.msk.bf16.gmra.mxu0 %vm1605_vm1, %v1595_v62  ;;  %v8030_v62 = vld [vmem:[#allocation5 + $0x60] sm:$0xff] }
 0x40c   : > { %v8036_v29 = vadd.f32 %v7924_v54, %v8030_v62 }
 0x411   : > { %1781 = vmax.xlane.f32.xlu0 %v7977_v46 }
 0x413   : > { %2719 = vrot.lane.b32.xlu2 %v7667_v16, %s6634_s26  ;;  %v7996_v16 = vadd.f32 %v1712_v63, %v7993_v32 }
 0x418   : > { %5149 = vmatmul.msk.bf16.gmra.mxu2 %vm1605_vm1, %v7897_v49  ;;  %v2209_v55 = vpop.permute.xlu0 %2208 }
 0x419   : > { %1783 = vmax.xlane.f32.xlu0 %v7985_v35 }
 0x41b   : > { %2715 = vrot.lane.b32.xlu2 %v7685_v3, %s6634_s26  ;;  %5137 = vmatmul.msk.bf16.gmra.mxu0 %vm1605_vm1, %v1596_v5  ;;  %v8006_v3 = vpop.f32.mrf.mxu2 }
 0x420   : > { %v2728_v47 = vpop.permute.xlu0 %2727 }
 0x421   : > { %1787 = vmax.xlane.f32.xlu0 %v7996_v16  ;;  %2737 = vmatpush.bf16.msra.mxu3 %v2728_v47 }
 0x423   : > { %v2328_v30 = vpop.f32.mrf.mxu2 }
 0x424   : > { %v8044_v18 = vadd.f32 %v2328_v30, %v7934_v61 }
 0x425   : > { %2738 = vmatpush.bf16.msra.mxu3 %v2726_v56 }
 0x428   : > { %5150 = vmatmul.msk.bf16.gmra.mxu2 %vm1605_vm1, %v2209_v55  ;;  %v2213_v49 = vpop.permute.xlu1 %2212  ;;  %v2718_v6 = vpop.permute.xlu0 %2717 }
 0x429   : > { %1793 = vmax.xlane.f32.xlu0 %v8002_v28 }
 0x42b   : > { %v8015_v42 = vpop.f32.mrf.mxu2 }
 0x430   : > { %v2714_v52 = vpop.permute.xlu1 %2713 }
 0x431   : > { %2403 = vmax.xlane.f32.xlu0 %v8009_v43 }
 0x433   : > { %v2333_v40 = vpop.f32.mrf.mxu2 }
 0x434   : > { %v8059_v19 = vadd.f32 %v2333_v40, %v7949_v23 }
 0x43b   : > { %v8032_v12 = vpop.f32.mrf.mxu2 }
 0x441   : > { %v2215_v5 = vpop.permute.xlu0 %2214 }
 0x443   : > { %v8041_v17 = vpop.f32.mrf.mxu2 }
 0x444   : > { %1767 = vmax.xlane.f32.xlu2 %v8013_v36 }
 0x44b   : > { %v8049_v11 = vpop.f32.mrf.mxu2 }
 0x44c   : > { %1771 = vmax.xlane.f32.xlu2 %v8022_v13 }
 0x453   : > { %v2343_v61 = vpop.f32.mrf.mxu2 }
 0x454   : > { %1785 = vmax.xlane.f32.xlu2 %v8026_v4  ;;  %v8075_v30 = vadd.f32 %v2343_v61, %v1494_v10 }
 0x455   : > { %v2211_v0 = vpop.permute.xlu2 %2210 }
 0x456   : > { %5151 = vmatmul.msk.bf16.gmra.mxu2 %vm1605_vm1, %v2211_v0 }
 0x45b   : > { %v8038_v25 = vpop.xlane.xlu1 %1769  ;;  %v2346_v27 = vpop.f32.mrf.mxu2 }
 0x45c   : > { %1791 = vmax.xlane.f32.xlu2 %v8036_v29  ;;  %v8081_v40 = vadd.f32 %v2346_v27, %v7993_v32  ;;  %v1832_v61 = vsub.f32 %v7920_v9, %v8038_v25  ;;  %v8106_v27 = vld [vmem:[#allocation5 + $0x80] sm:$0xff] }
 0x45d   : > { %v2724_v14 = vpop.permute.xlu2 %2723 }
 0x45e   : > { %2739 = vmatpush.bf16.msra.mxu3 %v2724_v14 }
 0x463   : > { %v1776_v1 = vpop.xlane.xlu1 %1775  ;;  %v8066_v55 = vpop.f32.mrf.mxu2 }
 0x464   : > { %v1835_v7 = vsub.f32 %v7929_v39, %v1776_v1  ;;  %2407 = vmax.xlane.f32.xlu2 %v8044_v18 }
 0x465   : > { %v2722_v63 = vpop.permute.xlu2 %2721 }
 0x466   : > { %v1871_v21 = vmul.f32 1.442695, %v1835_v7  ;;  %5152 = vmatmul.msk.bf16.gmra.mxu2 %vm1605_vm1, %v2213_v49  ;;  %2740 = vmatpush.bf16.msra.mxu3 %v2722_v63  ;;  %v8096_v7 = vld [vmem:[#allocation5 + $0x78] sm:$0xff] }
 0x468   : > { %5902 = vpow2.f32 %v1871_v21 }
 0x46b   : > { %v8073_v56 = vpop.f32.mrf.mxu2 }
 0x46c   : > { %v8051_v54 = vpop.xlane.xlu0 %1773 }
 0x46d   : > { %v2720_v57 = vpop.permute.xlu2 %2719 }
 0x46e   : > { %v8053_v15 = vpop.eup %5902  ;;  %2741 = vmatpush.bf16.msra.mxu3 %v2720_v57 }
 0x46f   : > { %1935 = vadd.xlane.f32.xlu2 %v8053_v15 }
 0x472   : > { %2742 = vmatpush.bf16.msra.mxu3 %v2718_v6 }
 0x474   : > { %v8056_v39 = vpop.xlane.xlu0 %1777 }
 0x475   : > { %v2716_v60 = vpop.permute.xlu2 %2715  ;;  %v1836_v9 = vsub.f32 %v7955_v8, %v8056_v39 }
 0x476   : > { %5153 = vmatmul.msk.bf16.gmra.mxu2 %vm1605_vm1, %v2215_v5  ;;  %2743 = vmatpush.bf16.msra.mxu3 %v2716_v60  ;;  %v1724_v5 = vpop.f32.mrf.mxu0 }
 0x477   : > { %2411 = vmax.xlane.f32.xlu2 %v8059_v19 }
 0x47a   : > { %2744 = vmatpush.bf16.msra.mxu3 %v2714_v52 }
 0x47c   : > { %v8063_v48 = vpop.xlane.xlu0 %1779 }
 0x484   : > { %v1782_v33 = vpop.xlane.xlu0 %1781 }
 0x485   : > { %v1838_v34 = vsub.f32 %v7977_v46, %v1782_v33  ;;  %v2353_v46 = vpop.f32.mrf.mxu2 }
 0x486   : > { %v8086_v6 = vadd.f32 %v2353_v46, %v7999_v41 }
 0x487   : > { %v1877_v50 = vmul.f32 1.442695, %v1838_v34 }
 0x489   : > { %5904 = vpow2.f32 %v1877_v50  ;;  %v1865_v50 = vmul.f32 1.442695, %v1832_v61  ;;  %v8159_v61 = vadd.f32 %v8049_v11, %v7982_v20  ;;  %v8173_v20 = vadd.f32 %v8066_v55, %v7932_v51 }
 0x48c   : > { %v8068_v47 = vpop.xlane.xlu0 %1783 }
 0x48d   : > { %v8088_v14 = vpop.f32.mrf.mxu2 }
 0x48e   : > { %v8183_v51 = vadd.f32 %v8088_v14, %v7945_v58  ;;  %v8198_v58 = vadd.f32 %v8073_v56, %v8030_v62 }
 0x48f   : > { %v8070_v23 = vpop.eup %5904 }
 0x490   : > { %1941 = vadd.xlane.f32.xlu2 %v8070_v23 }
 0x494   : > { %v1788_v45 = vpop.xlane.xlu0 %1787 }
 0x495   : > { %v8094_v32 = vpop.f32.mrf.mxu2  ;;  %v1841_v21 = vsub.f32 %v7996_v16, %v1788_v45 }
 0x497   : > { %v1883_v33 = vmul.f32 1.442695, %v1841_v21  ;;  %v8141_v21 = vpop.xlane.xlu1 %1789 }
 0x498   : > { %2419 = vmax.xlane.f32.xlu2 %v8075_v30 }
 0x49c   : > { %v8078_v49 = vpop.xlane.xlu0 %1793 }
 0x49d   : > { %v2361_v60 = vpop.f32.mrf.mxu2  ;;  %v1844_v62 = vsub.f32 %v8002_v28, %v8078_v49 }
 0x49e   : > { %v8109_v34 = vadd.f32 %v2361_v60, %v8106_v27 }
 0x4a0   : > { %2421 = vmax.xlane.f32.xlu2 %v8081_v40 }
 0x4a4   : > { %v2404_v52 = vpop.xlane.xlu0 %2403 }
 0x4a5   : > { %v2466_v0 = vsub.f32 %v8009_v43, %v2404_v52  ;;  %v8099_v43 = vadd.f32 %v1724_v5, %v8096_v7  ;;  %v1834_v5 = vsub.f32 %v7940_v24, %v8051_v54  ;;  %v8145_v24 = vadd.f32 %v8041_v17, %v7974_v59  ;;  %v2363_v17 = vpop.f32.mrf.mxu2 }
 0x4a6   : > { %v1837_v59 = vsub.f32 %v7966_v53, %v8063_v48  ;;  %v1727_v48 = vpop.f32.mrf.mxu0 }
 0x4a7   : > { %v2499_v10 = vmul.f32 1.442695, %v2466_v0  ;;  %v1873_v0 = vmul.f32 1.442695, %v1836_v9  ;;  %v1869_v8 = vmul.f32 1.442695, %v1834_v5 }
 0x4a8   : > { %2427 = vmax.xlane.f32.xlu2 %v8086_v6 }
 0x4a9   : > { %5906 = vpow2.f32 %v2499_v10 }
 0x4ae   : > { %v8194_v55 = vpop.f32.mrf.mxu0 }
 0x4af   : > { %v8091_v1 = vpop.eup %5906 }
 0x4b0   : > { %2563 = vadd.xlane.f32.xlu2 %v8091_v1 }
 0x4b7   : > { %v1768_v41 = vpop.xlane.xlu2 %1767 }
 0x4b8   : > { %1797 = vmax.xlane.f32.xlu2 %v8099_v43  ;;  %v1831_v63 = vsub.f32 %v8013_v36, %v1768_v41  ;;  %v8135_v41 = vadd.f32 %v8006_v3, %v8018_v44  ;;  %v8151_v3 = vpop.xlane.xlu1 %1795  ;;  %v8155_v44 = vadd.f32 %v8015_v42, %v7926_v22 }
 0x4ba   : > { %v1863_v57 = vmul.f32 1.442695, %v1831_v63 }
 0x4bc   : > { %5908 = vpow2.f32 %v1863_v57 }
 0x4bd   : > { %5910 = vpow2.f32 %v1883_v33  ;;  %v1875_v33 = vmul.f32 1.442695, %v1837_v59  ;;  %v8215_v59 = vld [vmem:[#allocation5 + $0x90] sm:$0xff] }
 0x4be   : > { %5912 = vpow2.f32 %v1865_v50  ;;  %v8169_v50 = vadd.f32 %v8032_v12, %v7961_v37 }
 0x4bf   : > { %v1772_v46 = vpop.xlane.xlu2 %1771 }
 0x4c0   : > { %2433 = vmax.xlane.f32.xlu2 %v8109_v34  ;;  %v1833_v36 = vsub.f32 %v8022_v13, %v1772_v46  ;;  %v2402_v22 = vpop.xlane.xlu1 %2401 }
 0x4c1   : > { %v2465_v53 = vsub.f32 %v7963_v38, %v2402_v22  ;;  %v1839_v38 = vsub.f32 %v7985_v35, %v8068_v47 }
 0x4c2   : > { %v8113_v16 = vpop.eup %5908  ;;  %v1867_v45 = vmul.f32 1.442695, %v1833_v36  ;;  %v8179_v36 = vpop.f32.mrf.mxu2 }
 0x4c3   : > { %1927 = vadd.xlane.f32.xlu1 %v8113_v16  ;;  %v8118_v25 = vpop.eup %5910  ;;  %v2497_v37 = vmul.f32 1.442695, %v2465_v53  ;;  %v8244_v53 = vadd.f32 %v1727_v48, %v8106_v27 }
 0x4c4   : > { %5914 = vpow2.f32 %v1867_v45  ;;  %v8123_v10 = vpop.eup %5912  ;;  %v1879_v45 = vmul.f32 1.442695, %v1839_v38 }
 0x4c5   : > { %5916 = vpow2.f32 %v1873_v0  ;;  %v8202_v0 = vld [vmem:[#allocation5 + $0x98] sm:$0xff] }
 0x4c6   : > { %5918 = vpow2.f32 %v1869_v8 }
 0x4c7   : > { %v8120_v52 = vpop.xlane.xlu2 %1785  ;;  %5920 = vpow2.f32 %v1875_v33 }
 0x4c8   : > { %1947 = vadd.xlane.f32.xlu2 %v8118_v25  ;;  %v1840_v5 = vsub.f32 %v8026_v4, %v8120_v52  ;;  %v1732_v4 = vpop.f32.mrf.mxu0  ;;  %v8219_v52 = vadd.f32 %v8094_v32, %v8096_v7  ;;  %v1502_v7 = vld [vmem:[#allocation5 + $0x88] sm:$0xff] }
 0x4c9   : > { %v8238_v22 = vadd.f32 %v2363_v17, %v1502_v7 }
 0x4ca   : > { %v8125_v13 = vpop.eup %5914  ;;  %v2368_v14 = vpop.f32.mrf.mxu2  ;;  %v1881_v56 = vmul.f32 1.442695, %v1840_v5 }
 0x4cb   : > { %1929 = vadd.xlane.f32.xlu1 %v8123_v10  ;;  %1931 = vadd.xlane.f32.xlu0 %v8125_v13  ;;  %v8137_v63 = vpop.eup %5916  ;;  %v8210_v47 = vadd.f32 %v2368_v14, %v8202_v0 }
 0x4cc   : > { %v8147_v54 = vpop.eup %5918 }
 0x4cd   : > { %v8185_v12 = vpop.eup %5920 }
 0x4cf   : > { %v8131_v39 = vpop.xlane.xlu2 %1791 }
 0x4d3   : > { %2405 = vmax.xlane.f32.xlu1 %v8135_v41  ;;  %1937 = vadd.xlane.f32.xlu0 %v8137_v63 }
 0x4d7   : > { %v2408_v57 = vpop.xlane.xlu2 %2407 }
 0x4d8   : > { %v2468_v35 = vsub.f32 %v8044_v18, %v2408_v57  ;;  %v1889_v18 = vmul.f32 1.442695, %v1844_v62  ;;  %v8226_v57 = vadd.f32 %v1732_v4, %v8215_v59 }
 0x4da   : > { %v2503_v8 = vmul.f32 1.442695, %v2468_v35 }
 0x4db   : > { %1933 = vadd.xlane.f32.xlu1 %v8147_v54  ;;  %2415 = vmax.xlane.f32.xlu0 %v8145_v24 }
 0x4e2   : > { %v8161_v60 = vpop.xlane.xlu2 %1935 }
 0x4e3   : > { %2409 = vmax.xlane.f32.xlu1 %v8155_v44  ;;  %2417 = vmax.xlane.f32.xlu0 %v8159_v61 }
 0x4ea   : > { %v2412_v42 = vpop.xlane.xlu2 %2411 }
 0x4eb   : > { %v2470_v11 = vsub.f32 %v8059_v19, %v2412_v42  ;;  %2413 = vmax.xlane.f32.xlu1 %v8169_v50  ;;  %2423 = vmax.xlane.f32.xlu0 %v8173_v20  ;;  %v1842_v42 = vsub.f32 %v7937_v2, %v8141_v21 }
 0x4ed   : > { %v2507_v46 = vmul.f32 1.442695, %v2470_v11  ;;  %v1885_v11 = vmul.f32 1.442695, %v1842_v42 }
 0x4ef   : > { %5922 = vpow2.f32 %v2507_v46 }
 0x4f0   : > { %5924 = vpow2.f32 %v2497_v37 }
 0x4f1   : > { %5926 = vpow2.f32 %v1879_v45 }
 0x4f2   : > { %5928 = vpow2.f32 %v1881_v56 }
 0x4f3   : > { %1939 = vadd.xlane.f32.xlu1 %v8185_v12  ;;  %2429 = vmax.xlane.f32.xlu0 %v8183_v51  ;;  %5930 = vpow2.f32 %v2503_v8 }
 0x4f4   : > { %5932 = vpow2.f32 %v1889_v18 }
 0x4f5   : > { %v8191_v19 = vpop.eup %5922  ;;  %5934 = vpow2.f32 %v1885_v11  ;;  %v8259_v11 = vpop.f32.mrf.mxu0 }
 0x4f6   : > { %2571 = vadd.xlane.f32.xlu2 %v8191_v19  ;;  %v8200_v9 = vpop.eup %5924 }
 0x4f7   : > { %v8221_v33 = vpop.eup %5926 }
 0x4f8   : > { %v8229_v28 = vpop.eup %5928 }
 0x4f9   : > { %v8231_v49 = vpop.eup %5930 }
 0x4fa   : > { %v8235_v32 = vpop.eup %5932 }
 0x4fb   : > { %2425 = vmax.xlane.f32.xlu1 %v8198_v58  ;;  %2561 = vadd.xlane.f32.xlu0 %v8200_v9  ;;  %v8247_v46 = vpop.eup %5934 }
 0x4fe   : > { %2439 = vmax.xlane.f32.xlu2 %v8210_v47 }
 0x503   : > { %2431 = vmax.xlane.f32.xlu1 %v8219_v52  ;;  %1943 = vadd.xlane.f32.xlu0 %v8221_v33  ;;  %v8250_v45 = vpop.xlane.xlu2 %1941 }
 0x506   : > { %1803 = vmax.xlane.f32.xlu2 %v8226_v57 }
 0x50b   : > { %1945 = vadd.xlane.f32.xlu1 %v8229_v28  ;;  %2567 = vadd.xlane.f32.xlu0 %v8231_v49  ;;  %v8255_v8 = vpop.xlane.xlu2 %2419 }
 0x50e   : > { %1953 = vadd.xlane.f32.xlu2 %v8235_v32 }
 0x513   : > { %2435 = vmax.xlane.f32.xlu0 %v8238_v22 }
 0x51b   : > { %1799 = vmax.xlane.f32.xlu0 %v8244_v53 }
 0x523   : > { %1949 = vadd.xlane.f32.xlu0 %v8247_v46 }
 0x536   : > { %v1928_v37 = vpop.xlane.xlu1 %1927 }
 0x537   : > { %5936 = vrcp.f32 %v1928_v37  ;;  %v8262_v37 = vpop.xlane.xlu2 %2421 }
 0x53d   : > { %v5937_v14 = vpop.eup %5936 }
 0x53e   : > { %v1930_v17 = vpop.xlane.xlu1 %1929  ;;  %v1932_v38 = vpop.xlane.xlu0 %1931  ;;  %v2023_v27 = vmul.f32 %v5937_v14, %v8113_v16 }
 0x53f   : > { %5938 = vrcp.f32 %v1930_v17 }
 0x545   : > { %v5939_v2 = vpop.eup %5938 }
 0x546   : > { %v2406_v21 = vpop.xlane.xlu1 %2405  ;;  %v1938_v5 = vpop.xlane.xlu0 %1937  ;;  %v2024_v48 = vmul.f32 %v5939_v2, %v8123_v10 }
 0x547   : > { %v2467_v35 = vsub.f32 %v8135_v41, %v2406_v21 }
 0x548   : > { %v2055_v62 = vpack.c.bf16 %v2024_v48, %v2023_v27  ;;  %v8269_v48 = vadd.f32 %v8194_v55, %v1502_v7 }
 0x549   : > { %v2501_v56 = vmul.f32 1.442695, %v2467_v35 }
 0x54a   : > { %2087 = vmatmul.bf16.vlgmr.msrb.gmra.mxu1 %v2055_v62 }
 0x54b   : > { %5940 = vpow2.f32 %v2501_v56  ;;  %v8272_v56 = vpop.f32.mrf.mxu0 }
 0x54c   : > { %5942 = vrcp.f32 %v1932_v38 }
 0x54e   : > { %v1934_v4 = vpop.xlane.xlu1 %1933  ;;  %v2416_v18 = vpop.xlane.xlu0 %2415 }
 0x54f   : > { %5944 = vrcp.f32 %v1934_v4  ;;  %v8276_v4 = vpop.xlane.xlu2 %2427 }
 0x550   : > { %5946 = vrcp.f32 %v1938_v5 }
 0x551   : > { %v8257_v42 = vpop.eup %5940 }
 0x552   : > { %2565 = vadd.xlane.f32.xlu1 %v8257_v42  ;;  %v5943_v16 = vpop.eup %5942 }
 0x553   : > { %v2025_v14 = vmul.f32 %v5943_v16, %v8125_v13  ;;  %v2472_v16 = vsub.f32 %v8145_v24, %v2416_v18 }
 0x555   : > { %v5945_v10 = vpop.eup %5944 }
 0x556   : > { %v2410_v41 = vpop.xlane.xlu1 %2409  ;;  %v2418_v17 = vpop.xlane.xlu0 %2417  ;;  %v2026_v2 = vmul.f32 %v5945_v10, %v8147_v54 }
 0x557   : > { %v2469_v38 = vsub.f32 %v8155_v44, %v2410_v41  ;;  %v2473_v21 = vsub.f32 %v8159_v61, %v2418_v17  ;;  %v5947_v61 = vpop.eup %5946  ;;  %v8284_v10 = vpop.f32.mrf.mxu2 }
 0x558   : > { %v2056_v27 = vpack.c.bf16 %v2026_v2, %v2025_v14  ;;  %v1739_v41 = vpop.f32.mrf.mxu0  ;;  %v2028_v17 = vmul.f32 %v5947_v61, %v8137_v63  ;;  %v8289_v14 = vld [vmem:[#allocation5 + $0xa8] sm:$0xff]  ;;  %v2511_v2 = vmul.f32 1.442695, %v2472_v16  ;;  %v2564_v63 = vpop.xlane.xlu2 %2563 }
 0x559   : > { %v2505_v35 = vmul.f32 1.442695, %v2469_v38  ;;  %v2513_v62 = vmul.f32 1.442695, %v2473_v21 }
 0x55a   : > { %2092 = vmatmul.bf16.gmra.mxu1 %v2056_v27  ;;  %1801 = vmax.xlane.f32.xlu1 %v8269_v48  ;;  %v8296_v27 = vadd.f32 %v8179_v36, %v8215_v59 }
 0x55b   : > { %5948 = vpow2.f32 %v2505_v35  ;;  %v8301_v35 = vadd.f32 %v1739_v41, %v8289_v14 }
 0x55c   : > { %5950 = vpow2.f32 %v2513_v62 }
 0x55d   : > { %5952 = vrcp.f32 %v8161_v60 }
 0x55e   : > { %v2414_v13 = vpop.xlane.xlu1 %2413  ;;  %v2424_v54 = vpop.xlane.xlu0 %2423 }
 0x55f   : > { %v2471_v44 = vsub.f32 %v8169_v50, %v2414_v13  ;;  %v2476_v60 = vsub.f32 %v8173_v20, %v2424_v54  ;;  %v1843_v13 = vsub.f32 %v8036_v29, %v8131_v39  ;;  %v2373_v36 = vpop.f32.mrf.mxu2  ;;  %v8317_v29 = vadd.f32 %v8259_v11, %v8202_v0 }
 0x561   : > { %v8278_v55 = vpop.eup %5948  ;;  %v2509_v7 = vmul.f32 1.442695, %v2471_v44  ;;  %v2519_v24 = vmul.f32 1.442695, %v2476_v60  ;;  %v1887_v44 = vmul.f32 1.442695, %v1843_v13 }
 0x562   : > { %v8280_v5 = vpop.eup %5950  ;;  %2569 = vadd.xlane.f32.xlu1 %v8278_v55 }
 0x563   : > { %5954 = vpow2.f32 %v2509_v7  ;;  %2577 = vadd.xlane.f32.xlu2 %v8280_v5  ;;  %v5953_v50 = vpop.eup %5952 }
 0x564   : > { %v2027_v18 = vmul.f32 %v5953_v50, %v8053_v15  ;;  %5956 = vpow2.f32 %v2511_v2  ;;  %v2474_v15 = vsub.f32 %v8075_v30, %v8255_v8 }
 0x565   : > { %5958 = vpow2.f32 %v2519_v24 }
 0x566   : > { %v1940_v38 = vpop.xlane.xlu1 %1939  ;;  %v8291_v21 = vpop.xlane.xlu0 %2429  ;;  %v2057_v62 = vpack.c.bf16 %v2028_v17, %v2027_v18  ;;  %v2515_v39 = vmul.f32 1.442695, %v2474_v15  ;;  %v1505_v15 = vld [vmem:[#allocation5 + $0xa0] sm:$0xff] }
 0x567   : > { %5960 = vrcp.f32 %v1940_v38  ;;  %v2376_v17 = vpop.f32.mrf.mxu2  ;;  %v1798_v38 = vpop.xlane.xlu2 %1797 }
 0x568   : > { %5962 = vrcp.f32 %v2564_v63 }
 0x569   : > { %v8298_v20 = vpop.eup %5954  ;;  %5964 = vrcp.f32 %v8250_v45 }
 0x56a   : > { %2437 = vmax.xlane.f32.xlu1 %v8296_v27  ;;  %2573 = vadd.xlane.f32.xlu0 %v8298_v20  ;;  %v8313_v61 = vpop.eup %5956 }
 0x56b   : > { %2097 = vmatmul.bf16.gmra.mxu1 %v2057_v62  ;;  %1809 = vmax.xlane.f32.xlu2 %v8301_v35  ;;  %v8319_v7 = vpop.eup %5958  ;;  %v8332_v62 = vld [vmem:[#allocation5 + $0xb0] sm:$0xff] }
 0x56d   : > { %v5961_v30 = vpop.eup %5960 }
 0x56e   : > { %v8311_v59 = vpop.xlane.xlu1 %2425  ;;  %v2562_v54 = vpop.xlane.xlu0 %2561  ;;  %v2029_v60 = vmul.f32 %v5961_v30, %v8185_v12  ;;  %v8337_v12 = vadd.f32 %v2376_v17, %v8332_v62  ;;  %v1508_v17 = vld [vmem:[#allocation5 + $0xb8] sm:$0xff] }
 0x56f   : > { %5966 = vrcp.f32 %v2562_v54  ;;  %v5963_v45 = vpop.eup %5962  ;;  %v8352_v30 = vpop.xlane.xlu2 %2433 }
 0x570   : > { %5968 = vpow2.f32 %v1887_v44  ;;  %v5965_v8 = vpop.eup %5964  ;;  %v2658_v0 = vmul.f32 %v5963_v45, %v8091_v1  ;;  %v8347_v44 = vadd.f32 %v2373_v36, %v8289_v14 }
 0x571   : > { %5970 = vpow2.f32 %v2515_v39  ;;  %v2030_v2 = vmul.f32 %v5965_v8, %v8070_v23  ;;  %v1845_v23 = vsub.f32 %v7952_v26, %v8151_v3  ;;  %v8350_v39 = vadd.f32 %v8284_v10, %v1505_v15 }
 0x572   : > { %2575 = vadd.xlane.f32.xlu1 %v8313_v61  ;;  %1805 = vmax.xlane.f32.xlu0 %v8317_v29  ;;  %v2475_v3 = vsub.f32 %v8081_v40, %v8262_v37 }
 0x573   : > { %2583 = vadd.xlane.f32.xlu2 %v8319_v7  ;;  %v2058_v63 = vpack.c.bf16 %v2030_v2, %v2029_v60  ;;  %v1891_v54 = vmul.f32 1.442695, %v1845_v23 }
 0x574   : > { %v2517_v10 = vmul.f32 1.442695, %v2475_v3 }
 0x575   : > { %v5967_v16 = vpop.eup %5966 }
 0x576   : > { %v2657_v11 = vmul.f32 %v5967_v16, %v8200_v9  ;;  %v8327_v50 = vpop.xlane.xlu1 %2431  ;;  %v1944_v41 = vpop.xlane.xlu0 %1943  ;;  %v8363_v16 = vadd.f32 %v8272_v56, %v1505_v15 }
 0x577   : > { %v8330_v18 = vpop.eup %5968  ;;  %5972 = vrcp.f32 %v1944_v41  ;;  %v1948_v40 = vpop.xlane.xlu2 %1947 }
 0x578   : > { %v2689_v24 = vpack.c.bf16 %v2658_v0, %v2657_v11  ;;  %v8334_v13 = vpop.eup %5970  ;;  %v1846_v11 = vsub.f32 %v8099_v43, %v1798_v38 }
 0x57a   : > { %1951 = vadd.xlane.f32.xlu1 %v8330_v18  ;;  %2745 = vmatmul.bf16.vlgmr.msra.gmra.mxu3 %v2689_v24  ;;  %v1893_v37 = vmul.f32 1.442695, %v1846_v11 }
 0x57b   : > { %2102 = vmatmul.bf16.gmra.mxu1 %v2058_v63  ;;  %2579 = vadd.xlane.f32.xlu0 %v8334_v13  ;;  %v2478_v63 = vsub.f32 %v8086_v6, %v8276_v4  ;;  %v1742_v6 = vpop.f32.mrf.mxu0 }
 0x57c   : > { %2445 = vmax.xlane.f32.xlu2 %v8337_v12 }
 0x57d   : > { %v5973_v26 = vpop.eup %5972  ;;  %v2523_v23 = vmul.f32 1.442695, %v2478_v63 }
 0x57e   : > { %v1946_v1 = vpop.xlane.xlu1 %1945  ;;  %v8344_v9 = vpop.xlane.xlu0 %2567  ;;  %v2031_v14 = vmul.f32 %v5973_v26, %v8221_v33  ;;  %v2477_v33 = vsub.f32 %v8198_v58, %v8311_v59  ;;  %v2479_v58 = vsub.f32 %v8183_v51, %v8291_v21  ;;  %v2480_v21 = vsub.f32 %v8219_v52, %v8327_v50  ;;  %v8410_v50 = vld [vmem:[#allocation5 + $0xc8] sm:$0xff] }
 0x57f   : > { %5974 = vrcp.f32 %v1946_v1 }
 0x580   : > { %5976 = vpow2.f32 %v1891_v54  ;;  %v2521_v2 = vmul.f32 1.442695, %v2477_v33  ;;  %v2525_v15 = vmul.f32 1.442695, %v2479_v58 }
 0x581   : > { %5978 = vpow2.f32 %v2517_v10  ;;  %v2527_v10 = vmul.f32 1.442695, %v2480_v21  ;;  %v8444_v21 = vld [vmem:[#allocation5 + $0xd8] sm:$0xff] }
 0x582   : > { %2443 = vmax.xlane.f32.xlu1 %v8347_v44  ;;  %5980 = vpow2.f32 %v1893_v37 }
 0x583   : > { %2441 = vmax.xlane.f32.xlu0 %v8350_v39  ;;  %v1744_v52 = vpop.f32.mrf.mxu0 }
 0x585   : > { %v5975_v45 = vpop.eup %5974 }
 0x586   : > { %v8358_v8 = vpop.xlane.xlu0 %2435  ;;  %v2032_v36 = vmul.f32 %v5975_v45, %v8229_v28  ;;  %v8365_v0 = vpop.eup %5976 }
 0x587   : > { %v2378_v28 = vpop.f32.mrf.mxu2  ;;  %v8373_v24 = vpop.eup %5978 }
 0x588   : > { %v2059_v60 = vpack.c.bf16 %v2032_v36, %v2031_v14  ;;  %v8375_v43 = vadd.f32 %v2378_v28, %v1508_v17  ;;  %v8385_v1 = vpop.eup %5980 }
 0x58a   : > { %1807 = vmax.xlane.f32.xlu1 %v8363_v16 }
 0x58b   : > { %2107 = vmatmul.bf16.gmra.mxu1 %v2059_v60  ;;  %1955 = vadd.xlane.f32.xlu0 %v8365_v0 }
 0x58e   : > { %v1800_v41 = vpop.xlane.xlu0 %1799 }
 0x58f   : > { %v1847_v56 = vsub.f32 %v8244_v53, %v1800_v41  ;;  %v8383_v53 = vpop.xlane.xlu2 %2571  ;;  %v2381_v4 = vpop.f32.mrf.mxu2 }
 0x591   : > { %v1895_v38 = vmul.f32 1.442695, %v1847_v56  ;;  %v2482_v56 = vsub.f32 %v8238_v22, %v8358_v8 }
 0x592   : > { %2581 = vadd.xlane.f32.xlu1 %v8373_v24 }
 0x593   : > { %5982 = vpow2.f32 %v1895_v38  ;;  %2447 = vmax.xlane.f32.xlu0 %v8375_v43  ;;  %v2531_v58 = vmul.f32 1.442695, %v2482_v56 }
 0x594   : > { %5984 = vpow2.f32 %v2521_v2  ;;  %v1747_v2 = vpop.f32.mrf.mxu0 }
 0x595   : > { %5986 = vrcp.f32 %v1948_v40  ;;  %v8401_v40 = vadd.f32 %v1742_v6, %v8332_v62 }
 0x596   : > { %v1950_v59 = vpop.xlane.xlu0 %1949 }
 0x597   : > { %5988 = vrcp.f32 %v1950_v59  ;;  %v2440_v45 = vpop.xlane.xlu2 %2439 }
 0x598   : > { %5990 = vpow2.f32 %v2523_v23 }
 0x599   : > { %v8387_v54 = vpop.eup %5982  ;;  %5992 = vpow2.f32 %v2525_v15 }
 0x59a   : > { %v8389_v26 = vpop.eup %5984  ;;  %1957 = vadd.xlane.f32.xlu1 %v8385_v1  ;;  %1959 = vadd.xlane.f32.xlu2 %v8387_v54  ;;  %5994 = vpow2.f32 %v2527_v10 }
 0x59b   : > { %v5987_v51 = vpop.eup %5986  ;;  %2585 = vadd.xlane.f32.xlu0 %v8389_v26 }
 0x59c   : > { %v2033_v14 = vmul.f32 %v5987_v51, %v8118_v25  ;;  %v2383_v25 = vpop.f32.mrf.mxu2 }
 0x59d   : > { %v5989_v3 = vpop.eup %5988  ;;  %v8413_v62 = vadd.f32 %v2383_v25, %v8410_v50 }
 0x59e   : > { %v2034_v36 = vmul.f32 %v5989_v3, %v8247_v46  ;;  %v8398_v11 = vpop.eup %5990  ;;  %v8408_v46 = vadd.f32 %v1744_v52, %v1508_v17  ;;  %v1509_v17 = vld [vmem:[#allocation5 + $0xc0] sm:$0xff] }
 0x59f   : > { %v8403_v33 = vpop.eup %5992  ;;  %v1804_v28 = vpop.xlane.xlu2 %1803  ;;  %v8423_v63 = vadd.f32 %v2381_v4, %v1509_v17  ;;  %v8425_v59 = vadd.f32 %v1747_v2, %v1509_v17  ;;  %v1511_v17 = vld [vmem:[#allocation5 + $0xd0] sm:$0xff] }
 0x5a0   : > { %v2060_v60 = vpack.c.bf16 %v2034_v36, %v2033_v14  ;;  %v8415_v37 = vpop.eup %5994  ;;  %v1849_v41 = vsub.f32 %v8226_v57, %v1804_v28  ;;  %v2481_v57 = vsub.f32 %v8109_v34, %v8352_v30  ;;  %v2484_v34 = vsub.f32 %v8210_v47, %v2440_v45  ;;  %v1749_v4 = vpop.f32.mrf.mxu0 }
 0x5a2   : > { %2112 = vmatmul.bf16.gmra.mxu1 %v2060_v60  ;;  %2587 = vadd.xlane.f32.xlu1 %v8398_v11  ;;  %v1899_v38 = vmul.f32 1.442695, %v1849_v41  ;;  %v2529_v23 = vmul.f32 1.442695, %v2481_v57  ;;  %v2535_v3 = vmul.f32 1.442695, %v2484_v34 }
 0x5a3   : > { %1811 = vmax.xlane.f32.xlu0 %v8401_v40  ;;  %2589 = vadd.xlane.f32.xlu2 %v8403_v33 }
 0x5a4   : > { %5996 = vpow2.f32 %v1899_v38  ;;  %v8436_v8 = vpop.f32.mrf.mxu2 }
 0x5a5   : > { %5998 = vpow2.f32 %v2531_v58 }
 0x5a6   : > { %6000 = vpow2.f32 %v2529_v23 }
 0x5a7   : > { %6002 = vrcp.f32 %v8344_v9  ;;  %v1954_v45 = vpop.xlane.xlu2 %1953 }
 0x5a8   : > { %v1752_v25 = vpop.f32.mrf.mxu0 }
 0x5aa   : > { %1813 = vmax.xlane.f32.xlu1 %v8408_v46  ;;  %v8431_v15 = vpop.eup %5996 }
 0x5ab   : > { %2591 = vadd.xlane.f32.xlu0 %v8415_v37  ;;  %2451 = vmax.xlane.f32.xlu2 %v8413_v62  ;;  %v8433_v22 = vpop.eup %5998 }
 0x5ac   : > { %v8439_v6 = vpop.eup %6000  ;;  %v2388_v30 = vpop.f32.mrf.mxu2 }
 0x5ad   : > { %v8447_v14 = vadd.f32 %v2388_v30, %v8444_v21  ;;  %v6003_v36 = vpop.eup %6002 }
 0x5ae   : > { %v2660_v9 = vmul.f32 %v6003_v36, %v8231_v49  ;;  %v8459_v49 = vadd.f32 %v1752_v25, %v1511_v17 }
 0x5b2   : > { %2449 = vmax.xlane.f32.xlu1 %v8423_v63 }
 0x5b3   : > { %1815 = vmax.xlane.f32.xlu2 %v8425_v59 }
 0x5ba   : > { %1963 = vadd.xlane.f32.xlu1 %v8431_v15 }
 0x5bb   : > { %2595 = vadd.xlane.f32.xlu2 %v8433_v22 }
 0x5c2   : > { %2593 = vadd.xlane.f32.xlu1 %v8439_v6 }
 0x5c5   : > { %v2566_v51 = vpop.xlane.xlu1 %2565 }
 0x5c6   : > { %6004 = vrcp.f32 %v2566_v51 }
 0x5c7   : > { %6006 = vpow2.f32 %v2535_v3  ;;  %v8468_v3 = vadd.f32 %v1749_v4, %v8410_v50 }
 0x5ca   : > { %2455 = vmax.xlane.f32.xlu1 %v8447_v14 }
 0x5cc   : > { %v6005_v10 = vpop.eup %6004 }
 0x5cd   : > { %v1802_v60 = vpop.xlane.xlu1 %1801  ;;  %v2659_v47 = vmul.f32 %v6005_v10, %v8257_v42  ;;  %v8453_v56 = vpop.eup %6006 }
 0x5ce   : > { %v1848_v52 = vsub.f32 %v8269_v48, %v1802_v60  ;;  %v8461_v48 = vpop.f32.mrf.mxu0 }
 0x5cf   : > { %v2690_v28 = vpack.c.bf16 %v2660_v9, %v2659_v47 }
 0x5d0   : > { %v1897_v41 = vmul.f32 1.442695, %v1848_v52 }
 0x5d1   : > { %2750 = vmatmul.bf16.gmra.mxu3 %v2690_v28 }
 0x5d2   : > { %6008 = vpow2.f32 %v1897_v41  ;;  %2599 = vadd.xlane.f32.xlu1 %v8453_v56  ;;  %v2391_v41 = vpop.f32.mrf.mxu2 }
 0x5d3   : > { %6010 = vrcp.f32 %v8383_v53 }
 0x5d5   : > { %v2570_v2 = vpop.xlane.xlu1 %2569 }
 0x5d6   : > { %6012 = vrcp.f32 %v2570_v2  ;;  %v2578_v42 = vpop.xlane.xlu2 %2577  ;;  %v8473_v9 = vpop.f32.mrf.mxu0 }
 0x5d8   : > { %v8457_v38 = vpop.eup %6008 }
 0x5d9   : > { %1961 = vadd.xlane.f32.xlu0 %v8457_v38  ;;  %v6011_v58 = vpop.eup %6010 }
 0x5da   : > { %1819 = vmax.xlane.f32.xlu1 %v8459_v49  ;;  %v2662_v30 = vmul.f32 %v6011_v58, %v8191_v19  ;;  %v8485_v58 = vld [vmem:[#allocation5 + $0xe8] sm:$0xff] }
 0x5dc   : > { %v6013_v57 = vpop.eup %6012 }
 0x5dd   : > { %v2438_v23 = vpop.xlane.xlu1 %2437  ;;  %v2574_v34 = vpop.xlane.xlu0 %2573  ;;  %v2661_v53 = vmul.f32 %v6013_v57, %v8278_v55 }
 0x5de   : > { %v1810_v51 = vpop.xlane.xlu2 %1809  ;;  %v2483_v60 = vsub.f32 %v8296_v27, %v2438_v23 }
 0x5df   : > { %v1852_v36 = vsub.f32 %v8301_v35, %v1810_v51  ;;  %v2691_v10 = vpack.c.bf16 %v2662_v30, %v2661_v53  ;;  %v8479_v35 = vadd.f32 %v8436_v8, %v1511_v17 }
 0x5e0   : > { %v2533_v55 = vmul.f32 1.442695, %v2483_v60  ;;  %v8500_v60 = vpop.f32.mrf.mxu2 }
 0x5e1   : > { %v1905_v47 = vmul.f32 1.442695, %v1852_v36  ;;  %2755 = vmatmul.bf16.gmra.mxu3 %v2691_v10  ;;  %1817 = vmax.xlane.f32.xlu0 %v8468_v3 }
 0x5e3   : > { %6014 = vpow2.f32 %v1905_v47 }
 0x5e4   : > { %6016 = vrcp.f32 %v2574_v34 }
 0x5e5   : > { %v2576_v52 = vpop.xlane.xlu1 %2575  ;;  %v1806_v19 = vpop.xlane.xlu0 %1805 }
 0x5e6   : > { %6018 = vrcp.f32 %v2576_v52  ;;  %v1850_v50 = vsub.f32 %v8317_v29, %v1806_v19  ;;  %v8476_v4 = vpop.xlane.xlu2 %2583  ;;  %v1759_v29 = vpop.f32.mrf.mxu0 }
 0x5e7   : > { %6020 = vpow2.f32 %v2533_v55  ;;  %v8494_v36 = vadd.f32 %v1759_v29, %v8485_v58 }
 0x5e8   : > { %v1901_v27 = vmul.f32 1.442695, %v1850_v50 }
 0x5e9   : > { %v8481_v25 = vpop.eup %6014  ;;  %2453 = vmax.xlane.f32.xlu0 %v8479_v35 }
 0x5ea   : > { %v6017_v28 = vpop.eup %6016  ;;  %6022 = vpow2.f32 %v1901_v27  ;;  %1969 = vadd.xlane.f32.xlu1 %v8481_v25  ;;  %v8506_v27 = vadd.f32 %v8461_v48, %v8444_v21  ;;  %v1513_v48 = vld [vmem:[#allocation5 + $0xe0] sm:$0xff] }
 0x5eb   : > { %6024 = vrcp.f32 %v1954_v45  ;;  %v2663_v8 = vmul.f32 %v6017_v28, %v8298_v20 }
 0x5ec   : > { %v6019_v2 = vpop.eup %6018 }
 0x5ed   : > { %v1952_v57 = vpop.xlane.xlu1 %1951  ;;  %v2664_v17 = vmul.f32 %v6019_v2, %v8313_v61  ;;  %v8489_v34 = vpop.eup %6020 }
 0x5ee   : > { %6026 = vrcp.f32 %v1952_v57  ;;  %v2580_v23 = vpop.xlane.xlu0 %2579  ;;  %v2396_v57 = vpop.f32.mrf.mxu2 }
 0x5ef   : > { %v2446_v53 = vpop.xlane.xlu2 %2445  ;;  %v2692_v30 = vpack.c.bf16 %v2664_v17, %v2663_v8  ;;  %6028 = vrcp.f32 %v2580_v23 }
 0x5f0   : > { %v8491_v51 = vpop.eup %6022  ;;  %v2487_v45 = vsub.f32 %v8337_v12, %v2446_v53  ;;  %6030 = vrcp.f32 %v2578_v42  ;;  %v8516_v53 = vld [vmem:[#allocation5 + $0xf0] sm:$0xff] }
 0x5f1   : > { %2760 = vmatmul.bf16.gmra.mxu3 %v2692_v30  ;;  %2597 = vadd.xlane.f32.xlu0 %v8489_v34  ;;  %v6025_v10 = vpop.eup %6024  ;;  %v8518_v30 = vadd.f32 %v2391_v41, %v1513_v48 }
 0x5f2   : > { %v2541_v20 = vmul.f32 1.442695, %v2487_v45  ;;  %1965 = vadd.xlane.f32.xlu2 %v8491_v51  ;;  %1825 = vmax.xlane.f32.xlu1 %v8494_v36  ;;  %v2036_v12 = vmul.f32 %v6025_v10, %v8235_v32 }
 0x5f4   : > { %v6027_v61 = vpop.eup %6026  ;;  %6032 = vpow2.f32 %v2541_v20 }
 0x5f5   : > { %v2444_v47 = vpop.xlane.xlu1 %2443  ;;  %v2035_v55 = vmul.f32 %v6027_v61, %v8330_v18  ;;  %v6029_v50 = vpop.eup %6028 }
 0x5f6   : > { %v2442_v52 = vpop.xlane.xlu0 %2441  ;;  %v6031_v28 = vpop.eup %6030  ;;  %v2666_v18 = vmul.f32 %v6029_v50, %v8334_v13  ;;  %v2486_v13 = vsub.f32 %v8347_v44, %v2444_v47 }
 0x5f7   : > { %v2061_v19 = vpack.c.bf16 %v2036_v12, %v2035_v55  ;;  %v2485_v42 = vsub.f32 %v8350_v39, %v2442_v52  ;;  %v2665_v29 = vmul.f32 %v6031_v28, %v8280_v5  ;;  %v8521_v39 = vadd.f32 %v2396_v57, %v8516_v53 }
 0x5f9   : > { %2117 = vmatmul.bf16.gmra.mxu1 %v2061_v19  ;;  %v2537_v17 = vmul.f32 1.442695, %v2485_v42  ;;  %v2693_v23 = vpack.c.bf16 %v2666_v18, %v2665_v29 }
 0x5fa   : > { %v8508_v2 = vpop.eup %6032  ;;  %1821 = vmax.xlane.f32.xlu2 %v8506_v27 }
 0x5fb   : > { %2605 = vadd.xlane.f32.xlu1 %v8508_v2 }
 0x5fd   : > { %v1808_v32 = vpop.xlane.xlu1 %1807 }
 0x5fe   : > { %v1851_v8 = vsub.f32 %v8363_v16, %v1808_v32  ;;  %v1956_v21 = vpop.xlane.xlu0 %1955  ;;  %v2539_v16 = vmul.f32 1.442695, %v2486_v13 }
 0x600   : > { %v1903_v45 = vmul.f32 1.442695, %v1851_v8 }
 0x601   : > { %2765 = vmatmul.bf16.gmra.mxu3 %v2693_v23 }
 0x602   : > { %6034 = vpow2.f32 %v1903_v45  ;;  %2457 = vmax.xlane.f32.xlu2 %v8518_v30 }
 0x603   : > { %6036 = vpow2.f32 %v2537_v17  ;;  %2461 = vmax.xlane.f32.xlu1 %v8521_v39 }
 0x604   : > { %6038 = vrcp.f32 %v8476_v4 }
 0x605   : > { %v2582_v5 = vpop.xlane.xlu1 %2581 }
 0x606   : > { %6040 = vrcp.f32 %v2582_v5  ;;  %v2448_v41 = vpop.xlane.xlu0 %2447 }
 0x607   : > { %6042 = vpow2.f32 %v2539_v16  ;;  %v2488_v17 = vsub.f32 %v8375_v43, %v2448_v41 }
 0x608   : > { %v8527_v10 = vpop.eup %6034  ;;  %6044 = vrcp.f32 %v1956_v21 }
 0x609   : > { %v8529_v20 = vpop.eup %6036  ;;  %1967 = vadd.xlane.f32.xlu0 %v8527_v10 }
 0x60a   : > { %v6039_v61 = vpop.eup %6038  ;;  %2601 = vadd.xlane.f32.xlu2 %v8529_v20 }
 0x60b   : > { %v2668_v12 = vmul.f32 %v6039_v61, %v8319_v7  ;;  %v8544_v7 = vadd.f32 %v8500_v60, %v8485_v58  ;;  %v8553_v61 = vadd.f32 %v8473_v9, %v1513_v48 }
 0x60c   : > { %v6041_v44 = vpop.eup %6040 }
 0x60d   : > { %v1958_v47 = vpop.xlane.xlu1 %1957  ;;  %v8533_v55 = vpop.xlane.xlu2 %1959  ;;  %v2667_v4 = vmul.f32 %v6041_v44, %v8373_v24 }
 0x60e   : > { %6046 = vrcp.f32 %v1958_v47  ;;  %v2586_v52 = vpop.xlane.xlu0 %2585  ;;  %v8537_v50 = vpop.eup %6042 }
 0x60f   : > { %v2694_v19 = vpack.c.bf16 %v2668_v12, %v2667_v4  ;;  %v6045_v28 = vpop.eup %6044  ;;  %6048 = vrcp.f32 %v2586_v52 }
 0x610   : > { %v2037_v32 = vmul.f32 %v6045_v28, %v8365_v0 }
 0x611   : > { %2603 = vadd.xlane.f32.xlu0 %v8537_v50  ;;  %2770 = vmatmul.bf16.gmra.mxu3 %v2694_v19 }
 0x614   : > { %v6047_v42 = vpop.eup %6046 }
 0x615   : > { %v2588_v18 = vpop.xlane.xlu1 %2587  ;;  %v2038_v29 = vmul.f32 %v6047_v42, %v8385_v1  ;;  %v6049_v45 = vpop.eup %6048  ;;  %v2543_v1 = vmul.f32 1.442695, %v2488_v17 }
 0x616   : > { %6050 = vrcp.f32 %v2588_v18  ;;  %v1812_v24 = vpop.xlane.xlu0 %1811  ;;  %v2590_v57 = vpop.xlane.xlu2 %2589  ;;  %v2669_v5 = vmul.f32 %v6049_v45, %v8389_v26 }
 0x617   : > { %v1853_v8 = vsub.f32 %v8401_v40, %v1812_v24  ;;  %v2062_v21 = vpack.c.bf16 %v2038_v29, %v2037_v32  ;;  %v1762_v18 = vpop.f32.mrf.mxu0  ;;  %v2398_v32 = vpop.f32.mrf.mxu2  ;;  %v1516_v24 = vld [vmem:[#allocation5 + $0xf8] sm:$0xff] }
 0x619   : > { %v1907_v23 = vmul.f32 1.442695, %v1853_v8  ;;  %2459 = vmax.xlane.f32.xlu0 %v8544_v7  ;;  %2122 = vmatmul.bf16.gmra.mxu1 %v2062_v21  ;;  %v8577_v21 = vadd.f32 %v2398_v32, %v1516_v24 }
 0x61b   : > { %6052 = vpow2.f32 %v1907_v23 }
 0x61c   : > { %v6051_v0 = vpop.eup %6050  ;;  %6054 = vpow2.f32 %v2543_v1 }
 0x61d   : > { %v1814_v13 = vpop.xlane.xlu1 %1813  ;;  %v2670_v16 = vmul.f32 %v6051_v0, %v8398_v11  ;;  %v8587_v0 = vadd.f32 %v1762_v18, %v8516_v53  ;;  %v8596_v53 = vpop.f32.mrf.mxu3 }
 0x61e   : > { %v1854_v58 = vsub.f32 %v8408_v46, %v1814_v13  ;;  %v2592_v60 = vpop.xlane.xlu0 %2591  ;;  %v2452_v40 = vpop.xlane.xlu2 %2451 }
 0x61f   : > { %v2490_v43 = vsub.f32 %v8413_v62, %v2452_v40  ;;  %v2695_v41 = vpack.c.bf16 %v2670_v16, %v2669_v5  ;;  %6056 = vrcp.f32 %v2592_v60  ;;  %v8591_v5 = vpop.f32.mrf.mxu1 }
 0x620   : > { %v1909_v44 = vmul.f32 1.442695, %v1854_v58 }
 0x621   : > { %v8556_v47 = vpop.eup %6052  ;;  %v2547_v4 = vmul.f32 1.442695, %v2490_v43  ;;  %1823 = vmax.xlane.f32.xlu0 %v8553_v61  ;;  %2775 = vmatmul.bf16.gmra.mxu3 %v2695_v41 }
 0x622   : > { %6058 = vpow2.f32 %v1909_v44  ;;  %1971 = vadd.xlane.f32.xlu2 %v8556_v47  ;;  %v8560_v11 = vpop.eup %6054 }
 0x623   : > { %6060 = vpow2.f32 %v2547_v4 }
 0x624   : > { %6062 = vrcp.f32 %v2590_v57 }
 0x625   : > { %v2450_v26 = vpop.xlane.xlu1 %2449  ;;  %v6057_v9 = vpop.eup %6056 }
 0x626   : > { %v2489_v46 = vsub.f32 %v8423_v63, %v2450_v26  ;;  %v1816_v62 = vpop.xlane.xlu2 %1815  ;;  %v2672_v63 = vmul.f32 %v6057_v9, %v8415_v37  ;;  %v1764_v37 = vpop.f32.mrf.mxu0 }
 0x627   : > { %v1855_v48 = vsub.f32 %v8425_v59, %v1816_v62  ;;  %v8598_v44 = vpop.f32.mrf.mxu1 }
 0x628   : > { %v8564_v12 = vpop.eup %6058  ;;  %v2545_v52 = vmul.f32 1.442695, %v2489_v46 }
 0x629   : > { %v8566_v19 = vpop.eup %6060  ;;  %v1911_v28 = vmul.f32 1.442695, %v1855_v48  ;;  %1973 = vadd.xlane.f32.xlu0 %v8564_v12 }
 0x62a   : > { %v6063_v42 = vpop.eup %6062  ;;  %6064 = vpow2.f32 %v2545_v52  ;;  %2607 = vadd.xlane.f32.xlu2 %v8560_v11  ;;  %2611 = vadd.xlane.f32.xlu1 %v8566_v19 }
 0x62b   : > { %6066 = vpow2.f32 %v1911_v28  ;;  %v2671_v29 = vmul.f32 %v6063_v42, %v8403_v33  ;;  %v8584_v33 = vadd.f32 %v1764_v37, %v1516_v24 }
 0x62d   : > { %v8572_v59 = vpop.xlane.xlu1 %1963  ;;  %v2696_v57 = vpack.c.bf16 %v2672_v63, %v2671_v29 }
 0x62e   : > { %v2596_v23 = vpop.xlane.xlu2 %2595 }
 0x62f   : > { %6068 = vrcp.f32 %v2596_v23  ;;  %v8606_v46 = vpop.f32.mrf.mxu1 }
 0x630   : > { %v8575_v8 = vpop.eup %6064 }
 0x631   : > { %v8579_v17 = vpop.eup %6066  ;;  %2609 = vadd.xlane.f32.xlu0 %v8575_v8  ;;  %2780 = vmatmul.bf16.gmra.mxu3 %v2696_v57 }
 0x632   : > { %2463 = vmax.xlane.f32.xlu2 %v8577_v21  ;;  %1975 = vadd.xlane.f32.xlu1 %v8579_v17 }
 0x635   : > { %v2594_v45 = vpop.xlane.xlu1 %2593  ;;  %v6069_v1 = vpop.eup %6068 }
 0x636   : > { %6070 = vrcp.f32 %v2594_v45  ;;  %v2674_v60 = vmul.f32 %v6069_v1, %v8433_v22 }
 0x637   : > { %v8614_v29 = vpop.f32.mrf.mxu1 }
 0x639   : > { %1829 = vmax.xlane.f32.xlu0 %v8584_v33 }
 0x63a   : > { %1827 = vmax.xlane.f32.xlu2 %v8587_v0 }
 0x63c   : > { %v6071_v13 = vpop.eup %6070 }
 0x63d   : > { %v2456_v16 = vpop.xlane.xlu1 %2455  ;;  %v2673_v58 = vmul.f32 %v6071_v13, %v8439_v6  ;;  %v8604_v6 = vpop.f32.mrf.mxu3 }
 0x63e   : > { %v2492_v40 = vsub.f32 %v8447_v14, %v2456_v16 }
 0x63f   : > { %v2697_v43 = vpack.c.bf16 %v2674_v60, %v2673_v58  ;;  %v8625_v45 = vpop.f32.mrf.mxu1 }
 0x640   : > { %v2551_v41 = vmul.f32 1.442695, %v2492_v40 }
 0x641   : > { %2785 = vmatmul.bf16.gmra.mxu3 %v2697_v43 }
 0x642   : > { %6072 = vpow2.f32 %v2551_v41 }
 0x643   : > { %6074 = vrcp.f32 %v8533_v55 }
 0x645   : > { %v2600_v26 = vpop.xlane.xlu1 %2599 }
 0x648   : > { %v8600_v4 = vpop.eup %6072 }
 0x649   : > { %2615 = vadd.xlane.f32.xlu1 %v8600_v4  ;;  %v6075_v14 = vpop.eup %6074 }
 0x64a   : > { %v2039_v52 = vmul.f32 %v6075_v14, %v8387_v54 }
 0x64c   : > { %v1962_v22 = vpop.xlane.xlu0 %1961 }
 0x64d   : > { %6076 = vrcp.f32 %v1962_v22  ;;  %v1820_v42 = vpop.xlane.xlu1 %1819 }
 0x64e   : > { %v1857_v32 = vsub.f32 %v8459_v49, %v1820_v42 }
 0x650   : > { %v1915_v24 = vmul.f32 1.442695, %v1857_v32 }
 0x653   : > { %v6077_v62 = vpop.eup %6076 }
 0x654   : > { %v8608_v9 = vpop.f32.mrf.mxu3  ;;  %v1818_v48 = vpop.xlane.xlu0 %1817  ;;  %v2040_v28 = vmul.f32 %v6077_v62, %v8457_v38 }
 0x655   : > { %v1856_v18 = vsub.f32 %v8468_v3, %v1818_v48 }
 0x656   : > { %v2063_v55 = vpack.c.bf16 %v2040_v28, %v2039_v52  ;;  %v8640_v28 = vpop.f32.mrf.mxu1 }
 0x657   : > { %v1913_v63 = vmul.f32 1.442695, %v1856_v18 }
 0x658   : > { %2127 = vmatmul.bf16.gmra.mxu1 %v2063_v55 }
 0x659   : > { %6078 = vpow2.f32 %v1913_v63 }
 0x65a   : > { %6080 = vpow2.f32 %v1915_v24 }
 0x65c   : > { %v8616_v57 = vpop.f32.mrf.mxu3  ;;  %v2454_v23 = vpop.xlane.xlu0 %2453 }
 0x65d   : > { %v2491_v37 = vsub.f32 %v8479_v35, %v2454_v23 }
 0x65f   : > { %v8619_v54 = vpop.eup %6078  ;;  %v2549_v38 = vmul.f32 1.442695, %v2491_v37 }
 0x660   : > { %1977 = vadd.xlane.f32.xlu2 %v8619_v54  ;;  %v8627_v13 = vpop.eup %6080 }
 0x661   : > { %6082 = vpow2.f32 %v2549_v38 }
 0x662   : > { %6084 = vrcp.f32 %v2600_v26  ;;  %v1970_v26 = vpop.xlane.xlu1 %1969 }
 0x663   : > { %6086 = vrcp.f32 %v8572_v59 }
 0x664   : > { %v8623_v49 = vpop.f32.mrf.mxu3  ;;  %v2598_v3 = vpop.xlane.xlu0 %2597 }
 0x665   : > { %6088 = vrcp.f32 %v2598_v3  ;;  %v1966_v1 = vpop.xlane.xlu2 %1965 }
 0x666   : > { %6090 = vrcp.f32 %v1966_v1 }
 0x667   : > { %v8629_v35 = vpop.eup %6082 }
 0x668   : > { %2613 = vadd.xlane.f32.xlu0 %v8629_v35  ;;  %1979 = vadd.xlane.f32.xlu2 %v8627_v13  ;;  %v6085_v16 = vpop.eup %6084 }
 0x669   : > { %v6087_v58 = vpop.eup %6086  ;;  %v2676_v41 = vmul.f32 %v6085_v16, %v8453_v56 }
 0x66a   : > { %v2041_v14 = vmul.f32 %v6087_v58, %v8431_v15  ;;  %v1826_v63 = vpop.xlane.xlu1 %1825 }
 0x66b   : > { %v6089_v60 = vpop.eup %6088 }
 0x66c   : > { %v6091_v59 = vpop.eup %6090  ;;  %v8633_v40 = vpop.f32.mrf.mxu3  ;;  %v2675_v43 = vmul.f32 %v6089_v60, %v8489_v34 }
 0x66d   : > { %v1822_v22 = vpop.xlane.xlu2 %1821  ;;  %v2042_v62 = vmul.f32 %v6091_v59, %v8491_v51  ;;  %v8647_v51 = vpop.f32.mrf.mxu1 }
 0x66e   : > { %v1858_v48 = vsub.f32 %v8506_v27, %v1822_v22  ;;  %v2698_v52 = vpack.c.bf16 %v2676_v41, %v2675_v43  ;;  %v1860_v27 = vsub.f32 %v8494_v36, %v1826_v63 }
 0x66f   : > { %v2064_v42 = vpack.c.bf16 %v2042_v62, %v2041_v14 }
 0x670   : > { %v1917_v18 = vmul.f32 1.442695, %v1858_v48  ;;  %2790 = vmatmul.bf16.gmra.mxu3 %v2698_v52  ;;  %v1921_v37 = vmul.f32 1.442695, %v1860_v27 }
 0x671   : > { %2132 = vmatmul.bf16.gmra.mxu1 %v2064_v42 }
 0x672   : > { %6092 = vpow2.f32 %v1917_v18  ;;  %v2606_v58 = vpop.xlane.xlu1 %2605 }
 0x674   : > { %v8642_v55 = vpop.f32.mrf.mxu3 }
 0x675   : > { %v2458_v34 = vpop.xlane.xlu2 %2457  ;;  %v8656_v16 = vpop.f32.mrf.mxu1 }
 0x676   : > { %v2493_v56 = vsub.f32 %v8518_v30, %v2458_v34 }
 0x678   : > { %v8645_v32 = vpop.eup %6092  ;;  %v2553_v15 = vmul.f32 1.442695, %v2493_v56 }
 0x679   : > { %1981 = vadd.xlane.f32.xlu0 %v8645_v32 }
 0x67a   : > { %6094 = vpow2.f32 %v2553_v15 }
 0x67b   : > { %6096 = vrcp.f32 %v1970_v26 }
 0x67c   : > { %v8651_v24 = vpop.f32.mrf.mxu3  ;;  %v1968_v23 = vpop.xlane.xlu0 %1967 }
 0x67d   : > { %6098 = vrcp.f32 %v1968_v23  ;;  %v2602_v30 = vpop.xlane.xlu2 %2601  ;;  %v8669_v18 = vpop.f32.mrf.mxu1 }
 0x67e   : > { %6100 = vpow2.f32 %v1921_v37 }
 0x67f   : > { %6102 = vrcp.f32 %v2602_v30 }
 0x680   : > { %v8653_v38 = vpop.eup %6094 }
 0x681   : > { %v6097_v3 = vpop.eup %6096  ;;  %2617 = vadd.xlane.f32.xlu1 %v8653_v38 }
 0x682   : > { %v2044_v43 = vmul.f32 %v6097_v3, %v8481_v25 }
 0x683   : > { %v6099_v1 = vpop.eup %6098 }
 0x684   : > { %v2604_v36 = vpop.xlane.xlu0 %2603  ;;  %v8658_v60 = vpop.f32.mrf.mxu3  ;;  %v2043_v59 = vmul.f32 %v6099_v1, %v8527_v10 }
 0x685   : > { %6104 = vrcp.f32 %v2604_v36  ;;  %v8662_v26 = vpop.eup %6100  ;;  %v2462_v10 = vpop.xlane.xlu1 %2461 }
 0x686   : > { %v2065_v41 = vpack.c.bf16 %v2044_v43, %v2043_v59  ;;  %v6103_v22 = vpop.eup %6102  ;;  %v2495_v63 = vsub.f32 %v8521_v39, %v2462_v10 }
 0x687   : > { %v2677_v52 = vmul.f32 %v6103_v22, %v8529_v20 }
 0x688   : > { %2137 = vmatmul.bf16.gmra.mxu1 %v2065_v41  ;;  %v2557_v15 = vmul.f32 1.442695, %v2495_v63 }
 0x689   : > { %1985 = vadd.xlane.f32.xlu1 %v8662_v26 }
 0x68b   : > { %v6105_v14 = vpop.eup %6104 }
 0x68c   : > { %v2460_v62 = vpop.xlane.xlu0 %2459  ;;  %v8665_v48 = vpop.f32.mrf.mxu3  ;;  %v2678_v42 = vmul.f32 %v6105_v14, %v8537_v50 }
 0x68d   : > { %v2494_v25 = vsub.f32 %v8544_v7, %v2460_v62  ;;  %v8678_v50 = vpop.f32.mrf.mxu1 }
 0x68e   : > { %v2699_v34 = vpack.c.bf16 %v2678_v42, %v2677_v52  ;;  %v5519_v42 = vld [vmem:[#allocation7 + $0x38] sm:$0xff] }
 0x68f   : > { %v2555_v56 = vmul.f32 1.442695, %v2494_v25  ;;  %3140 = vmatpush.bf16.msra.mxu0 %v5519_v42 }
 0x690   : > { %2795 = vmatmul.bf16.gmra.mxu3 %v2699_v34 }
 0x691   : > { %6106 = vpow2.f32 %v2555_v56 }
 0x692   : > { %6108 = vpow2.f32 %v2557_v15 }
 0x694   : > { %v1824_v27 = vpop.xlane.xlu0 %1823  ;;  %v8673_v23 = vpop.f32.mrf.mxu3 }
 0x695   : > { %v1859_v37 = vsub.f32 %v8553_v61, %v1824_v27  ;;  %v1972_v20 = vpop.xlane.xlu2 %1971  ;;  %v8687_v59 = vpop.f32.mrf.mxu1 }
 0x697   : > { %v8676_v30 = vpop.eup %6106  ;;  %v1919_v3 = vmul.f32 1.442695, %v1859_v37 }
 0x698   : > { %2619 = vadd.xlane.f32.xlu2 %v8676_v30  ;;  %v8683_v36 = vpop.eup %6108 }
 0x699   : > { %6110 = vpow2.f32 %v1919_v3 }
 0x69a   : > { %6112 = vrcp.f32 %v1972_v20 }
 0x69b   : > { %6114 = vrcp.f32 %v2606_v58 }
 0x69c   : > { %v1974_v39 = vpop.xlane.xlu0 %1973  ;;  %v8681_v7 = vpop.f32.mrf.mxu3 }
 0x69d   : > { %6116 = vrcp.f32 %v1974_v39  ;;  %v2608_v1 = vpop.xlane.xlu2 %2607  ;;  %v8698_v20 = vpop.f32.mrf.mxu1 }
 0x69e   : > { %6118 = vrcp.f32 %v2608_v1  ;;  %v2612_v3 = vpop.xlane.xlu1 %2611 }
 0x69f   : > { %v8685_v61 = vpop.eup %6110 }
 0x6a0   : > { %2621 = vadd.xlane.f32.xlu2 %v8683_v36  ;;  %1983 = vadd.xlane.f32.xlu0 %v8685_v61  ;;  %v6113_v43 = vpop.eup %6112 }
 0x6a1   : > { %v6115_v41 = vpop.eup %6114  ;;  %v2045_v62 = vmul.f32 %v6113_v43, %v8556_v47 }
 0x6a2   : > { %v2679_v63 = vmul.f32 %v6115_v41, %v8508_v2 }
 0x6a3   : > { %v6117_v22 = vpop.eup %6116 }
 0x6a4   : > { %v2610_v58 = vpop.xlane.xlu0 %2609  ;;  %v8691_v14 = vpop.f32.mrf.mxu3  ;;  %v2046_v52 = vmul.f32 %v6117_v22, %v8564_v12 }
 0x6a5   : > { %v6119_v10 = vpop.eup %6118  ;;  %v2464_v25 = vpop.xlane.xlu2 %2463 }
 0x6a6   : > { %v2496_v34 = vsub.f32 %v8577_v21, %v2464_v25  ;;  %v2066_v56 = vpack.c.bf16 %v2046_v52, %v2045_v62  ;;  %v2680_v15 = vmul.f32 %v6119_v10, %v8560_v11  ;;  %v8706_v22 = vpop.f32.mrf.mxu1 }
 0x6a8   : > { %v2559_v27 = vmul.f32 1.442695, %v2496_v34  ;;  %2142 = vmatmul.bf16.gmra.mxu1 %v2066_v56  ;;  %v2700_v37 = vpack.c.bf16 %v2680_v15, %v2679_v63 }
 0x6aa   : > { %6120 = vpow2.f32 %v2559_v27  ;;  %2800 = vmatmul.bf16.gmra.mxu3 %v2700_v37  ;;  %v1976_v37 = vpop.xlane.xlu1 %1975 }
 0x6ab   : > { %6122 = vrcp.f32 %v2610_v58 }
 0x6ac   : > { %v1830_v47 = vpop.xlane.xlu0 %1829  ;;  %v8700_v12 = vpop.f32.mrf.mxu3  ;;  %6124 = vrcp.f32 %v2612_v3  ;;  %v5751_v3 = vpack.i.bf16 %v8604_v6, %v8596_v53 }
 0x6ad   : > { %v1862_v21 = vsub.f32 %v8584_v33, %v1830_v47  ;;  %v1828_v39 = vpop.xlane.xlu2 %1827 }
 0x6ae   : > { %v1861_v2 = vsub.f32 %v8587_v0, %v1828_v39  ;;  %v8719_v25 = vpop.f32.mrf.mxu1 }
 0x6af   : > { %v1925_v11 = vmul.f32 1.442695, %v1862_v21 }
 0x6b0   : > { %v8704_v1 = vpop.eup %6120  ;;  %v1923_v43 = vmul.f32 1.442695, %v1861_v2 }
 0x6b1   : > { %v6123_v41 = vpop.eup %6122  ;;  %6126 = vpow2.f32 %v1925_v11  ;;  %2623 = vadd.xlane.f32.xlu0 %v8704_v1 }
 0x6b2   : > { %6128 = vpow2.f32 %v1923_v43  ;;  %v6125_v58 = vpop.eup %6124  ;;  %v2681_v52 = vmul.f32 %v6123_v41, %v8575_v8  ;;  %v5518_v8 = vld [vmem:[#allocation7 + $0x30] sm:$0xff] }
 0x6b3   : > { %v2682_v33 = vmul.f32 %v6125_v58, %v8566_v19  ;;  %3141 = vmatpush.bf16.msra.mxu0 %v5518_v8  ;;  %6130 = vrcp.f32 %v1976_v37 }
 0x6b4   : > { %v8709_v62 = vpop.f32.mrf.mxu3 }
 0x6b5   : > { %v2701_v10 = vpack.c.bf16 %v2682_v33, %v2681_v52 }
 0x6b6   : > { %v8723_v56 = vpop.f32.mrf.mxu1 }
 0x6b7   : > { %v8713_v42 = vpop.eup %6126 }
 0x6b8   : > { %v8715_v0 = vpop.eup %6128  ;;  %1989 = vadd.xlane.f32.xlu2 %v8713_v42 }
 0x6b9   : > { %1987 = vadd.xlane.f32.xlu1 %v8715_v0  ;;  %v6131_v2 = vpop.eup %6130 }
 0x6ba   : > { %2805 = vmatmul.bf16.gmra.mxu3 %v2701_v10  ;;  %v2047_v41 = vmul.f32 %v6131_v2, %v8579_v17  ;;  %v5517_v17 = vld [vmem:[#allocation7 + $0x28] sm:$0xff] }
 0x6bb   : > { %3142 = vmatpush.bf16.msra.mxu0 %v5517_v17 }
 0x6bc   : > { %v8721_v34 = vpop.f32.mrf.mxu3  ;;  %v2616_v39 = vpop.xlane.xlu1 %2615 }
 0x6be   : > { %v8725_v15 = vpop.f32.mrf.mxu1 }
 0x6c4   : > { %v2786_v63 = vpop.f32.mrf.mxu3 }
 0x6cc   : > { %v2788_v19 = vpop.f32.mrf.mxu3 }
 0x6cd   : > { %v5756_v27 = vpack.i.bf16 %v2788_v19, %v2786_v63 }
 0x6d0   : > { %5757 = vrot.lane.b32.xlu2 %v5756_v27, %s6634_s26 }
 0x6d2   : > { %5752 = vrot.lane.b32.xlu1 %v5751_v3, %s6633_s5 }
 0x6d3   : > { %v1978_v47 = vpop.xlane.xlu2 %1977 }
 0x6d4   : > { %6132 = vrcp.f32 %v1978_v47 }
 0x6d5   : > { %v2128_v21 = vpop.f32.mrf.mxu1  ;;  %6134 = vrcp.f32 %v2616_v39 }
 0x6da   : > { %v6133_v11 = vpop.eup %6132 }
 0x6db   : > { %v2614_v43 = vpop.xlane.xlu0 %2613  ;;  %v2048_v58 = vmul.f32 %v6133_v11, %v8619_v54  ;;  %v6135_v33 = vpop.eup %6134 }
 0x6dc   : > { %6136 = vrcp.f32 %v2614_v43  ;;  %v2684_v8 = vmul.f32 %v6135_v33, %v8600_v4  ;;  %v1980_v27 = vpop.xlane.xlu2 %1979 }
 0x6dd   : > { %v2130_v52 = vpop.f32.mrf.mxu1  ;;  %v2067_v53 = vpack.c.bf16 %v2048_v58, %v2047_v41  ;;  %6138 = vrcp.f32 %v1980_v27  ;;  %v5766_v58 = vpack.i.bf16 %v8616_v57, %v8608_v9 }
 0x6de   : > { %v5746_v6 = vpack.i.bf16 %v2130_v52, %v2128_v21 }
 0x6df   : > { %2147 = vmatmul.bf16.gmra.mxu1 %v2067_v53 }
 0x6e0   : > { %5747 = vrot.lane.b32.xlu0 %v5746_v6, %s6635_s9 }
 0x6e2   : > { %v6137_v10 = vpop.eup %6136 }
 0x6e3   : > { %v2683_v63 = vmul.f32 %v6137_v10, %v8629_v35  ;;  %v6139_v3 = vpop.eup %6138 }
 0x6e4   : > { %v2049_v39 = vmul.f32 %v6139_v3, %v8627_v13  ;;  %v5781_v13 = vpack.i.bf16 %v8633_v40, %v8623_v49 }
 0x6e5   : > { %v2702_v19 = vpack.c.bf16 %v2684_v8, %v2683_v63  ;;  %v5796_v63 = vpack.i.bf16 %v8651_v24, %v8642_v55 }
 0x6e7   : > { %2810 = vmatmul.bf16.gmra.mxu3 %v2702_v19 }
 0x6ec   : > { %v1982_v54 = vpop.xlane.xlu0 %1981 }
 0x6ed   : > { %6140 = vrcp.f32 %v1982_v54  ;;  %v5811_v54 = vpack.i.bf16 %v8665_v48, %v8658_v60 }
 0x6ee   : > { %v2133_v37 = vpop.f32.mrf.mxu1 }
 0x6f3   : > { %v6141_v47 = vpop.eup %6140  ;;  %v2791_v21 = vpop.f32.mrf.mxu3 }
 0x6f4   : > { %v2050_v2 = vmul.f32 %v6141_v47, %v8645_v32  ;;  %v2618_v52 = vpop.xlane.xlu1 %2617  ;;  %v5516_v32 = vld [vmem:[#allocation7 + $0x20] sm:$0xff] }
 0x6f5   : > { %6142 = vrcp.f32 %v2618_v52  ;;  %3143 = vmatpush.bf16.msra.mxu0 %v5516_v32  ;;  %v5513_v32 = vld [vmem:[#allocation7 + $0x8] sm:$0xff] }
 0x6f6   : > { %v2135_v11 = vpop.f32.mrf.mxu1  ;;  %v2068_v35 = vpack.c.bf16 %v2050_v2, %v2049_v39  ;;  %v5515_v2 = vld [vmem:[#allocation7 + $0x18] sm:$0xff] }
 0x6f7   : > { %v5761_v43 = vpack.i.bf16 %v2135_v11, %v2133_v37  ;;  %v5514_v11 = vld [vmem:[#allocation7 + $0x10] sm:$0xff] }
 0x6f8   : > { %2152 = vmatmul.bf16.gmra.mxu1 %v2068_v35 }
 0x6f9   : > { %5762 = vrot.lane.b32.xlu0 %v5761_v43, %s6635_s9  ;;  %3144 = vmatpush.bf16.msra.mxu0 %v5515_v2 }
 0x6fb   : > { %v2793_v4 = vpop.f32.mrf.mxu3  ;;  %v6143_v57 = vpop.eup %6142 }
 0x6fc   : > { %v5771_v41 = vpack.i.bf16 %v2793_v4, %v2791_v21  ;;  %v1986_v9 = vpop.xlane.xlu1 %1985  ;;  %v2685_v19 = vmul.f32 %v6143_v57, %v8653_v38  ;;  %v5826_v38 = vpack.i.bf16 %v8681_v7, %v8673_v23 }
 0x6fd   : > { %3145 = vmatpush.bf16.msra.mxu0 %v5514_v11 }
 0x6fe   : > { %5772 = vrot.lane.b32.xlu2 %v5771_v41, %s6634_s26 }
 0x701   : > { %5767 = vrot.lane.b32.xlu0 %v5766_v58, %s6633_s5  ;;  %3146 = vmatpush.bf16.msra.mxu0 %v5513_v32 }
 0x705   : > { %v2138_v53 = vpop.f32.mrf.mxu1 }
 0x709   : > { %5782 = vrot.lane.b32.xlu0 %v5781_v13, %s6633_s5 }
 0x70b   : > { %v2620_v6 = vpop.xlane.xlu2 %2619 }
 0x70c   : > { %6144 = vrcp.f32 %v2620_v6 }
 0x70d   : > { %v2140_v33 = vpop.f32.mrf.mxu1  ;;  %6146 = vrcp.f32 %v1986_v9 }
 0x70e   : > { %v5776_v10 = vpack.i.bf16 %v2140_v33, %v2138_v53 }
 0x710   : > { %5777 = vrot.lane.b32.xlu1 %v5776_v10, %s6635_s9 }
 0x711   : > { %5797 = vrot.lane.b32.xlu0 %v5796_v63, %s6633_s5  ;;  %v5512_v63 = vld [vmem:[#allocation7] sm:$0xff] }
 0x712   : > { %v6145_v8 = vpop.eup %6144  ;;  %3147 = vmatpush.bf16.msra.mxu0 %v5512_v63 }
 0x713   : > { %v1984_v49 = vpop.xlane.xlu0 %1983  ;;  %v2796_v40 = vpop.f32.mrf.mxu3  ;;  %v2686_v27 = vmul.f32 %v6145_v8, %v8676_v30 }
 0x714   : > { %6148 = vrcp.f32 %v1984_v49  ;;  %v6147_v55 = vpop.eup %6146  ;;  %v2622_v30 = vpop.xlane.xlu2 %2621 }
 0x715   : > { %v2703_v17 = vpack.c.bf16 %v2686_v27, %v2685_v19  ;;  %v2052_v47 = vmul.f32 %v6147_v55, %v8662_v26  ;;  %6150 = vrcp.f32 %v2622_v30 }
 0x717   : > { %2815 = vmatmul.bf16.gmra.mxu3 %v2703_v17 }
 0x719   : > { %5812 = vrot.lane.b32.xlu0 %v5811_v54, %s6633_s5 }
 0x71a   : > { %v6149_v24 = vpop.eup %6148 }
 0x71b   : > { %v2798_v37 = vpop.f32.mrf.mxu3  ;;  %v2051_v3 = vmul.f32 %v6149_v24, %v8685_v61  ;;  %v5841_v61 = vpack.i.bf16 %v8700_v12, %v8691_v14  ;;  %v6151_v26 = vpop.eup %6150  ;;  %v5856_v14 = vpack.i.bf16 %v8721_v34, %v8709_v62 }
 0x71c   : > { %v5786_v21 = vpack.i.bf16 %v2798_v37, %v2796_v40  ;;  %v2687_v7 = vmul.f32 %v6151_v26, %v8683_v36 }
 0x71d   : > { %v2069_v39 = vpack.c.bf16 %v2052_v47, %v2051_v3 }
 0x71e   : > { %5787 = vrot.lane.b32.xlu2 %v5786_v21, %s6634_s26 }
 0x71f   : > { %2157 = vmatmul.bf16.gmra.mxu1 %v2069_v39 }
 0x721   : > { %5827 = vrot.lane.b32.xlu0 %v5826_v38, %s6633_s5 }
 0x724   : > { %v2624_v60 = vpop.xlane.xlu0 %2623 }
 0x725   : > { %6152 = vrcp.f32 %v2624_v60  ;;  %v2143_v48 = vpop.f32.mrf.mxu1 }
 0x729   : > { %5842 = vrot.lane.b32.xlu0 %v5841_v61, %s6633_s5 }
 0x72b   : > { %v6153_v35 = vpop.eup %6152  ;;  %v1990_v43 = vpop.xlane.xlu2 %1989 }
 0x72c   : > { %v1988_v23 = vpop.xlane.xlu1 %1987  ;;  %6154 = vrcp.f32 %v1990_v43  ;;  %v2688_v4 = vmul.f32 %v6153_v35, %v8704_v1 }
 0x72d   : > { %v2801_v41 = vpop.f32.mrf.mxu3  ;;  %6156 = vrcp.f32 %v1988_v23  ;;  %v2145_v58 = vpop.f32.mrf.mxu1 }
 0x72e   : > { %v5791_v52 = vpack.i.bf16 %v2145_v58, %v2143_v48  ;;  %v2704_v53 = vpack.c.bf16 %v2688_v4, %v2687_v7 }
 0x730   : > { %2820 = vmatmul.bf16.gmra.mxu3 %v2704_v53  ;;  %5792 = vrot.lane.b32.xlu1 %v5791_v52, %s6635_s9 }
 0x731   : > { %5857 = vrot.lane.b32.xlu0 %v5856_v14, %s6633_s5 }
 0x732   : > { %v6155_v12 = vpop.eup %6154 }
 0x733   : > { %v6157_v13 = vpop.eup %6156  ;;  %v2054_v36 = vmul.f32 %v6155_v12, %v8713_v42  ;;  %v5758_v8 = vpop.permute.xlu2 %5757 }
 0x734   : > { %v2053_v1 = vmul.f32 %v6157_v13, %v8715_v0  ;;  %v5760_v27 = vunpack.i.h.bf16 %v5758_v8  ;;  %v5759_v17 = vunpack.i.l.bf16 %v5758_v8 }
 0x735   : > { %v2803_v6 = vpop.f32.mrf.mxu3 }
 0x736   : > { %v5801_v33 = vpack.i.bf16 %v2803_v6, %v2801_v41  ;;  %v2070_v10 = vpack.c.bf16 %v2054_v36, %v2053_v1 }
 0x738   : > { %5802 = vrot.lane.b32.xlu2 %v5801_v33, %s6634_s26  ;;  %2162 = vmatmul.bf16.gmra.mxu1 %v2070_v10 }
 0x73d   : > { %v2806_v62 = vpop.f32.mrf.mxu3 }
 0x744   : > { %v5753_v57 = vpop.permute.xlu1 %5752 }
 0x745   : > { %v2808_v34 = vpop.f32.mrf.mxu3  ;;  %v5755_v40 = vunpack.i.h.bf16 %v5753_v57  ;;  %v5754_v19 = vunpack.i.l.bf16 %v5753_v57 }
 0x746   : > { %v5816_v9 = vpack.i.bf16 %v2808_v34, %v2806_v62 }
 0x748   : > { %5817 = vrot.lane.b32.xlu2 %v5816_v9, %s6634_s26 }
 0x752   : > { %v5748_v42 = vpop.permute.xlu0 %5747 }
 0x753   : > { %v5750_v49 = vunpack.i.h.bf16 %v5748_v42  ;;  %v5749_v0 = vunpack.i.l.bf16 %v5748_v42 }
 0x755   : > { %v3019_v54 = vsel %vm1605_vm1, %v8598_v44, %v5750_v49  ;;  %v3018_v55 = vsel %vm1605_vm1, %v8591_v5, %v5749_v0 }
 0x756   : > { %v3035_v24 = vsel %vm3034_vm2, %v3018_v55, %v5754_v19  ;;  %v3036_v37 = vsel %vm3034_vm2, %v3019_v54, %v5755_v40 }
 0x757   : > { %v3052_v3 = vsel %vm3051_vm3, %v3035_v24, %v5759_v17  ;;  %v3053_v47 = vsel %vm3051_vm3, %v3036_v37, %v5760_v27 }
 0x758   : > { %v3068_v21 = vpack.c.bf16 %v3053_v47, %v3052_v3  ;;  %v5773_v5 = vpop.permute.xlu2 %5772 }
 0x759   : > { %v5775_v23 = vunpack.i.h.bf16 %v5773_v5  ;;  %v5774_v7 = vunpack.i.l.bf16 %v5773_v5 }
 0x75a   : > { %3148 = vmatmul.bf16.vlgmr.msra.gmra.mxu0 %v3068_v21 }
 0x75c   : > { %v2148_v39 = vpop.f32.mrf.mxu1 }
 0x764   : > { %v2150_v38 = vpop.f32.mrf.mxu1 }
 0x765   : > { %v5806_v30 = vpack.i.bf16 %v2150_v38, %v2148_v39 }
 0x767   : > { %5807 = vrot.lane.b32.xlu1 %v5806_v30, %s6635_s9 }
 0x76a   : > { %v2811_v60 = vpop.f32.mrf.mxu3 }
 0x76b   : > { %v5763_v44 = vpop.permute.xlu0 %5762 }
 0x76c   : > { %v5765_v48 = vunpack.i.h.bf16 %v5763_v44  ;;  %v5764_v61 = vunpack.i.l.bf16 %v5763_v44 }
 0x76e   : > { %v3021_v4 = vsel %vm1605_vm1, %v8614_v29, %v5765_v48  ;;  %v3020_v41 = vsel %vm1605_vm1, %v8606_v46, %v5764_v61 }
 0x772   : > { %v2813_v2 = vpop.f32.mrf.mxu3 }
 0x773   : > { %v5831_v26 = vpack.i.bf16 %v2813_v2, %v2811_v60  ;;  %v5768_v11 = vpop.permute.xlu0 %5767 }
 0x774   : > { %v5770_v35 = vunpack.i.h.bf16 %v5768_v11  ;;  %v5769_v43 = vunpack.i.l.bf16 %v5768_v11 }
 0x775   : > { %v2153_v58 = vpop.f32.mrf.mxu1  ;;  %5832 = vrot.lane.b32.xlu2 %v5831_v26, %s6634_s26 }
 0x776   : > { %v3037_v52 = vsel %vm3034_vm2, %v3020_v41, %v5769_v43  ;;  %v3038_v53 = vsel %vm3034_vm2, %v3021_v4, %v5770_v35  ;;  %v5358_v4 = vld [vmem:[%s9660_s6 + $0x168] sm:$0xf0] }
 0x777   : > { %v3054_v14 = vsel %vm3051_vm3, %v3037_v52, %v5774_v7  ;;  %v3055_v12 = vsel %vm3051_vm3, %v3038_v53, %v5775_v23  ;;  %v5562_v7 = vld [vmem:[%s9660_s6 + $0x154] sm:$0xf]  ;;  %v5565_v52 = vld [vmem:[%s9660_s6 + $0x164] sm:$0xf0] }
 0x778   : > { %v3069_v13 = vpack.c.bf16 %v3055_v12, %v3054_v14  ;;  %v5788_v1 = vpop.permute.xlu2 %5787  ;;  %v5361_v41 = vor.u32 %v5562_v7, %v5358_v4  ;;  %v5550_v7 = vld [vmem:[%s9660_s6 + $0xf4] sm:$0xf]  ;;  %v5310_v4 = vld [vmem:[%s9660_s6 + $0x108] sm:$0xf0] }
 0x779   : > { %v5790_v62 = vunpack.i.h.bf16 %v5788_v1  ;;  %v5789_v34 = vunpack.i.l.bf16 %v5788_v1 }
 0x77a   : > { %3153 = vmatmul.bf16.gmra.mxu0 %v3069_v13  ;;  %3826 = vmatpush.bf16.msrb.mxu2 %v5361_v41 }
 0x77b   : > { %v5783_v29 = vpop.permute.xlu0 %5782 }
 0x77c   : > { %v5785_v10 = vunpack.i.h.bf16 %v5783_v29  ;;  %v5784_v63 = vunpack.i.l.bf16 %v5783_v29 }
 0x77d   : > { %v2155_v36 = vpop.f32.mrf.mxu1 }
 0x77e   : > { %v5821_v32 = vpack.i.bf16 %v2155_v36, %v2153_v58  ;;  %v5356_v58 = vld [vmem:[%s9660_s6 + $0x150] sm:$0xf] }
 0x77f   : > { %v5357_v53 = vor.u32 %v5565_v52, %v5356_v58  ;;  %v5313_v58 = vor.u32 %v5550_v7, %v5310_v4 }
 0x780   : > { %5822 = vrot.lane.b32.xlu1 %v5821_v32, %s6635_s9 }
 0x781   : > { %3777 = vmatpush.bf16.msra.mxu1 %v5357_v53  ;;  %v6386_v53 = vld [vmem:[%s6835_s19 + $0x20] sm:$0xff] }
 0x782   : > { %v5778_v46 = vpop.permute.xlu1 %5777 }
 0x783   : > { %v5780_v6 = vunpack.i.h.bf16 %v5778_v46  ;;  %v5779_v33 = vunpack.i.l.bf16 %v5778_v46  ;;  %v5798_v17 = vpop.permute.xlu0 %5797 }
 0x784   : > { %v5800_v3 = vunpack.i.h.bf16 %v5798_v17 }
 0x785   : > { %v3023_v9 = vsel %vm1605_vm1, %v8640_v28, %v5780_v6  ;;  %v3022_v57 = vsel %vm1605_vm1, %v8625_v45, %v5779_v33  ;;  %v5799_v45 = vunpack.i.l.bf16 %v5798_v17 }
 0x786   : > { %v3039_v8 = vsel %vm3034_vm2, %v3022_v57, %v5784_v63  ;;  %v3040_v42 = vsel %vm3034_vm2, %v3023_v9, %v5785_v10 }
 0x787   : > { %v3056_v49 = vsel %vm3051_vm3, %v3039_v8, %v5789_v34  ;;  %v3057_v0 = vsel %vm3051_vm3, %v3040_v42, %v5790_v62 }
 0x788   : > { %v3070_v40 = vpack.c.bf16 %v3057_v0, %v3056_v49  ;;  %v6382_v49 = vld [vmem:[%s6835_s19 + $0x8] sm:$0xff] }
 0x78a   : > { %3158 = vmatmul.bf16.gmra.mxu0 %v3070_v40 }
 0x78b   : > { %v5813_v12 = vpop.permute.xlu0 %5812 }
 0x78c   : > { %v5815_v1 = vunpack.i.h.bf16 %v5813_v12  ;;  %v5814_v46 = vunpack.i.l.bf16 %v5813_v12  ;;  %v5308_v12 = vld [vmem:[%s9660_s6 + $0xf0] sm:$0xf] }
 0x792   : > { %v5803_v54 = vpop.permute.xlu2 %5802 }
 0x793   : > { %v5805_v47 = vunpack.i.h.bf16 %v5803_v54  ;;  %v5804_v38 = vunpack.i.l.bf16 %v5803_v54 }
 0x79a   : > { %v2816_v19 = vpop.f32.mrf.mxu3 }
 0x79c   : > { %v2158_v27 = vpop.f32.mrf.mxu1 }
 0x7a2   : > { %v5793_v55 = vpop.permute.xlu1 %5792  ;;  %v2818_v37 = vpop.f32.mrf.mxu3 }
 0x7a3   : > { %v5795_v24 = vunpack.i.h.bf16 %v5793_v55  ;;  %v5794_v28 = vunpack.i.l.bf16 %v5793_v55  ;;  %v5846_v21 = vpack.i.bf16 %v2818_v37, %v2816_v19  ;;  %v5818_v13 = vpop.permute.xlu2 %5817  ;;  %v5332_v55 = vld [vmem:[%s9660_s6 + $0x120] sm:$0xf]  ;;  %v5828_v37 = vpop.permute.xlu0 %5827 }
 0x7a4   : > { %v2160_v39 = vpop.f32.mrf.mxu1  ;;  %v5820_v6 = vunpack.i.h.bf16 %v5818_v13  ;;  %v5819_v33 = vunpack.i.l.bf16 %v5818_v13  ;;  %v5553_v13 = vld [vmem:[%s9660_s6 + $0x104] sm:$0xf0] }
 0x7a5   : > { %v3025_v30 = vsel %vm1605_vm1, %v8656_v16, %v5795_v24  ;;  %v3024_v60 = vsel %vm1605_vm1, %v8647_v51, %v5794_v28  ;;  %v5836_v44 = vpack.i.bf16 %v2160_v39, %v2158_v27  ;;  %5847 = vrot.lane.b32.xlu2 %v5846_v21, %s6634_s26  ;;  %v6383_v27 = vld [vmem:[%s6835_s19] sm:$0xff]  ;;  %v5559_v24 = vld [vmem:[%s9660_s6 + $0x134] sm:$0xf0]  ;;  %v5830_v39 = vunpack.i.h.bf16 %v5828_v37 }
 0x7a6   : > { %v3041_v48 = vsel %vm3034_vm2, %v3024_v60, %v5799_v45  ;;  %v3042_v61 = vsel %vm3034_vm2, %v3025_v30, %v5800_v3  ;;  %v5333_v28 = vor.u32 %v5559_v24, %v5332_v55 }
 0x7a7   : > { %5837 = vrot.lane.b32.xlu1 %v5836_v44, %s6635_s9  ;;  %v3058_v5 = vsel %vm3051_vm3, %v3041_v48, %v5804_v38  ;;  %v3059_v2 = vsel %vm3051_vm3, %v3042_v61, %v5805_v47  ;;  %v5829_v38 = vunpack.i.l.bf16 %v5828_v37 }
 0x7a8   : > { %v3071_v26 = vpack.c.bf16 %v3059_v2, %v3058_v5  ;;  %3778 = vmatpush.bf16.msra.mxu1 %v5333_v28 }
 0x7aa   : > { %3163 = vmatmul.bf16.gmra.mxu0 %v3071_v26 }
 0x7b3   : > { %v2821_v11 = vpop.f32.mrf.mxu3 }
 0x7b5   : > { %v2163_v16 = vpop.f32.mrf.mxu1 }
 0x7bb   : > { %v2823_v35 = vpop.f32.mrf.mxu3 }
 0x7bc   : > { %v5861_v43 = vpack.i.bf16 %v2823_v35, %v2821_v11 }
 0x7bd   : > { %v2165_v51 = vpop.f32.mrf.mxu1 }
 0x7be   : > { %v5851_v23 = vpack.i.bf16 %v2165_v51, %v2163_v16  ;;  %5862 = vrot.lane.b32.xlu2 %v5861_v43, %s6634_s26  ;;  %v6384_v16 = vld [vmem:[%s6835_s19 + $0x10] sm:$0xff]  ;;  %v6385_v51 = vld [vmem:[%s6835_s19 + $0x18] sm:$0xff]  ;;  %s4862_s26 = scalar_lea.hbm %s9666_s12, %s5592_s8 }
 0x7c0   : > { %5852 = vrot.lane.b32.xlu1 %v5851_v23, %s6635_s9 }
 0x7cf   : > { %v5833_v3 = vpop.permute.xlu2 %5832 }
 0x7d0   : > { %v5835_v30 = vunpack.i.h.bf16 %v5833_v3  ;;  %v5834_v60 = vunpack.i.l.bf16 %v5833_v3 }
 0x7d7   : > { %v3149_v14 = vpop.f32.mrf.mxu0 }
 0x7d8   : > { %v8845_v17 = vadd.f32 %v6383_v27, %v3149_v14  ;;  %v5364_v27 = vld [vmem:[%s9660_s6 + $0x158] sm:$0xf] }
 0x7d9   : > { %v5808_v36 = vpop.permute.xlu1 %5807 }
 0x7da   : > { %v5810_v32 = vunpack.i.h.bf16 %v5808_v36  ;;  %v5809_v29 = vunpack.i.l.bf16 %v5808_v36  ;;  %v3205_v54 = vmul.f32 %v8845_v17, %v8845_v17  ;;  %v5309_v36 = vor.u32 %v5553_v13, %v5308_v12  ;;  %v5563_v13 = vld [vmem:[%s9660_s6 + $0x15c] sm:$0xf] }
 0x7dc   : > { %v3027_v10 = vsel %vm1605_vm1, %v8678_v50, %v5810_v32  ;;  %v3026_v63 = vsel %vm1605_vm1, %v8669_v18, %v5809_v29  ;;  %v5556_v50 = vld [vmem:[%s9660_s6 + $0x124] sm:$0xf]  ;;  %v5334_v18 = vld [vmem:[%s9660_s6 + $0x138] sm:$0xf0]  ;;  %3779 = vmatpush.bf16.msra.mxu1 %v5309_v36 }
 0x7dd   : > { %v3043_v62 = vsel %vm3034_vm2, %v3026_v63, %v5814_v46  ;;  %v3044_v34 = vsel %vm3034_vm2, %v3027_v10, %v5815_v1  ;;  %v5337_v19 = vor.u32 %v5556_v50, %v5334_v18  ;;  %v6387_v1 = vld [vmem:[%s6835_s19 + $0x28] sm:$0xff] }
 0x7de   : > { %v3060_v9 = vsel %vm3051_vm3, %v3043_v62, %v5819_v33  ;;  %v3061_v57 = vsel %vm3051_vm3, %v3044_v34, %v5820_v6  ;;  %v5843_v33 = vpop.permute.xlu0 %5842 }
 0x7df   : > { %v3151_v8 = vpop.f32.mrf.mxu0  ;;  %v3072_v42 = vpack.c.bf16 %v3061_v57, %v3060_v9  ;;  %3827 = vmatpush.bf16.msrb.mxu2 %v5337_v19  ;;  %v5845_v62 = vunpack.i.h.bf16 %v5843_v33  ;;  %v5544_v57 = vld [vmem:[%s9660_s6 + $0xc4] sm:$0xf]  ;;  %v5547_v19 = vld [vmem:[%s9660_s6 + $0xd4] sm:$0xf0] }
 0x7e0   : > { %v8834_v0 = vadd.f32 %v6382_v49, %v3151_v8  ;;  %v5286_v8 = vld [vmem:[%s9660_s6 + $0xd8] sm:$0xf0]  ;;  %v5844_v49 = vunpack.i.l.bf16 %v5843_v33 }
 0x7e1   : > { %3168 = vmatmul.bf16.gmra.mxu0 %v3072_v42  ;;  %v5284_v42 = vld [vmem:[%s9660_s6 + $0xc0] sm:$0xf] }
 0x7e2   : > { %v3206_v40 = vmul.f32 %v8834_v0, %v8834_v0  ;;  %v5285_v28 = vor.u32 %v5547_v19, %v5284_v42  ;;  %v5548_v42 = vld [vmem:[%s9660_s6 + $0xdc] sm:$0xf0]  ;;  %v5538_v19 = vld [vmem:[%s9660_s6 + $0x94] sm:$0xf] }
 0x7e3   : > { %3828 = vmatpush.bf16.msrb.mxu2 %v5313_v58 }
 0x7e4   : > { %3223 = vadd.xlane.f32.xlu0 %v3206_v40  ;;  %v5289_v40 = vor.u32 %v5544_v57, %v5286_v8  ;;  %3780 = vmatpush.bf16.msra.mxu1 %v5285_v28  ;;  %v5292_v8 = vld [vmem:[%s9660_s6 + $0xc8] sm:$0xf]  ;;  %v5268_v28 = vld [vmem:[%s9660_s6 + $0x98] sm:$0xf] }
 0x7e7   : > { %3829 = vmatpush.bf16.msrb.mxu2 %v5289_v40 }
 0x7ea   : > { %3221 = vadd.xlane.f32.xlu1 %v3205_v54  ;;  %v5566_v54 = vld [vmem:[%s9660_s6 + $0x16c] sm:$0xf0] }
 0x7eb   : > { %v5365_v37 = vor.u32 %v5566_v54, %v5364_v27  ;;  %v5262_v27 = vld [vmem:[%s9660_s6 + $0xa8] sm:$0xf0]  ;;  %v5260_v54 = vld [vmem:[%s9660_s6 + $0x90] sm:$0xf] }
 0x7ed   : > { %3875 = vmatpush.bf16.msrb.mxu3 %v5365_v37  ;;  %v5542_v37 = vld [vmem:[%s9660_s6 + $0xac] sm:$0xf0] }
 0x7f2   : > { %v5823_v45 = vpop.permute.xlu1 %5822 }
 0x7f3   : > { %v5825_v47 = vunpack.i.h.bf16 %v5823_v45  ;;  %v5824_v21 = vunpack.i.l.bf16 %v5823_v45 }
 0x7f5   : > { %v3029_v44 = vsel %vm1605_vm1, %v8698_v20, %v5825_v47  ;;  %v3028_v48 = vsel %vm1605_vm1, %v8687_v59, %v5824_v21 }
 0x7f6   : > { %v3045_v61 = vsel %vm3034_vm2, %v3028_v48, %v5829_v38  ;;  %v3046_v5 = vsel %vm3034_vm2, %v3029_v44, %v5830_v39  ;;  %v6388_v38 = vld [vmem:[%s6835_s19 + $0x30] sm:$0xff]  ;;  %v6389_v44 = vld [vmem:[%s6835_s19 + $0x38] sm:$0xff] }
 0x7f7   : > { %v3154_v2 = vpop.f32.mrf.mxu0  ;;  %v3062_v26 = vsel %vm3051_vm3, %v3045_v61, %v5834_v60  ;;  %v3063_v11 = vsel %vm3051_vm3, %v3046_v5, %v5835_v30  ;;  %v5858_v61 = vpop.permute.xlu0 %5857 }
 0x7f8   : > { %v8864_v35 = vadd.f32 %v6384_v16, %v3154_v2  ;;  %v3073_v43 = vpack.c.bf16 %v3063_v11, %v3062_v26 }
 0x7fa   : > { %3173 = vmatmul.bf16.gmra.mxu0 %v3073_v43  ;;  %v3207_v20 = vmul.f32 %v8864_v35, %v8864_v35  ;;  %v5860_v43 = vunpack.i.h.bf16 %v5858_v61 }
 0x7fc   : > { %3225 = vadd.xlane.f32.xlu2 %v3207_v20  ;;  %v5859_v20 = vunpack.i.l.bf16 %v5858_v61  ;;  %v5244_v61 = vld [vmem:[%s9660_s6 + $0x68] sm:$0xf] }
 0x7ff   : > { %v3156_v59 = vpop.f32.mrf.mxu0  ;;  %v5848_v10 = vpop.permute.xlu2 %5847 }
 0x800   : > { %v8869_v23 = vadd.f32 %v6385_v51, %v3156_v59  ;;  %v5850_v50 = vunpack.i.h.bf16 %v5848_v10  ;;  %v5849_v18 = vunpack.i.l.bf16 %v5848_v10  ;;  %v5316_v10 = vld [vmem:[%s9660_s6 + $0xf8] sm:$0xf] }
 0x802   : > { %v3208_v41 = vmul.f32 %v8869_v23, %v8869_v23 }
 0x804   : > { %3227 = vadd.xlane.f32.xlu1 %v3208_v41 }
 0x807   : > { %v3159_v52 = vpop.f32.mrf.mxu0 }
 0x808   : > { %v8880_v14 = vadd.f32 %v6386_v53, %v3159_v52 }
 0x80a   : > { %v3209_v32 = vmul.f32 %v8880_v14, %v8880_v14 }
 0x80c   : > { %3229 = vadd.xlane.f32.xlu2 %v3209_v32  ;;  %v5560_v32 = vld [vmem:[%s9660_s6 + $0x13c] sm:$0xf0] }
 0x80f   : > { %v3161_v29 = vpop.f32.mrf.mxu0 }
 0x810   : > { %v8891_v46 = vadd.f32 %v6387_v1, %v3161_v29  ;;  %v5557_v29 = vld [vmem:[%s9660_s6 + $0x12c] sm:$0xf] }
 0x812   : > { %v3210_v6 = vmul.f32 %v8891_v46, %v8891_v46 }
 0x814   : > { %3231 = vadd.xlane.f32.xlu0 %v3210_v6  ;;  %v5342_v6 = vld [vmem:[%s9660_s6 + $0x140] sm:$0xf0] }
 0x815   : > { %v5345_v33 = vor.u32 %v5557_v29, %v5342_v6  ;;  %v5196_v6 = vld [vmem:[%s9660_s6 + $0x8] sm:$0xf] }
 0x818   : > { %v5863_v5 = vpop.permute.xlu2 %5862 }
 0x819   : > { %v5838_v63 = vpop.permute.xlu1 %5837  ;;  %v5865_v59 = vunpack.i.h.bf16 %v5863_v5  ;;  %v5864_v51 = vunpack.i.l.bf16 %v5863_v5  ;;  %v5536_v5 = vld [vmem:[%s9660_s6 + $0x7c] sm:$0xf0] }
 0x81a   : > { %v5840_v34 = vunpack.i.h.bf16 %v5838_v63  ;;  %v5839_v9 = vunpack.i.l.bf16 %v5838_v63  ;;  %v5554_v63 = vld [vmem:[%s9660_s6 + $0x10c] sm:$0xf0] }
 0x81c   : > { %v3031_v55 = vsel %vm1605_vm1, %v8719_v25, %v5840_v34  ;;  %v3030_v24 = vsel %vm1605_vm1, %v8706_v22, %v5839_v9  ;;  %v5317_v34 = vor.u32 %v5554_v63, %v5316_v10  ;;  %v5318_v9 = vld [vmem:[%s9660_s6 + $0x110] sm:$0xf0] }
 0x81d   : > { %v3047_v3 = vsel %vm3034_vm2, %v3030_v24, %v5844_v49  ;;  %v3048_v45 = vsel %vm3034_vm2, %v3031_v55, %v5845_v62  ;;  %v5551_v62 = vld [vmem:[%s9660_s6 + $0xfc] sm:$0xf]  ;;  %v5545_v49 = vld [vmem:[%s9660_s6 + $0xcc] sm:$0xf]  ;;  %v5265_v55 = vor.u32 %v5538_v19, %v5262_v27  ;;  %v5541_v24 = vld [vmem:[%s9660_s6 + $0xa4] sm:$0xf0] }
 0x81e   : > { %v3064_v47 = vsel %vm3051_vm3, %v3047_v3, %v5849_v18  ;;  %v3065_v21 = vsel %vm3051_vm3, %v3048_v45, %v5850_v50  ;;  %v5321_v57 = vor.u32 %v5551_v62, %v5318_v9  ;;  %v5293_v50 = vor.u32 %v5548_v42, %v5292_v8  ;;  %v5294_v18 = vld [vmem:[%s9660_s6 + $0xe0] sm:$0xf0] }
 0x81f   : > { %v3074_v39 = vpack.c.bf16 %v3065_v21, %v3064_v47  ;;  %v5297_v40 = vor.u32 %v5545_v49, %v5294_v18  ;;  %v5261_v3 = vor.u32 %v5541_v24, %v5260_v54  ;;  %v5269_v45 = vor.u32 %v5542_v37, %v5268_v28  ;;  %v5539_v47 = vld [vmem:[%s9660_s6 + $0x9c] sm:$0xf]  ;;  %v5270_v21 = vld [vmem:[%s9660_s6 + $0xb0] sm:$0xf0]  ;;  %3830 = vmatpush.bf16.msrb.mxu2 %v5265_v55  ;;  %v5198_v9 = vld [vmem:[%s9660_s6 + $0x20] sm:$0xf0] }
 0x821   : > { %3178 = vmatmul.bf16.gmra.mxu0 %v3074_v39  ;;  %v5273_v39 = vor.u32 %v5539_v47, %v5270_v21  ;;  %3781 = vmatpush.bf16.msra.mxu1 %v5261_v3 }
 0x827   : > { %v3164_v25 = vpop.f32.mrf.mxu0 }
 0x828   : > { %v8922_v30 = vadd.f32 %v6388_v38, %v3164_v25  ;;  %v5236_v25 = vld [vmem:[%s9660_s6 + $0x60] sm:$0xf]  ;;  %v5535_v38 = vld [vmem:[%s9660_s6 + $0x74] sm:$0xf0] }
 0x82a   : > { %v3211_v22 = vmul.f32 %v8922_v30, %v8922_v30 }
 0x82c   : > { %3233 = vadd.xlane.f32.xlu1 %v3211_v22  ;;  %v5532_v22 = vld [vmem:[%s9660_s6 + $0x64] sm:$0xf] }
 0x82f   : > { %v3166_v60 = vpop.f32.mrf.mxu0 }
 0x830   : > { %v8927_v48 = vadd.f32 %v6389_v44, %v3166_v60  ;;  %v5237_v60 = vor.u32 %v5535_v38, %v5236_v25  ;;  %v5238_v44 = vld [vmem:[%s9660_s6 + $0x78] sm:$0xf0] }
 0x832   : > { %v5853_v2 = vpop.permute.xlu1 %5852  ;;  %v3212_v26 = vmul.f32 %v8927_v48, %v8927_v48  ;;  %3782 = vmatpush.bf16.msra.mxu1 %v5237_v60 }
 0x833   : > { %v5855_v11 = vunpack.i.h.bf16 %v5853_v2  ;;  %v5854_v16 = vunpack.i.l.bf16 %v5853_v2  ;;  %v5241_v2 = vor.u32 %v5532_v22, %v5238_v44 }
 0x834   : > { %3235 = vadd.xlane.f32.xlu2 %v3212_v26  ;;  %v5245_v26 = vor.u32 %v5536_v5, %v5244_v61 }
 0x835   : > { %v3033_v7 = vsel %vm1605_vm1, %v8725_v15, %v5855_v11  ;;  %v3032_v4 = vsel %vm1605_vm1, %v8723_v56, %v5854_v16  ;;  %v5366_v15 = vld [vmem:[%s9660_s6 + $0x170] sm:$0xf0]  ;;  %v5340_v56 = vld [vmem:[%s9660_s6 + $0x128] sm:$0xf]  ;;  %v5533_v11 = vld [vmem:[%s9660_s6 + $0x6c] sm:$0xf]  ;;  %3831 = vmatpush.bf16.msrb.mxu2 %v5241_v2 }
 0x836   : > { %v3049_v41 = vsel %vm3034_vm2, %v3032_v4, %v5859_v20  ;;  %v3050_v58 = vsel %vm3034_vm2, %v3033_v7, %v5860_v43  ;;  %v5369_v36 = vor.u32 %v5563_v13, %v5366_v15  ;;  %v5341_v1 = vor.u32 %v5560_v32, %v5340_v56  ;;  %v5246_v16 = vld [vmem:[%s9660_s6 + $0x80] sm:$0xf0]  ;;  %v5212_v20 = vld [vmem:[%s9660_s6 + $0x30] sm:$0xf]  ;;  %v5214_v4 = vld [vmem:[%s9660_s6 + $0x48] sm:$0xf0] }
 0x837   : > { %v3066_v52 = vsel %vm3051_vm3, %v3049_v41, %v5864_v51  ;;  %v3067_v53 = vsel %vm3051_vm3, %v3050_v58, %v5865_v59  ;;  %v5249_v43 = vor.u32 %v5533_v11, %v5246_v16  ;;  %v5529_v59 = vld [vmem:[%s9660_s6 + $0x44] sm:$0xf0]  ;;  %v5526_v51 = vld [vmem:[%s9660_s6 + $0x34] sm:$0xf]  ;;  %v5220_v41 = vld [vmem:[%s9660_s6 + $0x38] sm:$0xf] }
 0x838   : > { %v3075_v12 = vpack.c.bf16 %v3067_v53, %v3066_v52  ;;  %3924 = vmatpush.bf16.msrb.mxu0 %v5369_v36  ;;  %3876 = vmatpush.bf16.msrb.mxu3 %v5341_v1  ;;  %v5213_v7 = vor.u32 %v5529_v59, %v5212_v20  ;;  %v5530_v58 = vld [vmem:[%s9660_s6 + $0x4c] sm:$0xf0]  ;;  %v5217_v52 = vor.u32 %v5526_v51, %v5214_v4  ;;  %v5222_v13 = vld [vmem:[%s9660_s6 + $0x50] sm:$0xf0]  ;;  %v5188_v36 = vld [vmem:[%s9660_s6] sm:$0xf] }
 0x839   : > { %v5221_v53 = vor.u32 %v5530_v58, %v5220_v41  ;;  %v5523_v56 = vld [vmem:[%s9660_s6 + $0x14] sm:$0xf0]  ;;  %v5520_v32 = vld [vmem:[%s9660_s6 + $0x4] sm:$0xf]  ;;  %v5190_v1 = vld [vmem:[%s9660_s6 + $0x18] sm:$0xf0] }
 0x83a   : > { %3183 = vmatmul.bf16.gmra.mxu0 %v3075_v12  ;;  %v5527_v12 = vld [vmem:[%s9660_s6 + $0x3c] sm:$0xf]  ;;  %3783 = vmatpush.bf16.msra.mxu1 %v5213_v7  ;;  %v5189_v29 = vor.u32 %v5523_v56, %v5188_v36  ;;  %v5193_v63 = vor.u32 %v5520_v32, %v5190_v1  ;;  %v9093_v16 = vld [vmem:[%s9657_s3] ss:$0 sm:$0xff] }
 0x83b   : > { %v5225_v15 = vor.u32 %v5527_v12, %v5222_v13  ;;  %3832 = vmatpush.bf16.msrb.mxu2 %v5217_v52  ;;  %v6392_v12 = vld [vmem:[%s6835_s19 + $0x50] sm:$0xff] }
 0x83c   : > { %3925 = vmatpush.bf16.msrb.mxu0 %v5345_v33  ;;  %3877 = vmatpush.bf16.msrb.mxu3 %v5317_v34  ;;  %v5524_v33 = vld [vmem:[%s9660_s6 + $0x1c] sm:$0xf0]  ;;  %v5521_v34 = vld [vmem:[%s9660_s6 + $0xc] sm:$0xf] }
 0x83d   : > { %v5197_v62 = vor.u32 %v5524_v33, %v5196_v6  ;;  %v5201_v8 = vor.u32 %v5521_v34, %v5198_v9 }
 0x83e   : > { %3784 = vmatpush.bf16.msra.mxu1 %v5189_v29 }
 0x83f   : > { %3833 = vmatpush.bf16.msrb.mxu2 %v5193_v63 }
 0x840   : > { %3926 = vmatpush.bf16.msrb.mxu0 %v5321_v57  ;;  %3878 = vmatpush.bf16.msrb.mxu3 %v5293_v50 }
 0x844   : > { %3927 = vmatpush.bf16.msrb.mxu0 %v5297_v40  ;;  %3879 = vmatpush.bf16.msrb.mxu3 %v5269_v45  ;;  %v6390_v40 = vld [vmem:[%s6835_s19 + $0x40] sm:$0xff]  ;;  %v6391_v45 = vld [vmem:[%s6835_s19 + $0x48] sm:$0xff] }
 0x848   : > { %3928 = vmatpush.bf16.msrb.mxu0 %v5273_v39  ;;  %3880 = vmatpush.bf16.msrb.mxu3 %v5245_v26 }
 0x84c   : > { %3929 = vmatpush.bf16.msrb.mxu0 %v5249_v43  ;;  %3881 = vmatpush.bf16.msrb.mxu3 %v5221_v53 }
 0x850   : > { %3930 = vmatpush.bf16.msrb.mxu0 %v5225_v15  ;;  %3882 = vmatpush.bf16.msrb.mxu3 %v5197_v62 }
 0x854   : > { %3931 = vmatpush.bf16.msrb.mxu0 %v5201_v8 }
 0x857   : > { %v3224_v10 = vpop.xlane.xlu0 %3223 }
 0x858   : > { %v3254_v57 = vmul.f32 %v3224_v10, %v7013_v31  ;;  %v6393_v10 = vld [vmem:[%s6835_s19 + $0x58] sm:$0xff] }
 0x85a   : > { %v3270_v42 = vadd.f32 1e-05, %v3254_v57 }
 0x85c   : > { %6158 = vrsqrt.f32 %v3270_v42  ;;  %vm3301_vm5 = vweird.f32 %v3270_v42 }
 0x85d   : > { %v3222_v49 = vpop.xlane.xlu1 %3221 }
 0x85e   : > { %v3253_v50 = vmul.f32 %v3222_v49, %v7013_v31  ;;  %v3169_v18 = vpop.f32.mrf.mxu0 }
 0x85f   : > { %v9080_v19 = vadd.f32 %v6390_v40, %v3169_v18 }
 0x860   : > { %v3269_v27 = vadd.f32 1e-05, %v3253_v50 }
 0x861   : > { %v3213_v54 = vmul.f32 %v9080_v19, %v9080_v19 }
 0x862   : > { %v6159_v55 = vpop.eup %6158  ;;  %6160 = vrsqrt.f32 %v3269_v27  ;;  %vm3291_vm8 = vweird.f32 %v3269_v27 }
 0x863   : > { %v3296_v24 = vmul.f32 %v6159_v55, %v3270_v42  ;;  %3237 = vadd.xlane.f32.xlu0 %v3213_v54  ;;  %vm3302_vm4 = vweird.f32 %v6159_v55 }
 0x864   : > { %vm3303_vm6 = vmor %vm3301_vm5, %vm3302_vm4 }
 0x865   : > { %v3297_v28 = vmul.f32 %v6159_v55, %v3296_v24 }
 0x866   : > { %v3171_v37 = vpop.f32.mrf.mxu0 }
 0x867   : > { %v3298_v3 = vmul.f32 0.5, %v3297_v28  ;;  %v9085_v47 = vadd.f32 %v6391_v45, %v3171_v37 }
 0x868   : > { %v6161_v21 = vpop.eup %6160 }
 0x869   : > { %v3299_v39 = vsub.f32 1.5, %v3298_v3  ;;  %v3286_v25 = vmul.f32 %v6161_v21, %v3269_v27  ;;  %v3214_v38 = vmul.f32 %v9085_v47, %v9085_v47  ;;  %vm3292_vm7 = vweird.f32 %v6161_v21 }
 0x86a   : > { %vm3293_vm9 = vmor %vm3291_vm8, %vm3292_vm7 }
 0x86b   : > { %v3300_v22 = vmul.f32 %v6159_v55, %v3299_v39  ;;  %v3287_v60 = vmul.f32 %v6161_v21, %v3286_v25  ;;  %3239 = vadd.xlane.f32.xlu1 %v3214_v38 }
 0x86d   : > { %v3288_v44 = vmul.f32 0.5, %v3287_v60  ;;  %v3304_v61 = vsel %vm3303_vm6, %v6159_v55, %v3300_v22 }
 0x86e   : > { %v3446_v43 = vmul.f32 %v3304_v61, %v8834_v0 }
 0x86f   : > { %v3289_v5 = vsub.f32 1.5, %v3288_v44  ;;  %v3226_v2 = vpop.xlane.xlu2 %3225 }
 0x870   : > { %v3255_v26 = vmul.f32 %v3226_v2, %v7013_v31  ;;  %v3466_v7 = vmul.f32 %v9093_v16, %v3446_v43 }
 0x871   : > { %v3290_v11 = vmul.f32 %v6161_v21, %v3289_v5 }
 0x872   : > { %v3271_v20 = vadd.f32 1e-05, %v3255_v26 }
 0x873   : > { %v3294_v59 = vsel %vm3293_vm9, %v6161_v21, %v3290_v11 }
 0x874   : > { %v3445_v51 = vmul.f32 %v3294_v59, %v8845_v17  ;;  %6162 = vrsqrt.f32 %v3271_v20  ;;  %vm3311_vm11 = vweird.f32 %v3271_v20 }
 0x876   : > { %v3465_v4 = vmul.f32 %v9093_v16, %v3445_v51 }
 0x877   : > { %v3228_v41 = vpop.xlane.xlu1 %3227  ;;  %v3174_v58 = vpop.f32.mrf.mxu0 }
 0x878   : > { %v9099_v52 = vpack.c.bf16 %v3466_v7, %v3465_v4  ;;  %v3256_v53 = vmul.f32 %v3228_v41, %v7013_v31  ;;  %v9103_v13 = vadd.f32 %v6392_v12, %v3174_v58 }
 0x87a   : > { %v6163_v15 = vpop.eup %6162  ;;  %v3272_v36 = vadd.f32 1e-05, %v3256_v53  ;;  %3785 = vmatmul.bf16.vlgmr.msra.gmra.mxu1 %v9099_v52  ;;  %3834 = vmatmul.bf16.vlgmr.msrb.gmra.mxu2 %v9099_v52  ;;  %v3215_v56 = vmul.f32 %v9103_v13, %v9103_v13  ;;  %v6394_v53 = vld [vmem:[%s6835_s19 + $0x60] sm:$0xff] }
 0x87b   : > { %v3306_v32 = vmul.f32 %v6163_v15, %v3271_v20  ;;  %3883 = vmatmul.bf16.vlgmr.msrb.gmra.mxu3 %v9099_v52  ;;  %3932 = vmatmul.bf16.vlgmr.msrb.gmra.mxu0 %v9099_v52  ;;  %vm3312_vm10 = vweird.f32 %v6163_v15 }
 0x87c   : > { %6164 = vrsqrt.f32 %v3272_v36  ;;  %3241 = vadd.xlane.f32.xlu2 %v3215_v56  ;;  %vm3313_vm12 = vmor %vm3311_vm11, %vm3312_vm10  ;;  %vm3321_vm14 = vweird.f32 %v3272_v36 }
 0x87d   : > { %v3307_v29 = vmul.f32 %v6163_v15, %v3306_v32 }
 0x87f   : > { %v3308_v1 = vmul.f32 0.5, %v3307_v29  ;;  %v3176_v6 = vpop.f32.mrf.mxu0  ;;  %v3230_v33 = vpop.xlane.xlu2 %3229 }
 0x880   : > { %v9112_v63 = vadd.f32 %v6393_v10, %v3176_v6  ;;  %v3257_v62 = vmul.f32 %v3230_v33, %v7013_v31  ;;  %v6395_v10 = vld [vmem:[%s6835_s19 + $0x68] sm:$0xff] }
 0x881   : > { %v3309_v34 = vsub.f32 1.5, %v3308_v1 }
 0x882   : > { %v6165_v9 = vpop.eup %6164  ;;  %v3273_v57 = vadd.f32 1e-05, %v3257_v62  ;;  %v3216_v8 = vmul.f32 %v9112_v63, %v9112_v63 }
 0x883   : > { %v3316_v42 = vmul.f32 %v6165_v9, %v3272_v36  ;;  %v3310_v49 = vmul.f32 %v6163_v15, %v3309_v34  ;;  %vm3322_vm13 = vweird.f32 %v6165_v9 }
 0x884   : > { %6166 = vrsqrt.f32 %v3273_v57  ;;  %3243 = vadd.xlane.f32.xlu0 %v3216_v8  ;;  %vm3323_vm15 = vmor %vm3321_vm14, %vm3322_vm13  ;;  %vm3331_vm1 = vweird.f32 %v3273_v57 }
 0x885   : > { %v3317_v50 = vmul.f32 %v6165_v9, %v3316_v42  ;;  %v3314_v54 = vsel %vm3313_vm12, %v6163_v15, %v3310_v49 }
 0x886   : > { %v3447_v45 = vmul.f32 %v3314_v54, %v8864_v35 }
 0x887   : > { %v3318_v18 = vmul.f32 0.5, %v3317_v50  ;;  %v3232_v40 = vpop.xlane.xlu0 %3231 }
 0x888   : > { %v3258_v27 = vmul.f32 %v3232_v40, %v7013_v31  ;;  %v3467_v22 = vmul.f32 %v9093_v16, %v3447_v45 }
 0x889   : > { %v3319_v55 = vsub.f32 1.5, %v3318_v18 }
 0x88a   : > { %v6167_v24 = vpop.eup %6166  ;;  %v3274_v28 = vadd.f32 1e-05, %v3258_v27 }
 0x88b   : > { %v3320_v37 = vmul.f32 %v6165_v9, %v3319_v55  ;;  %v3326_v3 = vmul.f32 %v6167_v24, %v3273_v57  ;;  %vm3332_vm0 = vweird.f32 %v6167_v24 }
 0x88c   : > { %6168 = vrsqrt.f32 %v3274_v28  ;;  %vm3333_vm2 = vmor %vm3331_vm1, %vm3332_vm0  ;;  %vm3341_vm4 = vweird.f32 %v3274_v28 }
 0x88d   : > { %v3324_v21 = vsel %vm3323_vm15, %v6165_v9, %v3320_v37  ;;  %v3327_v39 = vmul.f32 %v6167_v24, %v3326_v3  ;;  %v6396_v3 = vld [vmem:[%s6835_s19 + $0x70] sm:$0xff] }
 0x88e   : > { %v3448_v25 = vmul.f32 %v3324_v21, %v8869_v23 }
 0x88f   : > { %v3328_v38 = vmul.f32 0.5, %v3327_v39 }
 0x890   : > { %v3468_v60 = vmul.f32 %v9093_v16, %v3448_v25 }
 0x891   : > { %v3329_v44 = vsub.f32 1.5, %v3328_v38 }
 0x892   : > { %v6169_v61 = vpop.eup %6168  ;;  %v9122_v5 = vpack.c.bf16 %v3468_v60, %v3467_v22 }
 0x893   : > { %v3336_v2 = vmul.f32 %v6169_v61, %v3274_v28  ;;  %v3330_v26 = vmul.f32 %v6167_v24, %v3329_v44  ;;  %vm3342_vm3 = vweird.f32 %v6169_v61 }
 0x894   : > { %3790 = vmatmul.bf16.gmra.mxu1 %v9122_v5  ;;  %3839 = vmatmul.bf16.gmra.mxu2 %v9122_v5  ;;  %vm3343_vm5 = vmor %vm3341_vm4, %vm3342_vm3 }
 0x895   : > { %v3337_v11 = vmul.f32 %v6169_v61, %v3336_v2  ;;  %3888 = vmatmul.bf16.gmra.mxu3 %v9122_v5  ;;  %3937 = vmatmul.bf16.gmra.mxu0 %v9122_v5  ;;  %v3334_v20 = vsel %vm3333_vm2, %v6167_v24, %v3330_v26 }
 0x896   : > { %v3449_v7 = vmul.f32 %v3334_v20, %v8880_v14 }
 0x897   : > { %v3338_v43 = vmul.f32 0.5, %v3337_v11  ;;  %v6397_v11 = vld [vmem:[%s6835_s19 + $0x78] sm:$0xff]  ;;  %s4865_s19 = sshll.u32 %s4862_s26, 4  ;;  %s4866_s19 = int_to_ptr.hbm [resolvable:$true] %s4865_s19 }
 0x898   : > { %v3469_v36 = vmul.f32 %v9093_v16, %v3449_v7  ;;  %s6562_s15 = sshra.s32 %s4866_s19, 4  ;;  %s6563_s15 = int_to_ptr.hbm [resolvable:$true] %s6562_s15 }
 0x899   : > { %v3339_v59 = vsub.f32 1.5, %v3338_v43  ;;  %s6564_s9 = scalar_lea.hbm %s6563_s15, 128  ;;  %p6569_p11 = scmp.lt.s32.totalorder %s6563_s15, %s9666_s12 }
 0x89a   : > { %p6565_p1 = scmp.ne.s32.totalorder %s6563_s15, %s6564_s9  ;;  %p6570_p2 = scmp.lt.s32.totalorder %s6568_s14, %s6564_s9 }
 0x89b   : > { %v3340_v51 = vmul.f32 %v6169_v61, %v3339_v59 }
 0x89c   : > { %p6566_p4 = pnand %p6565_p1, %p6796_p3  ;;  %p6571_p9 = por %p6570_p2, %p6569_p11 }
 0x89d   : > { %v3344_v4 = vsel %vm3343_vm5, %v6169_v61, %v3340_v51 }
 0x89e   : > { %v3450_v41 = vmul.f32 %v3344_v4, %v8891_v46  ;;  %v3179_v58 = vpop.f32.mrf.mxu0  ;;  %p6567_p8 = pneg %p6566_p4 }
 0x89f   : > { %v9131_v12 = vadd.f32 %v6394_v53, %v3179_v58  ;;  %v3234_v15 = vpop.xlane.xlu1 %3233  ;;  %v5374_v58 = vld [vmem:[%s9660_s6 + $0x178] sm:$0xf0] }
 0x8a0   : > { %v3470_v56 = vmul.f32 %v9093_v16, %v3450_v41  ;;  %v3259_v32 = vmul.f32 %v3234_v15, %v7013_v31  ;;  %v5564_v41 = vld [vmem:[%s9660_s6 + $0x164] sm:$0xf]  ;;  %v5372_v15 = vld [vmem:[%s9660_s6 + $0x160] sm:$0xf]  ;;  %p6572_p10 = pnand %p6571_p9, %p6567_p8 }
 0x8a1   : > { %v3217_v29 = vmul.f32 %v9131_v12, %v9131_v12  ;;  %v5377_v53 = vor.u32 %v5564_v41, %v5374_v58  ;;  %v5326_v58 = vld [vmem:[%s9660_s6 + $0x118] sm:$0xf0] }
 0x8a2   : > { %v9138_v1 = vpack.c.bf16 %v3470_v56, %v3469_v36  ;;  %v3275_v6 = vadd.f32 1e-05, %v3259_v32  ;;  %v5567_v36 = vld [vmem:[%s9660_s6 + $0x174] sm:$0xf0] }
 0x8a3   : > { %3245 = vadd.xlane.f32.xlu1 %v3217_v29  ;;  %v5373_v56 = vor.u32 %v5567_v36, %v5372_v15  ;;  %4022 = vmatpush.bf16.msra.mxu2 %v5377_v53  ;;  %v5324_v15 = vld [vmem:[%s9660_s6 + $0x100] sm:$0xf]  ;;  %v5555_v36 = vld [vmem:[%s9660_s6 + $0x114] sm:$0xf0] }
 0x8a4   : > { %6170 = vrsqrt.f32 %v3275_v6  ;;  %3795 = vmatmul.bf16.gmra.mxu1 %v9138_v1  ;;  %3844 = vmatmul.bf16.gmra.mxu2 %v9138_v1  ;;  %vm3351_vm7 = vweird.f32 %v3275_v6 }
 0x8a5   : > { %3893 = vmatmul.bf16.gmra.mxu3 %v9138_v1  ;;  %3942 = vmatmul.bf16.gmra.mxu0 %v9138_v1 }
 0x8a6   : > { %v3181_v33 = vpop.f32.mrf.mxu0  ;;  %3973 = vmatpush.bf16.msrb.mxu1 %v5373_v56 }
 0x8a7   : > { %v9145_v62 = vadd.f32 %v6395_v10, %v3181_v33  ;;  %v3236_v34 = vpop.xlane.xlu2 %3235 }
 0x8a8   : > { %v3260_v9 = vmul.f32 %v3236_v34, %v7013_v31 }
 0x8a9   : > { %9721 = vst [vmem:[#allocation18_spill] sm:$0xff] %v9145_v62  ;;  %v3218_v57 = vmul.f32 %v9145_v62, %v9145_v62 }
 0x8aa   : > { %v6171_v8 = vpop.eup %6170  ;;  %v3276_v42 = vadd.f32 1e-05, %v3260_v9 }
 0x8ab   : > { %v3346_v49 = vmul.f32 %v6171_v8, %v3275_v6  ;;  %3247 = vadd.xlane.f32.xlu2 %v3218_v57  ;;  %vm3352_vm6 = vweird.f32 %v6171_v8 }
 0x8ac   : > { %6172 = vrsqrt.f32 %v3276_v42  ;;  %vm3353_vm8 = vmor %vm3351_vm7, %vm3352_vm6  ;;  %vm3361_vm10 = vweird.f32 %v3276_v42 }
 0x8ad   : > { %v3347_v50 = vmul.f32 %v6171_v8, %v3346_v49 }
 0x8af   : > { %v3348_v18 = vmul.f32 0.5, %v3347_v50 }
 0x8b1   : > { %v3349_v40 = vsub.f32 1.5, %v3348_v18 }
 0x8b2   : > { %v6173_v27 = vpop.eup %6172 }
 0x8b3   : > { %v3356_v54 = vmul.f32 %v6173_v27, %v3276_v42  ;;  %v3350_v55 = vmul.f32 %v6171_v8, %v3349_v40  ;;  %vm3362_vm9 = vweird.f32 %v6173_v27  ;;  %v5350_v42 = vld [vmem:[%s9660_s6 + $0x148] sm:$0xf0] }
 0x8b4   : > { %vm3363_vm11 = vmor %vm3361_vm10, %vm3362_vm9 }
 0x8b5   : > { %v3357_v24 = vmul.f32 %v6173_v27, %v3356_v54  ;;  %v3354_v21 = vsel %vm3353_vm8, %v6171_v8, %v3350_v55  ;;  %v5558_v8 = vld [vmem:[%s9660_s6 + $0x134] sm:$0xf] }
 0x8b6   : > { %v3451_v22 = vmul.f32 %v3354_v21, %v8922_v30  ;;  %v5353_v50 = vor.u32 %v5558_v8, %v5350_v42 }
 0x8b7   : > { %v3358_v28 = vmul.f32 0.5, %v3357_v24  ;;  %v3184_v37 = vpop.f32.mrf.mxu0 }
 0x8b8   : > { %v9151_v45 = vadd.f32 %v6396_v3, %v3184_v37  ;;  %v3471_v2 = vmul.f32 %v9093_v16, %v3451_v22  ;;  %4023 = vmatpush.bf16.msra.mxu2 %v5353_v50  ;;  %v5302_v50 = vld [vmem:[%s9660_s6 + $0xe8] sm:$0xf0] }
 0x8b9   : > { %v3359_v39 = vsub.f32 1.5, %v3358_v28 }
 0x8ba   : > { %9722 = vst [vmem:[#allocation19_spill] sm:$0xff] %v9151_v45  ;;  %v3219_v25 = vmul.f32 %v9151_v45, %v9151_v45 }
 0x8bb   : > { %v3360_v38 = vmul.f32 %v6173_v27, %v3359_v39  ;;  %v5348_v39 = vld [vmem:[%s9660_s6 + $0x130] sm:$0xf] }
 0x8bc   : > { %3249 = vadd.xlane.f32.xlu0 %v3219_v25  ;;  %v5561_v25 = vld [vmem:[%s9660_s6 + $0x144] sm:$0xf0] }
 0x8bd   : > { %v3364_v60 = vsel %vm3363_vm11, %v6173_v27, %v3360_v38  ;;  %v5349_v22 = vor.u32 %v5561_v25, %v5348_v39 }
 0x8be   : > { %v3452_v44 = vmul.f32 %v3364_v60, %v8927_v48 }
 0x8bf   : > { %v3186_v61 = vpop.f32.mrf.mxu0  ;;  %3974 = vmatpush.bf16.msrb.mxu1 %v5349_v22 }
 0x8c0   : > { %v3472_v26 = vmul.f32 %v9093_v16, %v3452_v44  ;;  %v9160_v43 = vadd.f32 %v6397_v11, %v3186_v61 }
 0x8c2   : > { %9723 = vst [vmem:[#allocation20_spill] sm:$0xff] %v9160_v43  ;;  %v9162_v20 = vpack.c.bf16 %v3472_v26, %v3471_v2  ;;  %v3220_v59 = vmul.f32 %v9160_v43, %v9160_v43 }
 0x8c4   : > { %3251 = vadd.xlane.f32.xlu1 %v3220_v59  ;;  %3800 = vmatmul.bf16.gmra.mxu1 %v9162_v20 }
 0x8c5   : > { %3849 = vmatmul.bf16.gmra.mxu2 %v9162_v20  ;;  %3898 = vmatmul.bf16.gmra.mxu3 %v9162_v20 }
 0x8c6   : > { %3947 = vmatmul.bf16.gmra.mxu0 %v9162_v20 }
 0x8d6   : > { %v3238_v51 = vpop.xlane.xlu0 %3237 }
 0x8d7   : > { %v3261_v7 = vmul.f32 %v3238_v51, %v7013_v31 }
 0x8d9   : > { %v3277_v4 = vadd.f32 1e-05, %v3261_v7 }
 0x8db   : > { %6174 = vrsqrt.f32 %v3277_v4  ;;  %vm3371_vm13 = vweird.f32 %v3277_v4 }
 0x8de   : > { %v3240_v32 = vpop.xlane.xlu1 %3239 }
 0x8df   : > { %v3262_v29 = vmul.f32 %v3240_v32, %v7013_v31  ;;  %v5325_v32 = vor.u32 %v5555_v36, %v5324_v15 }
 0x8e1   : > { %v6175_v6 = vpop.eup %6174  ;;  %v3278_v33 = vadd.f32 1e-05, %v3262_v29  ;;  %3975 = vmatpush.bf16.msrb.mxu1 %v5325_v32  ;;  %v5575_v32 = vld [vmem:[%s9661_s7 + $0x38] sm:$0xff] }
 0x8e2   : > { %v3366_v10 = vmul.f32 %v6175_v6, %v3277_v4  ;;  %vm3372_vm12 = vweird.f32 %v6175_v6  ;;  %v5552_v4 = vld [vmem:[%s9660_s6 + $0x104] sm:$0xf]  ;;  %4671 = vmatpush.bf16.msra.mxu3 %v5575_v32 }
 0x8e3   : > { %6176 = vrsqrt.f32 %v3278_v33  ;;  %vm3373_vm14 = vmor %vm3371_vm13, %vm3372_vm12  ;;  %vm3381_vm0 = vweird.f32 %v3278_v33  ;;  %v5329_v53 = vor.u32 %v5552_v4, %v5326_v58 }
 0x8e4   : > { %v3367_v34 = vmul.f32 %v6175_v6, %v3366_v10 }
 0x8e5   : > { %4024 = vmatpush.bf16.msra.mxu2 %v5329_v53 }
 0x8e6   : > { %v3368_v9 = vmul.f32 0.5, %v3367_v34 }
 0x8e8   : > { %v3369_v57 = vsub.f32 1.5, %v3368_v9 }
 0x8e9   : > { %v6177_v49 = vpop.eup %6176 }
 0x8ea   : > { %v3376_v18 = vmul.f32 %v6177_v49, %v3278_v33  ;;  %v3370_v40 = vmul.f32 %v6175_v6, %v3369_v57  ;;  %vm3382_vm15 = vweird.f32 %v6177_v49 }
 0x8eb   : > { %vm3383_vm1 = vmor %vm3381_vm0, %vm3382_vm15 }
 0x8ec   : > { %v3377_v27 = vmul.f32 %v6177_v49, %v3376_v18  ;;  %v3374_v24 = vsel %vm3373_vm14, %v6175_v6, %v3370_v40 }
 0x8ed   : > { %v3453_v38 = vmul.f32 %v3374_v24, %v9080_v19  ;;  %v5300_v24 = vld [vmem:[%s9660_s6 + $0xd0] sm:$0xf] }
 0x8ee   : > { %v3378_v54 = vmul.f32 0.5, %v3377_v27 }
 0x8ef   : > { %v3242_v55 = vpop.xlane.xlu2 %3241  ;;  %v3473_v61 = vmul.f32 %v9093_v16, %v3453_v38 }
 0x8f0   : > { %v3379_v28 = vsub.f32 1.5, %v3378_v54  ;;  %v3263_v37 = vmul.f32 %v3242_v55, %v7013_v31 }
 0x8f2   : > { %v3380_v3 = vmul.f32 %v6177_v49, %v3379_v28  ;;  %v3279_v21 = vadd.f32 1e-05, %v3263_v37  ;;  %v5549_v28 = vld [vmem:[%s9660_s6 + $0xe4] sm:$0xf0] }
 0x8f4   : > { %v3384_v60 = vsel %vm3383_vm1, %v6177_v49, %v3380_v3  ;;  %6178 = vrsqrt.f32 %v3279_v21  ;;  %vm3391_vm3 = vweird.f32 %v3279_v21  ;;  %v5546_v49 = vld [vmem:[%s9660_s6 + $0xd4] sm:$0xf] }
 0x8f5   : > { %v3454_v44 = vmul.f32 %v3384_v60, %v9085_v47  ;;  %v5305_v40 = vor.u32 %v5546_v49, %v5302_v50  ;;  %v5540_v60 = vld [vmem:[%s9660_s6 + $0xa4] sm:$0xf] }
 0x8f7   : > { %v3474_v2 = vmul.f32 %v9093_v16, %v3454_v44  ;;  %v3244_v26 = vpop.xlane.xlu0 %3243  ;;  %4025 = vmatpush.bf16.msra.mxu2 %v5305_v40  ;;  %v5278_v44 = vld [vmem:[%s9660_s6 + $0xb8] sm:$0xf0]  ;;  %v9256_v15 = vpop.f32.mrf.mxu1 }
 0x8f8   : > { %v3264_v11 = vmul.f32 %v3244_v26, %v7013_v31 }
 0x8f9   : > { %v9202_v59 = vpack.c.bf16 %v3474_v2, %v3473_v61  ;;  %v5281_v2 = vor.u32 %v5540_v60, %v5278_v44 }
 0x8fa   : > { %v6179_v51 = vpop.eup %6178  ;;  %v3280_v7 = vadd.f32 1e-05, %v3264_v11 }
 0x8fb   : > { %v3386_v41 = vmul.f32 %v6179_v51, %v3279_v21  ;;  %3805 = vmatmul.bf16.gmra.mxu1 %v9202_v59  ;;  %3854 = vmatmul.bf16.gmra.mxu2 %v9202_v59  ;;  %vm3392_vm2 = vweird.f32 %v6179_v51  ;;  %v5301_v21 = vor.u32 %v5549_v28, %v5300_v24 }
 0x8fc   : > { %6180 = vrsqrt.f32 %v3280_v7  ;;  %3903 = vmatmul.bf16.gmra.mxu3 %v9202_v59  ;;  %3952 = vmatmul.bf16.gmra.mxu0 %v9202_v59  ;;  %vm3393_vm4 = vmor %vm3391_vm3, %vm3392_vm2  ;;  %vm3401_vm6 = vweird.f32 %v3280_v7 }
 0x8fd   : > { %v3387_v56 = vmul.f32 %v6179_v51, %v3386_v41  ;;  %3976 = vmatpush.bf16.msrb.mxu1 %v5301_v21  ;;  %4026 = vmatpush.bf16.msra.mxu2 %v5281_v2  ;;  %v5543_v41 = vld [vmem:[%s9660_s6 + $0xb4] sm:$0xf0]  ;;  %v5537_v21 = vld [vmem:[%s9660_s6 + $0x84] sm:$0xf0] }
 0x8ff   : > { %v3388_v29 = vmul.f32 0.5, %v3387_v56  ;;  %v9270_v49 = vpop.f32.mrf.mxu1 }
 0x901   : > { %v3389_v6 = vsub.f32 1.5, %v3388_v29 }
 0x902   : > { %v6181_v33 = vpop.eup %6180 }
 0x903   : > { %v3396_v10 = vmul.f32 %v6181_v33, %v3280_v7  ;;  %v3390_v34 = vmul.f32 %v6179_v51, %v3389_v6  ;;  %vm3402_vm5 = vweird.f32 %v6181_v33  ;;  %v5276_v7 = vld [vmem:[%s9660_s6 + $0xa0] sm:$0xf]  ;;  %v5534_v6 = vld [vmem:[%s9660_s6 + $0x74] sm:$0xf] }
 0x904   : > { %vm3403_vm7 = vmor %vm3401_vm6, %vm3402_vm5  ;;  %v5277_v58 = vor.u32 %v5543_v41, %v5276_v7  ;;  %v4074_v7 = vmax.f32 %v9270_v49, -60.0 }
 0x905   : > { %v3397_v9 = vmul.f32 %v6181_v33, %v3396_v10  ;;  %v3394_v8 = vsel %vm3393_vm4, %v6179_v51, %v3390_v34 }
 0x906   : > { %v3455_v27 = vmul.f32 %v3394_v8, %v9103_v13  ;;  %3977 = vmatpush.bf16.msrb.mxu1 %v5277_v58  ;;  %v5574_v8 = vld [vmem:[%s9661_s7 + $0x30] sm:$0xff]  ;;  %v4071_v58 = vmax.f32 %v9256_v15, -60.0 }
 0x907   : > { %v3398_v57 = vmul.f32 0.5, %v3397_v9  ;;  %4672 = vmatpush.bf16.msra.mxu3 %v5574_v8  ;;  %v5569_v8 = vld [vmem:[%s9661_s7 + $0x8] sm:$0xff] }
 0x908   : > { %v3475_v37 = vmul.f32 %v9093_v16, %v3455_v27  ;;  %v5573_v27 = vld [vmem:[%s9661_s7 + $0x28] sm:$0xff] }
 0x909   : > { %v3399_v42 = vsub.f32 1.5, %v3398_v57 }
 0x90b   : > { %v3400_v18 = vmul.f32 %v6181_v33, %v3399_v42  ;;  %4673 = vmatpush.bf16.msra.mxu3 %v5573_v27 }
 0x90d   : > { %v3404_v54 = vsel %vm3403_vm7, %v6181_v33, %v3400_v18  ;;  %v5254_v33 = vld [vmem:[%s9660_s6 + $0x88] sm:$0xf0] }
 0x90e   : > { %v3456_v55 = vmul.f32 %v3404_v54, %v9112_v63  ;;  %v5257_v57 = vor.u32 %v5534_v6, %v5254_v33  ;;  %v4119_v33 = vsub.f32 0.0, %v4071_v58  ;;  %v3933_v58 = vpop.f32.mrf.mxu0 }
 0x910   : > { %v3476_v3 = vmul.f32 %v9093_v16, %v3456_v55  ;;  %4027 = vmatpush.bf16.msra.mxu2 %v5257_v57  ;;  %v4167_v27 = vmul.f32 1.442695, %v4119_v33 }
 0x911   : > { %v9290_v60 = vpop.f32.mrf.mxu1 }
 0x912   : > { %v9236_v39 = vpack.c.bf16 %v3476_v3, %v3475_v37  ;;  %v5252_v37 = vld [vmem:[%s9660_s6 + $0x70] sm:$0xf] }
 0x914   : > { %3810 = vmatmul.bf16.gmra.mxu1 %v9236_v39  ;;  %3859 = vmatmul.bf16.gmra.mxu2 %v9236_v39 }
 0x915   : > { %3908 = vmatmul.bf16.gmra.mxu3 %v9236_v39  ;;  %3957 = vmatmul.bf16.gmra.mxu0 %v9236_v39 }
 0x916   : > { %v3246_v25 = vpop.xlane.xlu1 %3245 }
 0x917   : > { %v3265_v38 = vmul.f32 %v3246_v25, %v7013_v31  ;;  %v5572_v25 = vld [vmem:[%s9661_s7 + $0x20] sm:$0xff] }
 0x918   : > { %4674 = vmatpush.bf16.msra.mxu3 %v5572_v25 }
 0x919   : > { %v3281_v22 = vadd.f32 1e-05, %v3265_v38 }
 0x91b   : > { %6182 = vrsqrt.f32 %v3281_v22  ;;  %vm3411_vm9 = vweird.f32 %v3281_v22 }
 0x91e   : > { %v3248_v61 = vpop.xlane.xlu2 %3247 }
 0x91f   : > { %v3266_v26 = vmul.f32 %v3248_v61, %v7013_v31 }
 0x921   : > { %v6183_v11 = vpop.eup %6182  ;;  %v3282_v51 = vadd.f32 1e-05, %v3266_v26 }
 0x922   : > { %v3406_v4 = vmul.f32 %v6183_v11, %v3281_v22  ;;  %vm3412_vm8 = vweird.f32 %v6183_v11  ;;  %v5253_v22 = vor.u32 %v5537_v21, %v5252_v37  ;;  %v5204_v37 = vld [vmem:[%s9660_s6 + $0x10] sm:$0xf]  ;;  %v5568_v21 = vld [vmem:[%s9661_s7] sm:$0xff] }
 0x923   : > { %6184 = vrsqrt.f32 %v3282_v51  ;;  %vm3413_vm10 = vmor %vm3411_vm9, %vm3412_vm8  ;;  %vm3421_vm12 = vweird.f32 %v3282_v51 }
 0x924   : > { %v3407_v53 = vmul.f32 %v6183_v11, %v3406_v4  ;;  %3978 = vmatpush.bf16.msrb.mxu1 %v5253_v22 }
 0x926   : > { %v3408_v36 = vmul.f32 0.5, %v3407_v53  ;;  %v5230_v53 = vld [vmem:[%s9660_s6 + $0x58] sm:$0xf0] }
 0x928   : > { %v3409_v56 = vsub.f32 1.5, %v3408_v36 }
 0x929   : > { %v6185_v29 = vpop.eup %6184 }
 0x92a   : > { %v3416_v10 = vmul.f32 %v6185_v29, %v3282_v51  ;;  %v3410_v34 = vmul.f32 %v6183_v11, %v3409_v56  ;;  %vm3422_vm11 = vweird.f32 %v6185_v29  ;;  %v5570_v56 = vld [vmem:[%s9661_s7 + $0x10] sm:$0xff] }
 0x92b   : > { %vm3423_vm13 = vmor %vm3421_vm12, %vm3422_vm11 }
 0x92c   : > { %v3417_v9 = vmul.f32 %v6185_v29, %v3416_v10  ;;  %v3414_v18 = vsel %vm3413_vm10, %v6183_v11, %v3410_v34  ;;  %v5571_v11 = vld [vmem:[%s9661_s7 + $0x18] sm:$0xff]  ;;  %v5228_v10 = vld [vmem:[%s9660_s6 + $0x40] sm:$0xf] }
 0x92d   : > { %v3457_v24 = vmul.f32 %v3414_v18, %v9131_v12  ;;  %4675 = vmatpush.bf16.msra.mxu3 %v5571_v11  ;;  %v5531_v34 = vld [vmem:[%s9660_s6 + $0x54] sm:$0xf0] }
 0x92e   : > { %v3418_v42 = vmul.f32 0.5, %v3417_v9  ;;  %v5229_v57 = vor.u32 %v5531_v34, %v5228_v10 }
 0x92f   : > { %v3250_v50 = vpop.xlane.xlu0 %3249  ;;  %v3477_v44 = vmul.f32 %v9093_v16, %v3457_v24 }
 0x930   : > { %v3419_v40 = vsub.f32 1.5, %v3418_v42  ;;  %v3267_v54 = vmul.f32 %v3250_v50, %v7013_v31  ;;  %v9328_v42 = vpop.f32.mrf.mxu1  ;;  %3979 = vmatpush.bf16.msrb.mxu1 %v5229_v57 }
 0x931   : > { %4676 = vmatpush.bf16.msra.mxu3 %v5570_v56 }
 0x932   : > { %v3420_v55 = vmul.f32 %v6185_v29, %v3419_v40  ;;  %v9277_v28 = vadd.f32 1e-05, %v3267_v54  ;;  %v5522_v54 = vld [vmem:[%s9660_s6 + $0x14] sm:$0xf] }
 0x934   : > { %v3424_v3 = vsel %vm3423_vm13, %v6185_v29, %v3420_v55  ;;  %6186 = vrsqrt.f32 %v9277_v28  ;;  %v4122_v29 = vsub.f32 0.0, %v4074_v7  ;;  %v5206_v55 = vld [vmem:[%s9660_s6 + $0x28] sm:$0xf0]  ;;  %vm3431_vm15 = vweird.f32 %v9277_v28 }
 0x935   : > { %v3458_v38 = vmul.f32 %v3424_v3, %v9145_v62  ;;  %4677 = vmatpush.bf16.msra.mxu3 %v5569_v8  ;;  %v5525_v3 = vld [vmem:[%s9660_s6 + $0x24] sm:$0xf0]  ;;  %v5209_v25 = vor.u32 %v5522_v54, %v5206_v55 }
 0x936   : > { %v4173_v50 = vmul.f32 1.442695, %v4122_v29 }
 0x937   : > { %v3478_v61 = vmul.f32 %v9093_v16, %v3458_v38  ;;  %v3252_v2 = vpop.xlane.xlu1 %3251  ;;  %v5205_v38 = vor.u32 %v5525_v3, %v5204_v37 }
 0x938   : > { %v3268_v26 = vmul.f32 %v3252_v2, %v7013_v31  ;;  %v5528_v31 = vld [vmem:[%s9660_s6 + $0x44] sm:$0xf] }
 0x939   : > { %v9298_v51 = vpack.c.bf16 %v3478_v61, %v3477_v44  ;;  %v5233_v32 = vor.u32 %v5528_v31, %v5230_v53  ;;  %4678 = vmatpush.bf16.msra.mxu3 %v5568_v21  ;;  %3980 = vmatpush.bf16.msrb.mxu1 %v5205_v38  ;;  %v5583_v61 = vld [vmem:[%s9661_s7 + $0x78] sm:$0xff]  ;;  %v9351_v31 = vpop.f32.mrf.mxu1 }
 0x93a   : > { %v9301_v4 = vadd.f32 1e-05, %v3268_v26  ;;  %v6187_v41 = vpop.eup %6186  ;;  %4720 = vmatpush.bf16.msra.mxu0 %v5583_v61  ;;  %v4080_v26 = vmax.f32 %v9328_v42, -60.0  ;;  %v4083_v21 = vmax.f32 %v9351_v31, -60.0 }
 0x93b   : > { %3815 = vmatmul.bf16.gmra.mxu1 %v9298_v51  ;;  %3864 = vmatmul.bf16.gmra.mxu2 %v9298_v51  ;;  %v3426_v36 = vmul.f32 %v6187_v41, %v9277_v28  ;;  %vm3432_vm14 = vweird.f32 %v6187_v41 }
 0x93c   : > { %3913 = vmatmul.bf16.gmra.mxu3 %v9298_v51  ;;  %3962 = vmatmul.bf16.gmra.mxu0 %v9298_v51  ;;  %6188 = vrsqrt.f32 %v9301_v4  ;;  %vm3433_vm0 = vmor %vm3431_vm15, %vm3432_vm14  ;;  %vm3441_vm2 = vweird.f32 %v9301_v4  ;;  %v4128_v29 = vsub.f32 0.0, %v4080_v26 }
 0x93d   : > { %v3427_v6 = vmul.f32 %v6187_v41, %v3426_v36  ;;  %4028 = vmatpush.bf16.msra.mxu2 %v5233_v32  ;;  %6190 = vpow2.f32 %v4173_v50  ;;  %v4077_v36 = vmax.f32 %v9290_v60, -60.0 }
 0x93e   : > { %6192 = vpow2.f32 %v4167_v27  ;;  %v4185_v8 = vmul.f32 1.442695, %v4128_v29 }
 0x93f   : > { %v3428_v9 = vmul.f32 0.5, %v3427_v6  ;;  %v4125_v10 = vsub.f32 0.0, %v4077_v36 }
 0x941   : > { %v3429_v18 = vsub.f32 1.5, %v3428_v9  ;;  %4029 = vmatpush.bf16.msra.mxu2 %v5209_v25  ;;  %v9361_v27 = vpop.f32.mrf.mxu1 }
 0x942   : > { %v6189_v40 = vpop.eup %6188  ;;  %v4086_v55 = vmax.f32 %v9361_v27, -60.0 }
 0x943   : > { %v3436_v24 = vmul.f32 %v6189_v40, %v9301_v4  ;;  %v3430_v22 = vmul.f32 %v6187_v41, %v3429_v18  ;;  %vm3442_vm1 = vweird.f32 %v6189_v40  ;;  %v6191_v53 = vpop.eup %6190  ;;  %v4179_v4 = vmul.f32 1.442695, %v4125_v10  ;;  %v3935_v18 = vpop.f32.mrf.mxu0 }
 0x944   : > { %vm3443_vm3 = vmor %vm3441_vm2, %vm3442_vm1  ;;  %v6193_v28 = vpop.eup %6192  ;;  %v4266_v33 = vadd.f32 1.0, %v6191_v53  ;;  %v4134_v61 = vsub.f32 0.0, %v4086_v55 }
 0x945   : > { %v3437_v44 = vmul.f32 %v6189_v40, %v3436_v24  ;;  %v3434_v11 = vsel %vm3433_vm0, %v6187_v41, %v3430_v22  ;;  %v4263_v34 = vadd.f32 1.0, %v6193_v28 }
 0x946   : > { %v3459_v32 = vmul.f32 %v3434_v11, %v9151_v45  ;;  %6194 = vrcp.f32 %v4266_v33  ;;  %v4131_v11 = vsub.f32 0.0, %v4083_v21 }
 0x947   : > { %v3438_v2 = vmul.f32 0.5, %v3437_v44  ;;  %6196 = vrcp.f32 %v4263_v34 }
 0x948   : > { %v3479_v9 = vmul.f32 %v9093_v16, %v3459_v32  ;;  %6198 = vpow2.f32 %v4185_v8 }
 0x949   : > { %v3439_v7 = vsub.f32 1.5, %v3438_v2  ;;  %6200 = vpow2.f32 %v4179_v4  ;;  %v9375_v38 = vpop.f32.mrf.mxu1 }
 0x94a   : > { %v4089_v34 = vmax.f32 %v9375_v38, -60.0 }
 0x94b   : > { %v3440_v56 = vmul.f32 %v6189_v40, %v3439_v7  ;;  %v3938_v25 = vpop.f32.mrf.mxu0 }
 0x94c   : > { %v6195_v54 = vpop.eup %6194 }
 0x94d   : > { %v3444_v6 = vsel %vm3443_vm3, %v6189_v40, %v3440_v56  ;;  %v9370_v40 = vpop.f32.mrf.mxu2  ;;  %v6197_v24 = vpop.eup %6196  ;;  %v4362_v3 = vmul.f32 %v6195_v54, %v9270_v49  ;;  %v4197_v56 = vmul.f32 1.442695, %v4134_v61  ;;  %v4191_v49 = vmul.f32 1.442695, %v4131_v11  ;;  %v5590_v61 = vld [vmem:[%s9661_s7 + $0xb0] sm:$0xff] }
 0x94e   : > { %v3460_v41 = vmul.f32 %v3444_v6, %v9160_v43  ;;  %v6199_v37 = vpop.eup %6198  ;;  %v4359_v44 = vmul.f32 %v6197_v24, %v9256_v15 }
 0x94f   : > { %v6201_v22 = vpop.eup %6200  ;;  %v4272_v2 = vadd.f32 1.0, %v6199_v37  ;;  %v4410_v26 = vmul.f32 %v4362_v3, %v3935_v18  ;;  %v4137_v18 = vsub.f32 0.0, %v4089_v34 }
 0x950   : > { %v3480_v57 = vmul.f32 %v9093_v16, %v3460_v41  ;;  %v5591_v16 = vld [vmem:[%s9661_s7 + $0xb8] sm:$0xff]  ;;  %v4269_v7 = vadd.f32 1.0, %v6201_v22  ;;  %v4407_v53 = vmul.f32 %v4359_v44, %v3933_v58 }
 0x951   : > { %4769 = vmatpush.bf16.msra.mxu1 %v5591_v16  ;;  %6202 = vrcp.f32 %v4272_v2  ;;  %v9382_v28 = vpop.f32.mrf.mxu1  ;;  %v4203_v21 = vmul.f32 1.442695, %v4137_v18 }
 0x952   : > { %v9359_v50 = vpack.c.bf16 %v3480_v57, %v3479_v9  ;;  %v4455_v32 = vpack.c.bf16 %v4410_v26, %v4407_v53  ;;  %6204 = vrcp.f32 %v4269_v7  ;;  %v4092_v58 = vmax.f32 %v9382_v28, -60.0 }
 0x953   : > { %6206 = vpow2.f32 %v4197_v56  ;;  %v3940_v15 = vpop.f32.mrf.mxu0 }
 0x954   : > { %3820 = vmatmul.bf16.gmra.mxu1 %v9359_v50  ;;  %3869 = vmatmul.bf16.gmra.mxu2 %v9359_v50  ;;  %6208 = vpow2.f32 %v4191_v49  ;;  %v4140_v57 = vsub.f32 0.0, %v4092_v58 }
 0x955   : > { %3918 = vmatmul.bf16.gmra.mxu3 %v9359_v50  ;;  %3967 = vmatmul.bf16.gmra.mxu0 %v9359_v50  ;;  %v9378_v36 = vpop.f32.mrf.mxu2 }
 0x956   : > { %v4209_v24 = vmul.f32 1.442695, %v4140_v57  ;;  %4770 = vmatpush.bf16.msra.mxu1 %v5590_v61  ;;  %v5581_v57 = vld [vmem:[%s9661_s7 + $0x68] sm:$0xff] }
 0x957   : > { %v6203_v29 = vpop.eup %6202 }
 0x958   : > { %v6205_v33 = vpop.eup %6204  ;;  %v4368_v10 = vmul.f32 %v6203_v29, %v9328_v42 }
 0x959   : > { %v6207_v41 = vpop.eup %6206 }
 0x95a   : > { %v6209_v9 = vpop.eup %6208  ;;  %v4278_v8 = vadd.f32 1.0, %v6207_v41  ;;  %v4416_v4 = vmul.f32 %v4368_v10, %v3940_v15 }
 0x95b   : > { %v4275_v16 = vadd.f32 1.0, %v6209_v9  ;;  %v3943_v54 = vpop.f32.mrf.mxu0 }
 0x95c   : > { %6210 = vrcp.f32 %v4278_v8  ;;  %v5589_v8 = vld [vmem:[%s9661_s7 + $0xa8] sm:$0xff] }
 0x95d   : > { %v9384_v6 = vpop.f32.mrf.mxu2  ;;  %6212 = vrcp.f32 %v4275_v16  ;;  %4771 = vmatpush.bf16.msra.mxu1 %v5589_v8 }
 0x95e   : > { %6214 = vpow2.f32 %v4209_v24 }
 0x95f   : > { %6216 = vpow2.f32 %v4203_v21 }
 0x962   : > { %v6211_v42 = vpop.eup %6210 }
 0x963   : > { %v6213_v22 = vpop.eup %6212  ;;  %v3945_v44 = vpop.f32.mrf.mxu0  ;;  %v4374_v26 = vmul.f32 %v6211_v42, %v9361_v27 }
 0x964   : > { %3981 = vmatmul.bf16.vlgmr.msrb.gmra.mxu1 %v9099_v52  ;;  %4030 = vmatmul.bf16.vlgmr.msra.gmra.mxu2 %v9099_v52  ;;  %v4365_v52 = vmul.f32 %v6205_v33, %v9290_v60  ;;  %v6215_v2 = vpop.eup %6214  ;;  %v4371_v7 = vmul.f32 %v6213_v22, %v9351_v31 }
 0x965   : > { %4679 = vmatmul.bf16.vlgmr.msra.gmra.mxu3 %v4455_v32  ;;  %v9390_v3 = vpop.f32.mrf.mxu2  ;;  %v6217_v11 = vpop.eup %6216  ;;  %v4284_v56 = vadd.f32 1.0, %v6215_v2  ;;  %v4422_v32 = vmul.f32 %v4374_v26, %v3945_v44 }
 0x966   : > { %v4413_v55 = vmul.f32 %v4365_v52, %v3938_v25  ;;  %v5582_v25 = vld [vmem:[%s9661_s7 + $0x70] sm:$0xff]  ;;  %v4281_v29 = vadd.f32 1.0, %v6217_v11  ;;  %v4419_v33 = vmul.f32 %v4371_v7, %v3943_v54  ;;  %v9423_v11 = vpop.f32.mrf.mxu3 }
 0x967   : > { %4721 = vmatpush.bf16.msra.mxu0 %v5582_v25  ;;  %6218 = vrcp.f32 %v4284_v56 }
 0x968   : > { %v4458_v37 = vpack.c.bf16 %v4416_v4, %v4413_v55  ;;  %v4461_v27 = vpack.c.bf16 %v4422_v32, %v4419_v33  ;;  %6220 = vrcp.f32 %v4281_v29  ;;  %v5580_v32 = vld [vmem:[%s9661_s7 + $0x60] sm:$0xff]  ;;  %v5579_v33 = vld [vmem:[%s9661_s7 + $0x58] sm:$0xff] }
 0x96b   : > { %v3948_v41 = vpop.f32.mrf.mxu0  ;;  %4722 = vmatpush.bf16.msra.mxu0 %v5581_v57 }
 0x96d   : > { %v9405_v53 = vpop.f32.mrf.mxu2  ;;  %v6219_v52 = vpop.eup %6218 }
 0x96e   : > { %v6221_v4 = vpop.eup %6220  ;;  %v4380_v18 = vmul.f32 %v6219_v52, %v9382_v28 }
 0x96f   : > { %v4377_v55 = vmul.f32 %v6221_v4, %v9375_v38  ;;  %4723 = vmatpush.bf16.msra.mxu0 %v5580_v32  ;;  %v9442_v4 = vpop.f32.mrf.mxu3 }
 0x971   : > { %v4425_v44 = vmul.f32 %v4377_v55, %v3948_v41  ;;  %v5587_v41 = vld [vmem:[%s9661_s7 + $0x98] sm:$0xff] }
 0x973   : > { %v3950_v16 = vpop.f32.mrf.mxu0  ;;  %4724 = vmatpush.bf16.msra.mxu0 %v5579_v33 }
 0x974   : > { %3986 = vmatmul.bf16.gmra.mxu1 %v9122_v5  ;;  %4035 = vmatmul.bf16.gmra.mxu2 %v9122_v5  ;;  %v4428_v21 = vmul.f32 %v4380_v18, %v3950_v16 }
 0x975   : > { %4684 = vmatmul.bf16.gmra.mxu3 %v4458_v37  ;;  %v9409_v31 = vpop.f32.mrf.mxu2 }
 0x976   : > { %v4464_v61 = vpack.c.bf16 %v4428_v21, %v4425_v44 }
 0x977   : > { %v9446_v55 = vpop.f32.mrf.mxu3 }
 0x978   : > { %v9394_v60 = vpop.f32.mrf.mxu1 }
 0x979   : > { %v4095_v5 = vmax.f32 %v9394_v60, -60.0 }
 0x97b   : > { %v4143_v49 = vsub.f32 0.0, %v4095_v5  ;;  %v3953_v28 = vpop.f32.mrf.mxu0 }
 0x97d   : > { %v4215_v34 = vmul.f32 1.442695, %v4143_v49  ;;  %v9419_v37 = vpop.f32.mrf.mxu2  ;;  %v5588_v49 = vld [vmem:[%s9661_s7 + $0xa0] sm:$0xff] }
 0x97e   : > { %4772 = vmatpush.bf16.msra.mxu1 %v5588_v49 }
 0x980   : > { %v3808_v15 = vpop.f32.mrf.mxu1 }
 0x981   : > { %v4098_v58 = vmax.f32 %v3808_v15, -60.0 }
 0x982   : > { %4773 = vmatpush.bf16.msra.mxu1 %v5587_v41  ;;  %v4072_v41 = vmax.f32 %v9370_v40, -60.0 }
 0x983   : > { %v4146_v10 = vsub.f32 0.0, %v4098_v58 }
 0x984   : > { %3991 = vmatmul.bf16.gmra.mxu1 %v9138_v1  ;;  %4040 = vmatmul.bf16.gmra.mxu2 %v9138_v1 }
 0x985   : > { %v4221_v9 = vmul.f32 1.442695, %v4146_v10  ;;  %4689 = vmatmul.bf16.gmra.mxu3 %v4461_v27  ;;  %v9425_v7 = vpop.f32.mrf.mxu2 }
 0x987   : > { %6222 = vpow2.f32 %v4221_v9  ;;  %v3955_v9 = vpop.f32.mrf.mxu0 }
 0x988   : > { %6224 = vpow2.f32 %v4215_v34 }
 0x98d   : > { %v6223_v1 = vpop.eup %6222  ;;  %v9440_v8 = vpop.f32.mrf.mxu2 }
 0x98e   : > { %v6225_v54 = vpop.eup %6224  ;;  %v4290_v24 = vadd.f32 1.0, %v6223_v1 }
 0x98f   : > { %v4287_v42 = vadd.f32 1.0, %v6225_v54 }
 0x990   : > { %6226 = vrcp.f32 %v4290_v24 }
 0x991   : > { %v3811_v22 = vpop.f32.mrf.mxu1  ;;  %6228 = vrcp.f32 %v4287_v42 }
 0x992   : > { %v4101_v25 = vmax.f32 %v3811_v22, -60.0 }
 0x994   : > { %v4149_v2 = vsub.f32 0.0, %v4101_v25  ;;  %3996 = vmatmul.bf16.gmra.mxu1 %v9162_v20  ;;  %4045 = vmatmul.bf16.gmra.mxu2 %v9162_v20 }
 0x995   : > { %4694 = vmatmul.bf16.gmra.mxu3 %v4464_v61  ;;  %v9448_v24 = vpop.f32.mrf.mxu2 }
 0x996   : > { %v4227_v26 = vmul.f32 1.442695, %v4149_v2  ;;  %v6227_v38 = vpop.eup %6226 }
 0x997   : > { %v6229_v29 = vpop.eup %6228  ;;  %v4386_v20 = vmul.f32 %v6227_v38, %v3808_v15 }
 0x998   : > { %6230 = vpow2.f32 %v4227_v26  ;;  %v4383_v27 = vmul.f32 %v6229_v29, %v9394_v60  ;;  %v3958_v60 = vpop.f32.mrf.mxu0 }
 0x999   : > { %v3813_v5 = vpop.f32.mrf.mxu1  ;;  %v4434_v52 = vmul.f32 %v4386_v20, %v3955_v9 }
 0x99a   : > { %v4104_v56 = vmax.f32 %v3813_v5, -60.0  ;;  %v4431_v57 = vmul.f32 %v4383_v27, %v3953_v28 }
 0x99c   : > { %v4152_v58 = vsub.f32 0.0, %v4104_v56  ;;  %v4467_v18 = vpack.c.bf16 %v4434_v52, %v4431_v57  ;;  %v4120_v52 = vsub.f32 0.0, %v4072_v41  ;;  %v4073_v57 = vmax.f32 %v9423_v11, -60.0 }
 0x99d   : > { %v9450_v28 = vpop.f32.mrf.mxu2 }
 0x99e   : > { %v6231_v10 = vpop.eup %6230  ;;  %v4233_v34 = vmul.f32 1.442695, %v4152_v58 }
 0x99f   : > { %v4293_v15 = vadd.f32 1.0, %v6231_v10 }
 0x9a0   : > { %6232 = vpow2.f32 %v4233_v34  ;;  %v3960_v25 = vpop.f32.mrf.mxu0  ;;  %v4075_v34 = vmax.f32 %v9378_v36, -60.0 }
 0x9a1   : > { %6234 = vrcp.f32 %v4293_v15  ;;  %v5577_v15 = vld [vmem:[%s9661_s7 + $0x48] sm:$0xff] }
 0x9a4   : > { %4001 = vmatmul.bf16.gmra.mxu1 %v9202_v59  ;;  %4050 = vmatmul.bf16.gmra.mxu2 %v9202_v59  ;;  %v9454_v59 = vpop.f32.mrf.mxu3 }
 0x9a5   : > { %4699 = vmatmul.bf16.gmra.mxu3 %v4467_v18  ;;  %v9462_v29 = vpop.f32.mrf.mxu2  ;;  %v4123_v18 = vsub.f32 0.0, %v4075_v34 }
 0x9a6   : > { %v6233_v1 = vpop.eup %6232 }
 0x9a7   : > { %v4296_v16 = vadd.f32 1.0, %v6233_v1  ;;  %v6235_v54 = vpop.eup %6234  ;;  %v5585_v1 = vld [vmem:[%s9661_s7 + $0x88] sm:$0xff] }
 0x9a8   : > { %v4389_v21 = vmul.f32 %v6235_v54, %v3811_v22  ;;  %v5578_v22 = vld [vmem:[%s9661_s7 + $0x50] sm:$0xff] }
 0x9a9   : > { %6236 = vrcp.f32 %v4296_v16  ;;  %4725 = vmatpush.bf16.msra.mxu0 %v5578_v22  ;;  %v4169_v16 = vmul.f32 1.442695, %v4120_v52 }
 0x9aa   : > { %v4437_v61 = vmul.f32 %v4389_v21, %v3958_v60 }
 0x9ac   : > { %v9485_v22 = vpop.f32.mrf.mxu3 }
 0x9ad   : > { %4726 = vmatpush.bf16.msra.mxu0 %v5577_v15 }
 0x9af   : > { %v6237_v42 = vpop.eup %6236 }
 0x9b0   : > { %v4392_v44 = vmul.f32 %v6237_v42, %v3813_v5  ;;  %v5586_v5 = vld [vmem:[%s9661_s7 + $0x90] sm:$0xff]  ;;  %v5576_v42 = vld [vmem:[%s9661_s7 + $0x40] sm:$0xff] }
 0x9b1   : > { %4774 = vmatpush.bf16.msra.mxu1 %v5586_v5  ;;  %4727 = vmatpush.bf16.msra.mxu0 %v5576_v42 }
 0x9b2   : > { %v4440_v2 = vmul.f32 %v4392_v44, %v3960_v25  ;;  %v4121_v44 = vsub.f32 0.0, %v4073_v57  ;;  %v4175_v25 = vmul.f32 1.442695, %v4123_v18 }
 0x9b4   : > { %v4470_v26 = vpack.c.bf16 %v4440_v2, %v4437_v61  ;;  %4006 = vmatmul.bf16.gmra.mxu1 %v9236_v39  ;;  %4055 = vmatmul.bf16.gmra.mxu2 %v9236_v39 }
 0x9b5   : > { %4775 = vmatpush.bf16.msra.mxu1 %v5585_v1 }
 0x9b6   : > { %4704 = vmatmul.bf16.gmra.mxu3 %v4470_v26 }
 0x9b8   : > { %v3816_v38 = vpop.f32.mrf.mxu1 }
 0x9b9   : > { %v4107_v56 = vmax.f32 %v3816_v38, -60.0  ;;  %v3963_v54 = vpop.f32.mrf.mxu0 }
 0x9bb   : > { %v4155_v32 = vsub.f32 0.0, %v4107_v56 }
 0x9bd   : > { %v4239_v49 = vmul.f32 1.442695, %v4155_v32  ;;  %v4171_v32 = vmul.f32 1.442695, %v4121_v44 }
 0x9be   : > { %v9467_v27 = vpop.f32.mrf.mxu2 }
 0x9bf   : > { %6238 = vpow2.f32 %v4239_v49 }
 0x9c0   : > { %v3818_v39 = vpop.f32.mrf.mxu1 }
 0x9c1   : > { %v4110_v20 = vmax.f32 %v3818_v39, -60.0  ;;  %v3965_v57 = vpop.f32.mrf.mxu0 }
 0x9c3   : > { %v4158_v58 = vsub.f32 0.0, %v4110_v20  ;;  %v5584_v20 = vld [vmem:[%s9661_s7 + $0x80] sm:$0xff] }
 0x9c4   : > { %4011 = vmatmul.bf16.gmra.mxu1 %v9298_v51  ;;  %4060 = vmatmul.bf16.gmra.mxu2 %v9298_v51  ;;  %v4076_v51 = vmax.f32 %v9442_v4, -60.0 }
 0x9c5   : > { %v6239_v33 = vpop.eup %6238  ;;  %v4245_v10 = vmul.f32 1.442695, %v4158_v58  ;;  %4776 = vmatpush.bf16.msra.mxu1 %v5584_v20 }
 0x9c6   : > { %v4299_v9 = vadd.f32 1.0, %v6239_v33  ;;  %v4124_v61 = vsub.f32 0.0, %v4076_v51  ;;  %v9481_v2 = vpop.f32.mrf.mxu2 }
 0x9c7   : > { %6240 = vpow2.f32 %v4245_v10  ;;  %v4078_v10 = vmax.f32 %v9384_v6, -60.0 }
 0x9c8   : > { %6242 = vrcp.f32 %v4299_v9  ;;  %v4177_v49 = vmul.f32 1.442695, %v4124_v61  ;;  %v4081_v9 = vmax.f32 %v9390_v3, -60.0 }
 0x9ca   : > { %v4129_v42 = vsub.f32 0.0, %v4081_v9 }
 0x9cd   : > { %v6241_v60 = vpop.eup %6240 }
 0x9ce   : > { %v4302_v21 = vadd.f32 1.0, %v6241_v60  ;;  %v6243_v26 = vpop.eup %6242 }
 0x9cf   : > { %v4395_v58 = vmul.f32 %v6243_v26, %v3816_v38  ;;  %v4082_v26 = vmax.f32 %v9454_v59, -60.0 }
 0x9d0   : > { %6244 = vrcp.f32 %v4302_v21  ;;  %v4079_v21 = vmax.f32 %v9446_v55, -60.0 }
 0x9d1   : > { %6246 = vpow2.f32 %v4169_v16  ;;  %v9483_v56 = vpop.f32.mrf.mxu1  ;;  %v4443_v1 = vmul.f32 %v4395_v58, %v3963_v54 }
 0x9d2   : > { %6248 = vpow2.f32 %v4175_v25  ;;  %v4113_v5 = vmax.f32 %v9483_v56, -60.0  ;;  %v4127_v58 = vsub.f32 0.0, %v4079_v21 }
 0x9d3   : > { %6250 = vpow2.f32 %v4171_v32  ;;  %v9502_v32 = vpop.f32.mrf.mxu3 }
 0x9d4   : > { %v4161_v33 = vsub.f32 0.0, %v4113_v5  ;;  %4016 = vmatmul.bf16.gmra.mxu1 %v9359_v50  ;;  %4065 = vmatmul.bf16.gmra.mxu2 %v9359_v50  ;;  %6252 = vpow2.f32 %v4177_v49  ;;  %v4126_v50 = vsub.f32 0.0, %v4078_v10  ;;  %v4088_v62 = vmax.f32 %v9502_v32, -60.0 }
 0x9d6   : > { %v6245_v41 = vpop.eup %6244  ;;  %v4251_v15 = vmul.f32 1.442695, %v4161_v33  ;;  %v4181_v49 = vmul.f32 1.442695, %v4126_v50  ;;  %v4187_v33 = vmul.f32 1.442695, %v4129_v42 }
 0x9d7   : > { %v6247_v34 = vpop.eup %6246  ;;  %v4398_v52 = vmul.f32 %v6245_v41, %v3818_v39  ;;  %v9495_v18 = vpop.f32.mrf.mxu2  ;;  %v4084_v50 = vmax.f32 %v9405_v53, -60.0  ;;  %v4087_v42 = vmax.f32 %v9409_v31, -60.0 }
 0x9d8   : > { %v6249_v38 = vpop.eup %6248  ;;  %6254 = vpow2.f32 %v4251_v15  ;;  %v4264_v60 = vadd.f32 1.0, %v6247_v34 }
 0x9d9   : > { %v4446_v51 = vmul.f32 %v4398_v52, %v3965_v57  ;;  %v9497_v16 = vpop.f32.mrf.mxu1  ;;  %v4267_v39 = vadd.f32 1.0, %v6249_v38  ;;  %v6251_v61 = vpop.eup %6250  ;;  %v4130_v52 = vsub.f32 0.0, %v4082_v26  ;;  %v4183_v38 = vmul.f32 1.442695, %v4127_v58 }
 0x9da   : > { %v4116_v25 = vmax.f32 %v9497_v16, -60.0  ;;  %v6253_v54 = vpop.eup %6252  ;;  %6256 = vrcp.f32 %v4264_v60  ;;  %v4265_v10 = vadd.f32 1.0, %v6251_v61  ;;  %v4132_v58 = vsub.f32 0.0, %v4084_v50 }
 0x9db   : > { %v4473_v44 = vpack.c.bf16 %v4446_v51, %v4443_v1  ;;  %6258 = vrcp.f32 %v4267_v39  ;;  %v4268_v9 = vadd.f32 1.0, %v6253_v54  ;;  %v4189_v51 = vmul.f32 1.442695, %v4130_v52  ;;  %v3968_v39 = vpop.f32.mrf.mxu0 }
 0x9dc   : > { %v4164_v5 = vsub.f32 0.0, %v4116_v25 }
 0x9dd   : > { %4709 = vmatmul.bf16.gmra.mxu3 %v4473_v44  ;;  %v9508_v44 = vpop.f32.mrf.mxu3 }
 0x9de   : > { %v6255_v20 = vpop.eup %6254  ;;  %v4257_v41 = vmul.f32 1.442695, %v4164_v5 }
 0x9df   : > { %v9504_v34 = vpop.f32.mrf.mxu2  ;;  %v4305_v15 = vadd.f32 1.0, %v6255_v20 }
 0x9e0   : > { %6260 = vpow2.f32 %v4257_v41  ;;  %v6257_v1 = vpop.eup %6256 }
 0x9e1   : > { %6262 = vpow2.f32 %v4181_v49  ;;  %v3982_v57 = vpop.f32.mrf.mxu1  ;;  %v6259_v60 = vpop.eup %6258  ;;  %v4360_v54 = vmul.f32 %v6257_v1, %v9370_v40  ;;  %v4193_v1 = vmul.f32 1.442695, %v4132_v58 }
 0x9e2   : > { %6264 = vpow2.f32 %v4187_v33  ;;  %v4363_v49 = vmul.f32 %v6259_v60, %v9378_v36 }
 0x9e3   : > { %6266 = vrcp.f32 %v4265_v10  ;;  %v4408_v52 = vmul.f32 %v4360_v54, %v3982_v57  ;;  %v4136_v54 = vsub.f32 0.0, %v4088_v62 }
 0x9e4   : > { %6268 = vrcp.f32 %v4268_v9  ;;  %v4135_v9 = vsub.f32 0.0, %v4087_v42 }
 0x9e5   : > { %6270 = vrcp.f32 %v4305_v15 }
 0x9e6   : > { %v6261_v21 = vpop.eup %6260  ;;  %6272 = vpow2.f32 %v4183_v38  ;;  %v4199_v60 = vmul.f32 1.442695, %v4135_v9 }
 0x9e7   : > { %v6263_v25 = vpop.eup %6262  ;;  %v4308_v61 = vadd.f32 1.0, %v6261_v21  ;;  %v4031_v26 = vpop.f32.mrf.mxu2  ;;  %6274 = vpow2.f32 %v4189_v51  ;;  %v4085_v21 = vmax.f32 %v9485_v22, -60.0 }
 0x9e8   : > { %v6265_v5 = vpop.eup %6264  ;;  %v4270_v10 = vadd.f32 1.0, %v6263_v25 }
 0x9e9   : > { %v6267_v20 = vpop.eup %6266  ;;  %6276 = vrcp.f32 %v4308_v61  ;;  %v3984_v33 = vpop.f32.mrf.mxu1  ;;  %v4273_v43 = vadd.f32 1.0, %v6265_v5  ;;  %v4133_v61 = vsub.f32 0.0, %v4085_v21 }
 0x9ea   : > { %v6269_v41 = vpop.eup %6268  ;;  %v4411_v15 = vmul.f32 %v4363_v49, %v3984_v33  ;;  %v4361_v36 = vmul.f32 %v6267_v20, %v9423_v11  ;;  %6278 = vrcp.f32 %v4270_v10  ;;  %v9517_v49 = vpop.f32.mrf.mxu3 }
 0x9eb   : > { %v6271_v38 = vpop.eup %6270  ;;  %v4364_v57 = vmul.f32 %v6269_v41, %v9442_v4  ;;  %6280 = vrcp.f32 %v4273_v43  ;;  %v3970_v10 = vpop.f32.mrf.mxu0  ;;  %v4195_v41 = vmul.f32 1.442695, %v4133_v61  ;;  %v4201_v43 = vmul.f32 1.442695, %v4136_v54 }
 0x9ec   : > { %v6273_v45 = vpop.eup %6272  ;;  %v4456_v40 = vpack.c.bf16 %v4411_v15, %v4408_v52  ;;  %v4401_v50 = vmul.f32 %v6271_v38, %v9483_v56  ;;  %v4409_v11 = vmul.f32 %v4361_v36, %v4031_v26  ;;  %6282 = vpow2.f32 %v4193_v1 }
 0x9ed   : > { %v6275_v51 = vpop.eup %6274  ;;  %v4271_v25 = vadd.f32 1.0, %v6273_v45  ;;  %6284 = vpow2.f32 %v4199_v60  ;;  %v4093_v26 = vmax.f32 %v9425_v7, -60.0 }
 0x9ee   : > { %4728 = vmatmul.bf16.vlgmr.msra.gmra.mxu0 %v4456_v40  ;;  %v4274_v58 = vadd.f32 1.0, %v6275_v51  ;;  %v4449_v56 = vmul.f32 %v4401_v50, %v3968_v39 }
 0x9ef   : > { %v6277_v42 = vpop.eup %6276  ;;  %v4033_v5 = vpop.f32.mrf.mxu2  ;;  %6286 = vrcp.f32 %v4271_v25 }
 0x9f0   : > { %v4404_v33 = vmul.f32 %v6277_v42, %v9497_v16  ;;  %v4412_v20 = vmul.f32 %v4364_v57, %v4033_v5  ;;  %v6279_v45 = vpop.eup %6278  ;;  %6288 = vrcp.f32 %v4274_v58  ;;  %v4090_v16 = vmax.f32 %v9419_v37, -60.0 }
 0x9f1   : > { %v3987_v9 = vpop.f32.mrf.mxu1  ;;  %v6281_v62 = vpop.eup %6280  ;;  %6290 = vpow2.f32 %v4195_v41  ;;  %v4366_v39 = vmul.f32 %v6279_v45, %v9384_v6  ;;  %v4141_v42 = vsub.f32 0.0, %v4093_v26 }
 0x9f2   : > { %v4452_v52 = vmul.f32 %v4404_v33, %v3970_v10  ;;  %v4457_v4 = vpack.c.bf16 %v4412_v20, %v4409_v11  ;;  %v6283_v38 = vpop.eup %6282  ;;  %v4369_v36 = vmul.f32 %v6281_v62, %v9390_v3  ;;  %6292 = vpow2.f32 %v4201_v43  ;;  %v9524_v51 = vpop.f32.mrf.mxu3 }
 0x9f3   : > { %v6285_v40 = vpop.eup %6284  ;;  %v4138_v1 = vsub.f32 0.0, %v4090_v16  ;;  %v4276_v57 = vadd.f32 1.0, %v6283_v38  ;;  %v4414_v25 = vmul.f32 %v4366_v39, %v3987_v9  ;;  %v4091_v33 = vmax.f32 %v9508_v44, -60.0 }
 0x9f4   : > { %v4476_v15 = vpack.c.bf16 %v4452_v52, %v4449_v56  ;;  %4777 = vmatmul.bf16.vlgmr.msra.gmra.mxu1 %v4457_v4  ;;  %v4279_v54 = vadd.f32 1.0, %v6285_v40  ;;  %v4094_v11 = vmax.f32 %v9517_v49, -60.0  ;;  %v4211_v56 = vmul.f32 1.442695, %v4141_v42 }
 0x9f5   : > { %v6287_v50 = vpop.eup %6286  ;;  %v4205_v58 = vmul.f32 1.442695, %v4138_v1  ;;  %6294 = vrcp.f32 %v4276_v57  ;;  %v4139_v9 = vsub.f32 0.0, %v4091_v33  ;;  %v4099_v1 = vmax.f32 %v9448_v24, -60.0 }
 0x9f6   : > { %4714 = vmatmul.bf16.gmra.mxu3 %v4476_v15  ;;  %v6289_v5 = vpop.eup %6288  ;;  %v4367_v10 = vmul.f32 %v6287_v50, %v9446_v55  ;;  %6296 = vrcp.f32 %v4279_v54  ;;  %v4142_v45 = vsub.f32 0.0, %v4094_v11 }
 0x9f7   : > { %v4036_v21 = vpop.f32.mrf.mxu2  ;;  %v6291_v6 = vpop.eup %6290  ;;  %v4370_v52 = vmul.f32 %v6289_v5, %v9454_v59  ;;  %6298 = vpow2.f32 %v4205_v58  ;;  %v4207_v38 = vmul.f32 1.442695, %v4139_v9  ;;  %v4147_v33 = vsub.f32 0.0, %v4099_v1 }
 0x9f8   : > { %v6293_v3 = vpop.eup %6292  ;;  %v4277_v41 = vadd.f32 1.0, %v6291_v6  ;;  %v4415_v43 = vmul.f32 %v4367_v10, %v4036_v21  ;;  %6300 = vpow2.f32 %v4211_v56  ;;  %v4213_v39 = vmul.f32 1.442695, %v4142_v45 }
 0x9f9   : > { %v3989_v60 = vpop.f32.mrf.mxu1  ;;  %v4280_v62 = vadd.f32 1.0, %v6293_v3  ;;  %v4097_v3 = vmax.f32 %v9524_v51, -60.0 }
 0x9fa   : > { %v4417_v61 = vmul.f32 %v4369_v36, %v3989_v60  ;;  %v9530_v40 = vpop.f32.mrf.mxu3  ;;  %6302 = vrcp.f32 %v4277_v41  ;;  %v4096_v36 = vmax.f32 %v9440_v8, -60.0  ;;  %v4223_v41 = vmul.f32 1.442695, %v4147_v33 }
 0x9fb   : > { %v6295_v55 = vpop.eup %6294  ;;  %6304 = vrcp.f32 %v4280_v62  ;;  %v4100_v56 = vmax.f32 %v9530_v40, -60.0 }
 0x9fc   : > { %v4459_v20 = vpack.c.bf16 %v4417_v61, %v4414_v25  ;;  %v6297_v59 = vpop.eup %6296  ;;  %6306 = vpow2.f32 %v4207_v38  ;;  %v4372_v57 = vmul.f32 %v6295_v55, %v9405_v53  ;;  %v4144_v25 = vsub.f32 0.0, %v4096_v36 }
 0x9fd   : > { %v6299_v21 = vpop.eup %6298  ;;  %v4375_v42 = vmul.f32 %v6297_v59, %v9409_v31  ;;  %6308 = vpow2.f32 %v4213_v39 }
 0x9fe   : > { %4733 = vmatmul.bf16.gmra.mxu0 %v4459_v20  ;;  %v6301_v50 = vpop.eup %6300  ;;  %v4282_v54 = vadd.f32 1.0, %v6299_v21  ;;  %v4217_v9 = vmul.f32 1.442695, %v4144_v25 }
 0x9ff   : > { %v4038_v4 = vpop.f32.mrf.mxu2  ;;  %v4285_v58 = vadd.f32 1.0, %v6301_v50 }
 0xa00   : > { %v4418_v15 = vmul.f32 %v4370_v52, %v4038_v4  ;;  %v6303_v5 = vpop.eup %6302  ;;  %6310 = vrcp.f32 %v4282_v54 }
 0xa01   : > { %v3992_v16 = vpop.f32.mrf.mxu1  ;;  %v6305_v6 = vpop.eup %6304  ;;  %v4373_v4 = vmul.f32 %v6303_v5, %v9485_v22  ;;  %6312 = vrcp.f32 %v4285_v58 }
 0xa02   : > { %v4460_v26 = vpack.c.bf16 %v4418_v15, %v4415_v43  ;;  %v4420_v11 = vmul.f32 %v4372_v57, %v3992_v16  ;;  %v9537_v10 = vpop.f32.mrf.mxu3  ;;  %v6307_v53 = vpop.eup %6306  ;;  %v4376_v45 = vmul.f32 %v6305_v6, %v9502_v32  ;;  %v4145_v43 = vsub.f32 0.0, %v4097_v3 }
 0xa03   : > { %v6309_v31 = vpop.eup %6308  ;;  %v4283_v62 = vadd.f32 1.0, %v6307_v53  ;;  %v4148_v16 = vsub.f32 0.0, %v4100_v56  ;;  %6314 = vpow2.f32 %v4217_v9  ;;  %v4102_v32 = vmax.f32 %v9450_v28, -60.0 }
 0xa04   : > { %4782 = vmatmul.bf16.gmra.mxu1 %v4460_v26  ;;  %v4286_v55 = vadd.f32 1.0, %v6309_v31  ;;  %6316 = vpow2.f32 %v4223_v41  ;;  %v4219_v36 = vmul.f32 1.442695, %v4145_v43  ;;  %v4105_v57 = vmax.f32 %v9462_v29, -60.0 }
 0xa05   : > { %6318 = vrcp.f32 %v4283_v62  ;;  %v4225_v22 = vmul.f32 1.442695, %v4148_v16  ;;  %v4150_v54 = vsub.f32 0.0, %v4102_v32  ;;  %v4103_v53 = vmax.f32 %v9537_v10, -60.0 }
 0xa06   : > { %v6311_v1 = vpop.eup %6310  ;;  %6320 = vrcp.f32 %v4286_v55  ;;  %v4153_v6 = vsub.f32 0.0, %v4105_v57  ;;  %v4111_v57 = vmax.f32 %v9481_v2, -60.0 }
 0xa07   : > { %v4041_v60 = vpop.f32.mrf.mxu2  ;;  %v6313_v21 = vpop.eup %6312  ;;  %6322 = vpow2.f32 %v4219_v36  ;;  %v4229_v41 = vmul.f32 1.442695, %v4150_v54  ;;  %v4151_v62 = vsub.f32 0.0, %v4103_v53 }
 0xa08   : > { %v4421_v26 = vmul.f32 %v4373_v4, %v4041_v60  ;;  %v4381_v5 = vmul.f32 %v6313_v21, %v9425_v7  ;;  %6324 = vpow2.f32 %v4225_v22  ;;  %v4235_v43 = vmul.f32 1.442695, %v4153_v6 }
 0xa09   : > { %v3994_v61 = vpop.f32.mrf.mxu1  ;;  %v6315_v60 = vpop.eup %6314  ;;  %v4231_v22 = vmul.f32 1.442695, %v4151_v62 }
 0xa0a   : > { %v4423_v20 = vmul.f32 %v4375_v42, %v3994_v61  ;;  %v9543_v50 = vpop.f32.mrf.mxu3  ;;  %v6317_v25 = vpop.eup %6316  ;;  %v4378_v61 = vmul.f32 %v6311_v1, %v9419_v37 }
 0xa0b   : > { %v4106_v9 = vmax.f32 %v9543_v50, -60.0 }
 0xa0c   : > { %v4462_v52 = vpack.c.bf16 %v4423_v20, %v4420_v11  ;;  %v6319_v11 = vpop.eup %6318  ;;  %v4288_v20 = vadd.f32 1.0, %v6315_v60 }
 0xa0d   : > { %v6321_v56 = vpop.eup %6320 }
 0xa0e   : > { %4738 = vmatmul.bf16.gmra.mxu0 %v4462_v52  ;;  %v4291_v52 = vadd.f32 1.0, %v6317_v25  ;;  %v6323_v4 = vpop.eup %6322  ;;  %6326 = vrcp.f32 %v4288_v20 }
 0xa0f   : > { %v4043_v15 = vpop.f32.mrf.mxu2  ;;  %v6325_v7 = vpop.eup %6324 }
 0xa10   : > { %v4424_v38 = vmul.f32 %v4376_v45, %v4043_v15  ;;  %v4379_v45 = vmul.f32 %v6319_v11, %v9508_v44  ;;  %v4382_v15 = vmul.f32 %v6321_v56, %v9517_v49  ;;  %6328 = vrcp.f32 %v4291_v52 }
 0xa11   : > { %v3997_v39 = vpop.f32.mrf.mxu1  ;;  %6330 = vpow2.f32 %v4229_v41  ;;  %v4108_v49 = vmax.f32 %v9467_v27, -60.0 }
 0xa12   : > { %v4463_v59 = vpack.c.bf16 %v4424_v38, %v4421_v26  ;;  %v4426_v58 = vmul.f32 %v4378_v61, %v3997_v39  ;;  %v9550_v37 = vpop.f32.mrf.mxu3  ;;  %v4289_v26 = vadd.f32 1.0, %v6323_v4  ;;  %v4154_v38 = vsub.f32 0.0, %v4106_v9 }
 0xa13   : > { %6332 = vpow2.f32 %v4235_v43  ;;  %v4109_v9 = vmax.f32 %v9550_v37, -60.0 }
 0xa14   : > { %4787 = vmatmul.bf16.gmra.mxu1 %v4463_v59  ;;  %v4292_v59 = vadd.f32 1.0, %v6325_v7  ;;  %v6327_v21 = vpop.eup %6326  ;;  %6334 = vrcp.f32 %v4289_v26  ;;  %v4237_v44 = vmul.f32 1.442695, %v4154_v38 }
 0xa16   : > { %v6329_v32 = vpop.eup %6328  ;;  %6336 = vrcp.f32 %v4292_v59 }
 0xa17   : > { %v4046_v42 = vpop.f32.mrf.mxu2  ;;  %v6331_v60 = vpop.eup %6330  ;;  %6338 = vpow2.f32 %v4231_v22  ;;  %v4387_v54 = vmul.f32 %v6329_v32, %v9448_v24  ;;  %v4117_v32 = vmax.f32 %v9504_v34, -60.0 }
 0xa18   : > { %v4427_v55 = vmul.f32 %v4379_v45, %v4046_v42  ;;  %6340 = vpow2.f32 %v4237_v44  ;;  %v4294_v6 = vadd.f32 1.0, %v6331_v60  ;;  %v4114_v44 = vmax.f32 %v9495_v18, -60.0 }
 0xa19   : > { %v3999_v33 = vpop.f32.mrf.mxu1  ;;  %v6333_v61 = vpop.eup %6332 }
 0xa1a   : > { %v4429_v3 = vmul.f32 %v4381_v5, %v3999_v33  ;;  %v9556_v42 = vpop.f32.mrf.mxu3  ;;  %v4384_v5 = vmul.f32 %v6327_v21, %v9440_v8  ;;  %v4156_v33 = vsub.f32 0.0, %v4108_v49  ;;  %v6335_v20 = vpop.eup %6334  ;;  %v4297_v53 = vadd.f32 1.0, %v6333_v61 }
 0xa1b   : > { %v4385_v24 = vmul.f32 %v6335_v20, %v9524_v51  ;;  %6342 = vrcp.f32 %v4294_v6  ;;  %v4165_v6 = vsub.f32 0.0, %v4117_v32 }
 0xa1c   : > { %v4465_v31 = vpack.c.bf16 %v4429_v3, %v4426_v58  ;;  %v4159_v58 = vsub.f32 0.0, %v4111_v57  ;;  %v6337_v52 = vpop.eup %6336  ;;  %v4241_v7 = vmul.f32 1.442695, %v4156_v33  ;;  %6344 = vrcp.f32 %v4297_v53 }
 0xa1d   : > { %v6339_v41 = vpop.eup %6338  ;;  %v4388_v45 = vmul.f32 %v6337_v52, %v9530_v40 }
 0xa1e   : > { %4743 = vmatmul.bf16.gmra.mxu0 %v4465_v31  ;;  %v4112_v31 = vmax.f32 %v9556_v42, -60.0  ;;  %v6341_v8 = vpop.eup %6340  ;;  %v4247_v43 = vmul.f32 1.442695, %v4159_v58  ;;  %v4295_v26 = vadd.f32 1.0, %v6339_v41  ;;  %6346 = vpow2.f32 %v4241_v7 }
 0xa1f   : > { %v4048_v16 = vpop.f32.mrf.mxu2  ;;  %v4298_v59 = vadd.f32 1.0, %v6341_v8  ;;  %v4259_v8 = vmul.f32 1.442695, %v4165_v6 }
 0xa20   : > { %v4430_v39 = vmul.f32 %v4382_v15, %v4048_v16  ;;  %v4157_v15 = vsub.f32 0.0, %v4109_v9  ;;  %v4160_v38 = vsub.f32 0.0, %v4112_v31  ;;  %6348 = vpow2.f32 %v4247_v43 }
 0xa21   : > { %v4002_v36 = vpop.f32.mrf.mxu1  ;;  %v6343_v22 = vpop.eup %6342  ;;  %6350 = vrcp.f32 %v4295_v26 }
 0xa22   : > { %v4466_v1 = vpack.c.bf16 %v4430_v39, %v4427_v55  ;;  %v4432_v3 = vmul.f32 %v4384_v5, %v4002_v36  ;;  %v9564_v62 = vpop.f32.mrf.mxu3  ;;  %v4243_v51 = vmul.f32 1.442695, %v4157_v15  ;;  %v4249_v40 = vmul.f32 1.442695, %v4160_v38  ;;  %v6345_v21 = vpop.eup %6344 }
 0xa23   : > { %6352 = vrcp.f32 %v4298_v59  ;;  %v4393_v61 = vmul.f32 %v6345_v21, %v9462_v29  ;;  %v4162_v5 = vsub.f32 0.0, %v4114_v44  ;;  %v4115_v53 = vmax.f32 %v9564_v62, -60.0 }
 0xa24   : > { %4792 = vmatmul.bf16.gmra.mxu1 %v4466_v1  ;;  %v6347_v49 = vpop.eup %6346  ;;  %6354 = vpow2.f32 %v4243_v51 }
 0xa25   : > { %6356 = vpow2.f32 %v4249_v40  ;;  %v4300_v20 = vadd.f32 1.0, %v6347_v49 }
 0xa26   : > { %v6349_v60 = vpop.eup %6348 }
 0xa27   : > { %v4051_v25 = vpop.f32.mrf.mxu2  ;;  %v4303_v52 = vadd.f32 1.0, %v6349_v60  ;;  %6358 = vrcp.f32 %v4300_v20 }
 0xa28   : > { %v4433_v55 = vmul.f32 %v4385_v24, %v4051_v25  ;;  %v4390_v25 = vmul.f32 %v6343_v22, %v9450_v28  ;;  %v4163_v24 = vsub.f32 0.0, %v4115_v53 }
 0xa29   : > { %v4004_v11 = vpop.f32.mrf.mxu1  ;;  %6360 = vrcp.f32 %v4303_v52 }
 0xa2a   : > { %v4435_v56 = vmul.f32 %v4387_v54, %v4004_v11  ;;  %v9570_v54 = vpop.f32.mrf.mxu3  ;;  %v6351_v11 = vpop.eup %6350  ;;  %v4255_v59 = vmul.f32 1.442695, %v4163_v24 }
 0xa2b   : > { %v4118_v9 = vmax.f32 %v9570_v54, -60.0  ;;  %v4391_v41 = vmul.f32 %v6351_v11, %v9537_v10 }
 0xa2c   : > { %v4468_v4 = vpack.c.bf16 %v4435_v56, %v4432_v3  ;;  %v6353_v56 = vpop.eup %6352 }
 0xa2d   : > { %v6355_v28 = vpop.eup %6354  ;;  %v4394_v7 = vmul.f32 %v6353_v56, %v9543_v50  ;;  %v4166_v15 = vsub.f32 0.0, %v4118_v9 }
 0xa2e   : > { %4748 = vmatmul.bf16.gmra.mxu0 %v4468_v4  ;;  %v4253_v4 = vmul.f32 1.442695, %v4162_v5  ;;  %v6357_v29 = vpop.eup %6356  ;;  %v4301_v43 = vadd.f32 1.0, %v6355_v28 }
 0xa2f   : > { %v4053_v16 = vpop.f32.mrf.mxu2  ;;  %v4304_v38 = vadd.f32 1.0, %v6357_v29  ;;  %v4261_v10 = vmul.f32 1.442695, %v4166_v15 }
 0xa30   : > { %v4436_v39 = vmul.f32 %v4388_v45, %v4053_v16  ;;  %6362 = vpow2.f32 %v4253_v4 }
 0xa31   : > { %v4007_v36 = vpop.f32.mrf.mxu1  ;;  %6364 = vpow2.f32 %v4259_v8 }
 0xa32   : > { %v4469_v1 = vpack.c.bf16 %v4436_v39, %v4433_v55  ;;  %v4438_v58 = vmul.f32 %v4390_v25, %v4007_v36  ;;  %v6359_v36 = vpop.eup %6358  ;;  %6366 = vrcp.f32 %v4301_v43  ;;  %v4680_v28 = vpop.f32.mrf.mxu3 }
 0xa33   : > { %v6361_v50 = vpop.eup %6360  ;;  %6368 = vrcp.f32 %v4304_v38  ;;  %v4396_v40 = vmul.f32 %v6359_v36, %v9467_v27 }
 0xa34   : > { %4797 = vmatmul.bf16.gmra.mxu1 %v4469_v1  ;;  %6370 = vpow2.f32 %v4255_v59  ;;  %v4399_v21 = vmul.f32 %v6361_v50, %v9481_v2 }
 0xa35   : > { %6372 = vpow2.f32 %v4261_v10 }
 0xa36   : > { %v6363_v1 = vpop.eup %6362 }
 0xa37   : > { %v4056_v57 = vpop.f32.mrf.mxu2  ;;  %v6365_v22 = vpop.eup %6364  ;;  %v4306_v49 = vadd.f32 1.0, %v6363_v1 }
 0xa38   : > { %v4439_v16 = vmul.f32 %v4391_v41, %v4056_v57  ;;  %v6367_v32 = vpop.eup %6366 }
 0xa39   : > { %v4009_v33 = vpop.f32.mrf.mxu1  ;;  %v6369_v25 = vpop.eup %6368  ;;  %v4397_v20 = vmul.f32 %v6367_v32, %v9550_v37  ;;  %6374 = vrcp.f32 %v4306_v49 }
 0xa3a   : > { %v4441_v3 = vmul.f32 %v4393_v61, %v4009_v33  ;;  %v4309_v61 = vadd.f32 1.0, %v6365_v22  ;;  %v6371_v33 = vpop.eup %6370  ;;  %v4400_v6 = vmul.f32 %v6369_v25, %v9556_v42 }
 0xa3b   : > { %v6373_v11 = vpop.eup %6372  ;;  %v4307_v2 = vadd.f32 1.0, %v6371_v33 }
 0xa3c   : > { %v4471_v31 = vpack.c.bf16 %v4441_v3, %v4438_v58  ;;  %6376 = vrcp.f32 %v4309_v61  ;;  %v4310_v56 = vadd.f32 1.0, %v6373_v11 }
 0xa3d   : > { %6378 = vrcp.f32 %v4307_v2 }
 0xa3e   : > { %4753 = vmatmul.bf16.gmra.mxu0 %v4471_v31  ;;  %6380 = vrcp.f32 %v4310_v56 }
 0xa3f   : > { %v4058_v45 = vpop.f32.mrf.mxu2  ;;  %v6375_v9 = vpop.eup %6374 }
 0xa40   : > { %v4442_v26 = vmul.f32 %v4394_v7, %v4058_v45  ;;  %v4402_v37 = vmul.f32 %v6375_v9, %v9495_v18 }
 0xa41   : > { %v4012_v55 = vpop.f32.mrf.mxu1 }
 0xa42   : > { %v4472_v39 = vpack.c.bf16 %v4442_v26, %v4439_v16  ;;  %v4444_v57 = vmul.f32 %v4396_v40, %v4012_v55  ;;  %v6377_v31 = vpop.eup %6376  ;;  %v4682_v55 = vpop.f32.mrf.mxu3 }
 0xa43   : > { %v4405_v42 = vmul.f32 %v6377_v31, %v9504_v34  ;;  %v6379_v41 = vpop.eup %6378 }
 0xa44   : > { %4802 = vmatmul.bf16.gmra.mxu1 %v4472_v39  ;;  %v6381_v24 = vpop.eup %6380  ;;  %v4403_v43 = vmul.f32 %v6379_v41, %v9564_v62 }
 0xa45   : > { %v4406_v15 = vmul.f32 %v6381_v24, %v9570_v54 }
 0xa47   : > { %v4061_v51 = vpop.f32.mrf.mxu2 }
 0xa48   : > { %v4445_v58 = vmul.f32 %v4397_v20, %v4061_v51 }
 0xa49   : > { %v4014_v44 = vpop.f32.mrf.mxu1 }
 0xa4a   : > { %v4447_v60 = vmul.f32 %v4399_v21, %v4014_v44  ;;  %v4685_v18 = vpop.f32.mrf.mxu3 }
 0xa4c   : > { %v4474_v5 = vpack.c.bf16 %v4447_v60, %v4444_v57 }
 0xa4e   : > { %4758 = vmatmul.bf16.gmra.mxu0 %v4474_v5 }
 0xa4f   : > { %v4063_v27 = vpop.f32.mrf.mxu2 }
 0xa50   : > { %v4448_v3 = vmul.f32 %v4400_v6, %v4063_v27 }
 0xa51   : > { %v4017_v52 = vpop.f32.mrf.mxu1 }
 0xa52   : > { %v4475_v53 = vpack.c.bf16 %v4448_v3, %v4445_v58  ;;  %v4450_v7 = vmul.f32 %v4402_v37, %v4017_v52  ;;  %v4687_v51 = vpop.f32.mrf.mxu3 }
 0xa54   : > { %4807 = vmatmul.bf16.gmra.mxu1 %v4475_v53 }
 0xa57   : > { %v4066_v4 = vpop.f32.mrf.mxu2 }
 0xa58   : > { %v4451_v26 = vmul.f32 %v4403_v43, %v4066_v4 }
 0xa59   : > { %v4019_v29 = vpop.f32.mrf.mxu1 }
 0xa5a   : > { %v4453_v8 = vmul.f32 %v4405_v42, %v4019_v29  ;;  %v4690_v44 = vpop.f32.mrf.mxu3 }
 0xa5c   : > { %v4477_v45 = vpack.c.bf16 %v4453_v8, %v4450_v7 }
 0xa5e   : > { %4763 = vmatmul.bf16.gmra.mxu0 %v4477_v45 }
 0xa5f   : > { %v4068_v16 = vpop.f32.mrf.mxu2 }
 0xa60   : > { %v4454_v38 = vmul.f32 %v4406_v15, %v4068_v16 }
 0xa62   : > { %v4478_v39 = vpack.c.bf16 %v4454_v38, %v4451_v26  ;;  %v4692_v61 = vpop.f32.mrf.mxu3 }
 0xa64   : > { %4812 = vmatmul.bf16.gmra.mxu1 %v4478_v39 }
 0xa6a   : > { %v4695_v2 = vpop.f32.mrf.mxu3 }
 0xa6b   : > { %v4729_v34 = vpop.f32.mrf.mxu0 }
 0xa6c   : > { %v4730_v59 = vadd.f32 %v4729_v34, %v4680_v28 }
 0xa71   : > { %v4778_v36 = vpop.f32.mrf.mxu1 }
 0xa72   : > { %v4779_v10 = vadd.f32 %v4778_v36, %v4730_v59  ;;  %v4697_v31 = vpop.f32.mrf.mxu3 }
 0xa73   : > { %v4731_v50 = vpop.f32.mrf.mxu0 }
 0xa74   : > { %v4818_v1 = vadd.f32 %v4779_v10, %v8845_v17  ;;  %v4732_v62 = vadd.f32 %v4731_v50, %v4682_v55 }
 0xa76   : > { %4834 = vst [vmem:[%s9587_s18] sm:$0xff] %v4818_v1 }
 0xa79   : > { %v4780_v54 = vpop.f32.mrf.mxu1 }
 0xa7a   : > { %v4781_v22 = vadd.f32 %v4780_v54, %v4732_v62  ;;  %v4700_v29 = vpop.f32.mrf.mxu3 }
 0xa7b   : > { %v4734_v40 = vpop.f32.mrf.mxu0 }
 0xa7c   : > { %v4819_v21 = vadd.f32 %v4781_v22, %v8834_v0  ;;  %v4735_v32 = vadd.f32 %v4734_v40, %v4685_v18 }
 0xa7e   : > { %4835 = vst [vmem:[%s9587_s18 + $0x8] sm:$0xff] %v4819_v21 }
 0xa81   : > { %v4783_v49 = vpop.f32.mrf.mxu1 }
 0xa82   : > { %v4784_v17 = vadd.f32 %v4783_v49, %v4735_v32  ;;  %v4702_v45 = vpop.f32.mrf.mxu3 }
 0xa83   : > { %v4736_v57 = vpop.f32.mrf.mxu0 }
 0xa84   : > { %v4820_v60 = vadd.f32 %v4784_v17, %v8864_v35  ;;  %v4737_v25 = vadd.f32 %v4736_v57, %v4687_v51 }
 0xa86   : > { %4836 = vst [vmem:[%s9587_s18 + $0x10] sm:$0xff] %v4820_v60 }
 0xa89   : > { %v4785_v5 = vpop.f32.mrf.mxu1 }
 0xa8a   : > { %v4786_v33 = vadd.f32 %v4785_v5, %v4737_v25  ;;  %v4705_v38 = vpop.f32.mrf.mxu3 }
 0xa8b   : > { %v4739_v11 = vpop.f32.mrf.mxu0 }
 0xa8c   : > { %v4821_v20 = vadd.f32 %v4786_v33, %v8869_v23  ;;  %v4740_v0 = vadd.f32 %v4739_v11, %v4690_v44 }
 0xa8e   : > { %4837 = vst [vmem:[%s9587_s18 + $0x18] sm:$0xff] %v4821_v20 }
 0xa91   : > { %v4788_v6 = vpop.f32.mrf.mxu1 }
 0xa92   : > { %v4789_v27 = vadd.f32 %v4788_v6, %v4740_v0  ;;  %v4707_v10 = vpop.f32.mrf.mxu3  ;;  %v9725_v0 = vld [vmem:[#allocation19_spill] sm:$0xff] }
 0xa93   : > { %v4741_v58 = vpop.f32.mrf.mxu0 }
 0xa94   : > { %v4822_v3 = vadd.f32 %v4789_v27, %v8880_v14  ;;  %v4742_v35 = vadd.f32 %v4741_v58, %v4692_v61  ;;  %v9724_v61 = vld [vmem:[#allocation18_spill] sm:$0xff] }
 0xa96   : > { %4838 = vst [vmem:[%s9587_s18 + $0x20] sm:$0xff] %v4822_v3 }
 0xa99   : > { %v4790_v56 = vpop.f32.mrf.mxu1 }
 0xa9a   : > { %v4791_v52 = vadd.f32 %v4790_v56, %v4742_v35  ;;  %v4710_v54 = vpop.f32.mrf.mxu3  ;;  %v9726_v35 = vld [vmem:[#allocation20_spill] sm:$0xff] }
 0xa9b   : > { %v4744_v53 = vpop.f32.mrf.mxu0 }
 0xa9c   : > { %v4823_v9 = vadd.f32 %v4791_v52, %v8891_v46  ;;  %v4745_v23 = vadd.f32 %v4744_v53, %v4695_v2 }
 0xa9e   : > { %4839 = vst [vmem:[%s9587_s18 + $0x28] sm:$0xff] %v4823_v9 }
 0xaa1   : > { %v4793_v28 = vpop.f32.mrf.mxu1 }
 0xaa2   : > { %v4794_v4 = vadd.f32 %v4793_v28, %v4745_v23  ;;  %v4712_v17 = vpop.f32.mrf.mxu3 }
 0xaa3   : > { %v4746_v37 = vpop.f32.mrf.mxu0 }
 0xaa4   : > { %v4824_v42 = vadd.f32 %v4794_v4, %v8922_v30  ;;  %v4747_v14 = vadd.f32 %v4746_v37, %v4697_v31 }
 0xaa6   : > { %4840 = vst [vmem:[%s9587_s18 + $0x30] sm:$0xff] %v4824_v42 }
 0xaa9   : > { %v4795_v41 = vpop.f32.mrf.mxu1 }
 0xaaa   : > { %v4796_v7 = vadd.f32 %v4795_v41, %v4747_v14  ;;  %v4715_v33 = vpop.f32.mrf.mxu3 }
 0xaab   : > { %v4749_v8 = vpop.f32.mrf.mxu0 }
 0xaac   : > { %v4825_v24 = vadd.f32 %v4796_v7, %v8927_v48  ;;  %v4750_v46 = vadd.f32 %v4749_v8, %v4700_v29 }
 0xaae   : > { %4841 = vst [vmem:[%s9587_s18 + $0x38] sm:$0xff] %v4825_v24 }
 0xab1   : > { %v4798_v43 = vpop.f32.mrf.mxu1 }
 0xab2   : > { %v4799_v15 = vadd.f32 %v4798_v43, %v4750_v46  ;;  %v4717_v27 = vpop.f32.mrf.mxu3 }
 0xab3   : > { %v4751_v16 = vpop.f32.mrf.mxu0 }
 0xab4   : > { %v4826_v26 = vadd.f32 %v4799_v15, %v9080_v19  ;;  %v4752_v30 = vadd.f32 %v4751_v16, %v4702_v45 }
 0xab6   : > { %4842 = vst [vmem:[%s9587_s18 + $0x40] sm:$0xff] %v4826_v26 }
 0xab9   : > { %v4800_v55 = vpop.f32.mrf.mxu1 }
 0xaba   : > { %v4801_v39 = vadd.f32 %v4800_v55, %v4752_v30 }
 0xabb   : > { %v4754_v18 = vpop.f32.mrf.mxu0 }
 0xabc   : > { %v4827_v34 = vadd.f32 %v4801_v39, %v9085_v47  ;;  %v4755_v48 = vadd.f32 %v4754_v18, %v4705_v38 }
 0xabe   : > { %4843 = vst [vmem:[%s9587_s18 + $0x48] sm:$0xff] %v4827_v34 }
 0xac1   : > { %v4803_v59 = vpop.f32.mrf.mxu1 }
 0xac2   : > { %v4804_v36 = vadd.f32 %v4803_v59, %v4755_v48 }
 0xac3   : > { %v4756_v50 = vpop.f32.mrf.mxu0 }
 0xac4   : > { %v4828_v1 = vadd.f32 %v4804_v36, %v9103_v13  ;;  %v4757_v19 = vadd.f32 %v4756_v50, %v4707_v10 }
 0xac6   : > { %4844 = vst [vmem:[%s9587_s18 + $0x50] sm:$0xff] %v4828_v1 }
 0xac9   : > { %v4805_v51 = vpop.f32.mrf.mxu1 }
 0xaca   : > { %v4806_v62 = vadd.f32 %v4805_v51, %v4757_v19 }
 0xacb   : > { %v4759_v22 = vpop.f32.mrf.mxu0 }
 0xacc   : > { %v4829_v40 = vadd.f32 %v4806_v62, %v9112_v63  ;;  %v4760_v47 = vadd.f32 %v4759_v22, %v4710_v54 }
 0xace   : > { %4845 = vst [vmem:[%s9587_s18 + $0x58] sm:$0xff] %v4829_v40 }
 0xad1   : > { %v4808_v21 = vpop.f32.mrf.mxu1 }
 0xad2   : > { %v4809_v44 = vadd.f32 %v4808_v21, %v4760_v47 }
 0xad3   : > { %v4761_v32 = vpop.f32.mrf.mxu0 }
 0xad4   : > { %v4830_v49 = vadd.f32 %v4809_v44, %v9131_v12  ;;  %v4762_v13 = vadd.f32 %v4761_v32, %v4712_v17 }
 0xad6   : > { %4846 = vst [vmem:[%s9587_s18 + $0x60] sm:$0xff] %v4830_v49 }
 0xad9   : > { %v4810_v57 = vpop.f32.mrf.mxu1 }
 0xada   : > { %v4811_v60 = vadd.f32 %v4810_v57, %v4762_v13 }
 0xadb   : > { %v4764_v25 = vpop.f32.mrf.mxu0 }
 0xadc   : > { %v4831_v5 = vadd.f32 %v4811_v60, %v9724_v61  ;;  %v4765_v63 = vadd.f32 %v4764_v25, %v4715_v33 }
 0xade   : > { %4847 = vst [vmem:[%s9587_s18 + $0x68] sm:$0xff] %v4831_v5 }
 0xae1   : > { %v4813_v11 = vpop.f32.mrf.mxu1 }
 0xae2   : > { %v4814_v20 = vadd.f32 %v4813_v11, %v4765_v63 }
 0xae3   : > { %v4766_v6 = vpop.f32.mrf.mxu0 }
 0xae4   : > { %v4832_v12 = vadd.f32 %v4814_v20, %v9725_v0  ;;  %v4767_v2 = vadd.f32 %v4766_v6, %v4717_v27 }
 0xae6   : > { %4848 = vst [vmem:[%s9587_s18 + $0x70] sm:$0xff] %v4832_v12 }
 0xae9   : > { %v4815_v58 = vpop.f32.mrf.mxu1 }
 0xaea   : > { %v4816_v3 = vadd.f32 %v4815_v58, %v4767_v2 }
 0xaec   : > { %v4833_v56 = vadd.f32 %v4816_v3, %v9726_v35 }
 0xaee   : > { %4849 = vst [vmem:[%s9587_s18 + $0x78] sm:$0xff] %v4833_v56 }
 0xaef   : > { %6575 = shalt.err (!%p6572_p10)
}
 0xaf0   : > { %s6636_s28 = smov 128   ;;  %s6637_s18 = smov 8  }
 0xaf1   : > { %5627 = dma.vmem_to_hbm [thread:$0]  (%p6796_p3), %s4864_s17, 2048, %s4866_s19, %s4851_s25, %s6636_s28, %s6636_s28, %s6637_s18  }
 0xaf2 PF: > { %s9727_s8 = sld [smem:[#allocation16_spill]]  ;;  %p9729_p12 = scmp.ge.s32.totalorder %s6622_s24, 2 }
 0xaf4   : > { %p5647_p13 = pnand %p9729_p12, %p6738_p6 }
 0xaf6   : > { %p5648_p0 = pneg %p5647_p13 }
 0xaf8   : > { %s4880_s20 = sand.u32 1, %s9727_s8  }
 0xaf9   : > { %s4881_s26 = scalar_lea.sflag [#allocation4], %s4880_s20 }
 0xafa   : > { %6605 = dma.done.wait (%p5648_p0), %s4881_s26, 2048  }
 0xafb   : > { %6607 = vsyncadd (%p5648_p0), %s4881_s26, 4294965248  ;;  %p27_p5 = scmp.ge.s32.totalorder %s6786_s13, 4   ;;  %s9730_s21 = smov %s6614_s22 }
 0xafc   : > { %s9731_s22 = smov %s6618_s23  ;;  %s9732_s23 = smov %s6802_s16 }
 0xafd   : > { %s9733_s24 = smov %s6786_s13  ;;  %29 = sbr.rel (!%p27_p5) target bundleno = 12 (0xc), region = 129 }
 0xb02   :  { %4887 = vsyncpa [#allocation3], 1 }
 0xb03   :  { %4889 = vsyncpa [#allocation3 + $0x1], 1 }
 0xb04   :  { %4890 = vsyncpa [#allocation6], 1 }
 0xb05   :  { %4891 = vsyncpa [#allocation9], 1 }
 0xb06   :  { %4892 = vsyncpa [#allocation4], 1 }
 0xb07   :  { %4894 = vsyncpa [#allocation4 + $0x1], 1 }

</bundles_post_ra>
